<compile_context>
chip_gen: v7x
topology: tpu7x:2x2x1
jax: 0.10.0
libtpu: 0.0.40
codegen_flags: <defaults>
</compile_context>

<pallas_src>
import functools

import jax
import jax.numpy as jnp
from jax.experimental import pallas as pl
from jax.experimental.pallas import tpu as pltpu


def _attention_pool_kernel(x_ref, pos0_ref, posx_ref, wqkv_ref, bqkv_ref,
                           msum_ref, mexp_ref, wc_ref, bc_ref, o_ref, *,
                           num_heads):
    f32 = jnp.float32
    TB, L, C = x_ref.shape
    cdt = wqkv_ref.dtype          # MXU compute dtype (bf16 or f32)
    ew = cdt                      # dtype of the big (TB, L, C) elementwise passes
    # TODO(synk): on v5e (no bf16 VALU/EUP) force ew = f32 even when cdt is bf16.

    # ---- token construction (no unaligned concat; a single f32 temporary) ----
    # pos0 was pre-corrected at pack time (pos[0] - mean(pos[1:])), so
    # mean(x + pos[1:]) + pos0 == mean(x) + pos[0].
    tokx_f = x_ref[...].astype(f32) + posx_ref[...][None]             # (TB,L,C) f32
    tok0 = (jnp.mean(tokx_f, axis=1) + pos0_ref[...]).astype(cdt)     # (TB,C)
    tokx = tokx_f.astype(cdt).reshape(TB * L, C)                      # (TB*L,C)

    # ---- projections (1/sqrt(head_dim) already folded into Wq / bq) ----
    # Mean token needs Q, K, V -> one (TB,C) @ (C,3C) dot.
    qkv0 = jnp.dot(tok0, wqkv_ref[...], preferred_element_type=f32) + bqkv_ref[...]
    q, k0, v0 = qkv0[:, :C], qkv0[:, C:2 * C], qkv0[:, 2 * C:]        # (TB,C) f32

    # Spatial tokens need only K, V -> two dots on static ref slices of the
    # fused weight; cast down immediately (no (TB*L, 2C) f32 temporary).
    # TODO(synk): at production C (>= ~1024-2048) tile the weight-column dim
    #             (second grid axis or inner pltpu.emit_pipeline over column
    #             chunks) so weights + activations fit v7x's 64 MiB/TC VMEM.
    kx = (jnp.dot(tokx, wqkv_ref[:, C:2 * C], preferred_element_type=f32)
          + bqkv_ref[:, C:2 * C]).astype(ew).reshape(TB, L, C)
    vx = (jnp.dot(tokx, wqkv_ref[:, 2 * C:], preferred_element_type=f32)
          + bqkv_ref[:, 2 * C:]).astype(ew).reshape(TB, L, C)

    # ---- all-heads scores via the precomputed head-sum matrix (one dot) ----
    qk = (q.astype(ew)[:, None, :] * kx).reshape(TB * L, C)           # (TB*L,C) ew
    s_x = jnp.dot(qk, msum_ref[...],
                  preferred_element_type=f32).reshape(TB, L, num_heads)
    s_0 = jnp.dot((q * k0).astype(cdt), msum_ref[...],
                  preferred_element_type=f32)                         # (TB,H)

    # ---- single numerically-stable softmax over the L+1 keys ----
    m_all = jnp.maximum(jnp.max(s_x, axis=1), s_0)                    # (TB,H)
    e_x = jnp.exp(s_x - m_all[:, None, :])                            # (TB,L,H) f32
    e_0 = jnp.exp(s_0 - m_all)                                        # (TB,H)
    denom = e_0 + jnp.sum(e_x, axis=1)                                # (TB,H)

    # ---- expand per-head weights to per-channel; weighted V sum in f32 ----
    mexp = mexp_ref[...]
    w_x = jnp.dot(e_x.reshape(TB * L, num_heads).astype(cdt), mexp,
                  preferred_element_type=f32).astype(ew).reshape(TB, L, C)
    mexp_f = mexp.astype(f32)
    w_0 = jnp.dot(e_0, mexp_f, preferred_element_type=f32)            # (TB,C) f32
    inv = jnp.dot(1.0 / denom, mexp_f, preferred_element_type=f32)    # (TB,C) f32
    attn = (w_0 * v0 + jnp.sum(w_x * vx, axis=1, dtype=f32)) * inv    # (TB,C) f32

    # ---- output projection (wc/bc pre-padded to a lane-dense width) ----
    out = jnp.dot(attn.astype(cdt), wc_ref[...],
                  preferred_element_type=f32) + bc_ref[...]
    o_ref[...] = out.astype(o_ref.dtype)


def pack_attention_pool_params(pos, wq, bq, wk, bk, wv, bv, wc, bc, *,
                               num_heads, compute_dtype=jnp.bfloat16):
    """One-time parameter transform (outside the hot path):
      * fold the 1/sqrt(head_dim) scale into Wq / bq,
      * fuse [Wq*scale | Wk | Wv] into one (C, 3C) weight in the MXU dtype,
      * split the positional embedding into a mean-token row (with the
        spatial-mean correction folded in) and the spatial rows,
      * precompute the head-sum (C,H) / head-expand (H,C) block matrices,
      * pad the output projection to a lane-dense width (multiple of 128).
    """
    C = wq.shape[0]
    assert C % num_heads == 0, (C, num_heads)
    hd = C // num_heads
    scale = hd ** -0.5
    f32 = jnp.float32

    out_dim = wc.shape[1]
    out_pad = -(-out_dim // 128) * 128
    head_of_chan = jnp.arange(C)[:, None] // hd == jnp.arange(num_heads)[None, :]

    return dict(
        pos0=(pos[0:1] - jnp.mean(pos[1:], axis=0, keepdims=True)).astype(f32),
        posx=pos[1:].astype(f32),
        wqkv=jnp.concatenate([wq * scale, wk, wv], axis=1).astype(compute_dtype),
        bqkv=jnp.concatenate([bq * scale, bk, bv], axis=1).astype(f32),
        m_sum=head_of_chan.astype(compute_dtype),        # (C, H) head-sum
        m_exp=head_of_chan.T.astype(compute_dtype),      # (H, C) head-expand
        wc=jnp.pad(wc, ((0, 0), (0, out_pad - out_dim))).astype(compute_dtype),
        bc=jnp.pad(bc, ((0, 0), (0, out_pad - out_dim))).astype(f32),
        out_dim=out_dim,
    )


def _vmem_limit_bytes():
    # ~3/4 of physical VMEM: ~96 MiB on v5e/v6e (128 MiB), ~48 MiB on v7x (64 MiB).
    try:
        cap = pltpu.get_tpu_info().vmem_capacity_bytes
    except Exception:
        cap = 64 * 1024 * 1024
    return int(cap * 3 // 4)


def _pick_batch_tile(N, L, target_rows=256, min_steps=2):
    # TB*(L+1) ~ target MXU rows, TB a multiple of 8 (aligned output sublanes)
    # unless TB == N, and >= min_steps grid steps when the batch allows it so
    # the auto-pipeline / megacore sharding have work to overlap.
    # TODO(synk): prefer min_steps=4 on v7x (>=2 steps per TensorCore) and a
    #             ~128-row target on v5e's 128x128 MXUs.
    if N <= 8:
        return N
    cap = max(8, int(round(target_rows / (L + 1) / 8)) * 8)
    steps_cap = max(8, (N // min_steps) // 8 * 8)
    return min(cap, steps_cap, N // 8 * 8)


def attention_pool(x, params, *, num_heads, batch_tile=None):
    """x: (N, L, C); params from pack_attention_pool_params. -> (N, out_dim)."""
    N, L, C = x.shape
    out_pad = params["wc"].shape[1]
    out_dim = params["out_dim"]
    TB = batch_tile if batch_tile is not None else _pick_batch_tile(N, L)
    n_pad = -(-N // TB) * TB
    if n_pad != N:                     # zero-pad ragged batches (sliced off below)
        x = jnp.pad(x, ((0, n_pad - N), (0, 0), (0, 0)))

    kernel = functools.partial(_attention_pool_kernel, num_heads=num_heads)
    consts = (params["pos0"], params["posx"], params["wqkv"], params["bqkv"],
              params["m_sum"], params["m_exp"], params["wc"], params["bc"])

    def build(single_buffer):
        def const_spec(a):
            idx = lambda b: (0,) * a.ndim
            if single_buffer:
                # Constant index_map -> the DMA only fires once; the second
                # pipeline buffer would only waste VMEM.
                return pl.BlockSpec(a.shape, idx, pipeline_mode=pl.Buffered(1))
            return pl.BlockSpec(a.shape, idx)

        return pl.pallas_call(
            kernel,
            out_shape=jax.ShapeDtypeStruct((n_pad, out_pad), x.dtype),
            grid_spec=pltpu.PrefetchScalarGridSpec(
                num_scalar_prefetch=0,
                grid=(n_pad // TB,),
                in_specs=[pl.BlockSpec((TB, L, C), lambda b: (b, 0, 0))]
                         + [const_spec(a) for a in consts],
                out_specs=pl.BlockSpec((TB, out_pad), lambda b: (b, 0)),
            ),
            compiler_params=pltpu.CompilerParams(
                dimension_semantics=("parallel",),
                vmem_limit_bytes=_vmem_limit_bytes()),
        )

    try:
        out = build(single_buffer=True)(x, *consts)
    except Exception:
        # Fallback for JAX builds without BlockSpec(pipeline_mode=...) support.
        out = build(single_buffer=False)(x, *consts)
    return out[:N, :out_dim]


def attention_pool_ref(x, pos, wq, bq, wk, bk, wv, bv, wc, bc, *, num_heads):
    """Pure-JAX reference mirroring F.multi_head_attention_forward semantics."""
    N, L, C = x.shape
    hd = C // num_heads
    tokens = jnp.concatenate([jnp.mean(x, axis=1, keepdims=True), x], axis=1)
    tokens = tokens + pos[None, :, :]
    Q = tokens[:, 0:1, :] @ wq + bq
    K = tokens @ wk + bk
    V = tokens @ wv + bv
    Q = Q * (hd ** -0.5)
    Qh = Q.reshape(N, 1, num_heads, hd).transpose(0, 2, 1, 3)
    Kh = K.reshape(N, L + 1, num_heads, hd).transpose(0, 2, 1, 3)
    Vh = V.reshape(N, L + 1, num_heads, hd).transpose(0, 2, 1, 3)
    s = jnp.einsum('bhqd,bhkd->bhqk', Qh, Kh)
    p = jax.nn.softmax(s, axis=-1)
    o = jnp.einsum('bhqk,bhkd->bhqd', p, Vh)
    o = o.transpose(0, 2, 1, 3).reshape(N, 1, C)
    return (o @ wc + bc)[:, 0, :]


if __name__ == "__main__":
    # Config consistent with the module's __init__:
    #   spacial_dim=16, embed_dim=32, num_heads=4, output_dim=32
    N, L, C, H, OUT = 16, 16, 32, 4, 32

    key = jax.random.PRNGKey(0)
    ks = jax.random.split(key, 10)

    x = jax.random.normal(ks[0], (N, L, C), dtype=jnp.float32)
    pos = jax.random.normal(ks[1], (L + 1, C), dtype=jnp.float32) / (C ** 0.5)

    # nn.Linear weights (stored pre-transposed as (in, out)).
    def lin(kw, kb, d_in, d_out):
        bound = 1.0 / (d_in ** 0.5)
        w = jax.random.uniform(kw, (d_in, d_out), jnp.float32, -bound, bound)
        b = jax.random.uniform(kb, (1, d_out), jnp.float32, -bound, bound)
        return w, b

    wq, bq = lin(ks[2], ks[3], C, C)
    wk, bk = lin(ks[4], ks[5], C, C)
    wv, bv = lin(ks[6], ks[7], C, C)
    wc, bc = lin(ks[8], ks[9], C, OUT)

    ref = attention_pool_ref(x, pos, wq, bq, wk, bk, wv, bv, wc, bc, num_heads=H)

    # f32 compute path (tight numerical check).
    p32 = pack_attention_pool_params(pos, wq, bq, wk, bk, wv, bv, wc, bc,
                                     num_heads=H, compute_dtype=jnp.float32)
    out32 = jax.block_until_ready(attention_pool(x, p32, num_heads=H))
    assert out32.shape == (N, OUT), out32.shape
    assert jnp.allclose(out32, ref, atol=2e-3, rtol=2e-3), \
        float(jnp.max(jnp.abs(out32 - ref)))

    # Ragged batch (exercises the zero-pad path; TB does not divide 13).
    out13 = jax.block_until_ready(attention_pool(x[:13], p32, num_heads=H))
    assert out13.shape == (13, OUT), out13.shape
    assert jnp.allclose(out13, ref[:13], atol=2e-3, rtol=2e-3), \
        float(jnp.max(jnp.abs(out13 - ref[:13])))

    # bf16 compute path (default, MXU-friendly) — looser check.
    pbf = pack_attention_pool_params(pos, wq, bq, wk, bk, wv, bv, wc, bc,
                                     num_heads=H, compute_dtype=jnp.bfloat16)
    outbf = jax.block_until_ready(attention_pool(x, pbf, num_heads=H))
    assert outbf.shape == (N, OUT), outbf.shape
    assert jnp.allclose(outbf, ref, atol=1e-1, rtol=1e-1), \
        float(jnp.max(jnp.abs(outbf - ref)))

    print("KERNEL_OK")
</pallas_src>

<mosaic_0001>
module attributes {stable_mosaic.version = 11 : i64} {
  func.func @_attention_pool_kernel(%arg0: i32, %arg1: memref<8x16x32xf32, #tpu.memory_space<vmem>>, %arg2: memref<1x32xf32, #tpu.memory_space<vmem>>, %arg3: memref<16x32xf32, #tpu.memory_space<vmem>>, %arg4: memref<32x96xf32, #tpu.memory_space<vmem>>, %arg5: memref<1x96xf32, #tpu.memory_space<vmem>>, %arg6: memref<32x4xf32, #tpu.memory_space<vmem>>, %arg7: memref<4x32xf32, #tpu.memory_space<vmem>>, %arg8: memref<32x128xf32, #tpu.memory_space<vmem>>, %arg9: memref<1x128xf32, #tpu.memory_space<vmem>>, %arg10: memref<8x128xf32, #tpu.memory_space<vmem>>) attributes {dimension_semantics = [#tpu.dimension_semantics<parallel>], iteration_bounds = array<i64: 2>, scalar_prefetch = 0 : i64, scratch_operands = 0 : i64, tpu.core_type = #tpu.core_type<tc>, window_params = [{transform_indices = @transform_0, window_bounds = array<i64: 8, 16, 32>}, {pipeline_mode = #tpu.pipeline_mode<synchronous>, transform_indices = @transform_1, window_bounds = array<i64: 1, 32>}, {pipeline_mode = #tpu.pipeline_mode<synchronous>, transform_indices = @transform_2, window_bounds = array<i64: 16, 32>}, {pipeline_mode = #tpu.pipeline_mode<synchronous>, transform_indices = @transform_3, window_bounds = array<i64: 32, 96>}, {pipeline_mode = #tpu.pipeline_mode<synchronous>, transform_indices = @transform_4, window_bounds = array<i64: 1, 96>}, {pipeline_mode = #tpu.pipeline_mode<synchronous>, transform_indices = @transform_5, window_bounds = array<i64: 32, 4>}, {pipeline_mode = #tpu.pipeline_mode<synchronous>, transform_indices = @transform_6, window_bounds = array<i64: 4, 32>}, {pipeline_mode = #tpu.pipeline_mode<synchronous>, transform_indices = @transform_7, window_bounds = array<i64: 32, 128>}, {pipeline_mode = #tpu.pipeline_mode<synchronous>, transform_indices = @transform_8, window_bounds = array<i64: 1, 128>}, {transform_indices = @transform_9, window_bounds = array<i64: 8, 128>}]} {
    %c0 = arith.constant 0 : index
    %c0_0 = arith.constant 0 : index
    %c0_1 = arith.constant 0 : index
    %0 = vector.load %arg1[%c0, %c0_0, %c0_1] : memref<8x16x32xf32, #tpu.memory_space<vmem>>, vector<8x16x32xf32>
    %c0_2 = arith.constant 0 : index
    %c0_3 = arith.constant 0 : index
    %1 = vector.load %arg3[%c0_2, %c0_3] : memref<16x32xf32, #tpu.memory_space<vmem>>, vector<16x32xf32>
    %2 = vector.shape_cast %1 : vector<16x32xf32> to vector<1x16x32xf32>
    %3 = vector.broadcast %2 : vector<1x16x32xf32> to vector<8x16x32xf32>
    %4 = arith.addf %0, %3 : vector<8x16x32xf32>
    %cst = arith.constant dense<0.000000e+00> : vector<8x32xf32>
    %5 = vector.multi_reduction <add>, %4, %cst [1] : vector<8x16x32xf32> to vector<8x32xf32>
    %cst_4 = arith.constant 1.600000e+01 : f32
    %6 = vector.broadcast %cst_4 : f32 to vector<8x32xf32>
    %7 = arith.divf %5, %6 : vector<8x32xf32>
    %c0_5 = arith.constant 0 : index
    %c0_6 = arith.constant 0 : index
    %8 = vector.load %arg2[%c0_5, %c0_6] : memref<1x32xf32, #tpu.memory_space<vmem>>, vector<1x32xf32>
    %9 = vector.broadcast %8 : vector<1x32xf32> to vector<8x32xf32>
    %10 = arith.addf %7, %9 : vector<8x32xf32>
    %11 = vector.shape_cast %4 : vector<8x16x32xf32> to vector<128x32xf32>
    %c0_7 = arith.constant 0 : index
    %c0_8 = arith.constant 0 : index
    %12 = vector.load %arg4[%c0_7, %c0_8] : memref<32x96xf32, #tpu.memory_space<vmem>>, vector<32x96xf32>
    %cst_9 = arith.constant dense<0.000000e+00> : vector<8x96xf32>
    %13 = tpu.matmul %10, %12, %cst_9 {dimension_numbers = #tpu.dot_dimension_numbers<[1], [0], [0], [1], [0, 0, 1, 1], [], []>} : vector<8x32xf32>, vector<32x96xf32>, vector<8x96xf32> -> vector<8x96xf32>
    %c0_10 = arith.constant 0 : index
    %c0_11 = arith.constant 0 : index
    %14 = vector.load %arg5[%c0_10, %c0_11] : memref<1x96xf32, #tpu.memory_space<vmem>>, vector<1x96xf32>
    %15 = vector.broadcast %14 : vector<1x96xf32> to vector<8x96xf32>
    %16 = arith.addf %13, %15 : vector<8x96xf32>
    %17 = vector.extract_strided_slice %16 {offsets = [0, 0], sizes = [8, 32], strides = [1, 1]} : vector<8x96xf32> to vector<8x32xf32>
    %18 = vector.extract_strided_slice %16 {offsets = [0, 32], sizes = [8, 32], strides = [1, 1]} : vector<8x96xf32> to vector<8x32xf32>
    %19 = vector.extract_strided_slice %16 {offsets = [0, 64], sizes = [8, 32], strides = [1, 1]} : vector<8x96xf32> to vector<8x32xf32>
    %c0_12 = arith.constant 0 : index
    %c32 = arith.constant 32 : index
    %20 = vector.load %arg4[%c0_12, %c32] : memref<32x96xf32, #tpu.memory_space<vmem>>, vector<32x32xf32>
    %cst_13 = arith.constant dense<0.000000e+00> : vector<128x32xf32>
    %21 = tpu.matmul %11, %20, %cst_13 {dimension_numbers = #tpu.dot_dimension_numbers<[1], [0], [0], [1], [0, 0, 1, 1], [], []>} : vector<128x32xf32>, vector<32x32xf32>, vector<128x32xf32> -> vector<128x32xf32>
    %c0_14 = arith.constant 0 : index
    %c32_15 = arith.constant 32 : index
    %22 = vector.load %arg5[%c0_14, %c32_15] : memref<1x96xf32, #tpu.memory_space<vmem>>, vector<1x32xf32>
    %23 = vector.broadcast %22 : vector<1x32xf32> to vector<128x32xf32>
    %24 = arith.addf %21, %23 : vector<128x32xf32>
    %25 = vector.shape_cast %24 : vector<128x32xf32> to vector<8x16x32xf32>
    %c0_16 = arith.constant 0 : index
    %c64 = arith.constant 64 : index
    %26 = vector.load %arg4[%c0_16, %c64] : memref<32x96xf32, #tpu.memory_space<vmem>>, vector<32x32xf32>
    %cst_17 = arith.constant dense<0.000000e+00> : vector<128x32xf32>
    %27 = tpu.matmul %11, %26, %cst_17 {dimension_numbers = #tpu.dot_dimension_numbers<[1], [0], [0], [1], [0, 0, 1, 1], [], []>} : vector<128x32xf32>, vector<32x32xf32>, vector<128x32xf32> -> vector<128x32xf32>
    %c0_18 = arith.constant 0 : index
    %c64_19 = arith.constant 64 : index
    %28 = vector.load %arg5[%c0_18, %c64_19] : memref<1x96xf32, #tpu.memory_space<vmem>>, vector<1x32xf32>
    %29 = vector.broadcast %28 : vector<1x32xf32> to vector<128x32xf32>
    %30 = arith.addf %27, %29 : vector<128x32xf32>
    %31 = vector.shape_cast %30 : vector<128x32xf32> to vector<8x16x32xf32>
    %32 = vector.shape_cast %17 : vector<8x32xf32> to vector<8x1x32xf32>
    %33 = vector.broadcast %32 : vector<8x1x32xf32> to vector<8x16x32xf32>
    %34 = arith.mulf %33, %25 : vector<8x16x32xf32>
    %35 = vector.shape_cast %34 : vector<8x16x32xf32> to vector<128x32xf32>
    %c0_20 = arith.constant 0 : index
    %c0_21 = arith.constant 0 : index
    %36 = vector.load %arg6[%c0_20, %c0_21] : memref<32x4xf32, #tpu.memory_space<vmem>>, vector<32x4xf32>
    %cst_22 = arith.constant dense<0.000000e+00> : vector<128x4xf32>
    %37 = tpu.matmul %35, %36, %cst_22 {dimension_numbers = #tpu.dot_dimension_numbers<[1], [0], [0], [1], [0, 0, 1, 1], [], []>} : vector<128x32xf32>, vector<32x4xf32>, vector<128x4xf32> -> vector<128x4xf32>
    %38 = vector.shape_cast %37 : vector<128x4xf32> to vector<8x16x4xf32>
    %39 = arith.mulf %17, %18 : vector<8x32xf32>
    %c0_23 = arith.constant 0 : index
    %c0_24 = arith.constant 0 : index
    %40 = vector.load %arg6[%c0_23, %c0_24] : memref<32x4xf32, #tpu.memory_space<vmem>>, vector<32x4xf32>
    %cst_25 = arith.constant dense<0.000000e+00> : vector<8x4xf32>
    %41 = tpu.matmul %39, %40, %cst_25 {dimension_numbers = #tpu.dot_dimension_numbers<[1], [0], [0], [1], [0, 0, 1, 1], [], []>} : vector<8x32xf32>, vector<32x4xf32>, vector<8x4xf32> -> vector<8x4xf32>
    %cst_26 = arith.constant dense<0xFF800000> : vector<8x4xf32>
    %42 = vector.multi_reduction <maximumf>, %38, %cst_26 [1] : vector<8x16x4xf32> to vector<8x4xf32>
    %43 = arith.maximumf %42, %41 : vector<8x4xf32>
    %44 = vector.shape_cast %43 : vector<8x4xf32> to vector<8x1x4xf32>
    %45 = vector.broadcast %44 : vector<8x1x4xf32> to vector<8x16x4xf32>
    %46 = arith.subf %38, %45 : vector<8x16x4xf32>
    %47 = math.exp %46 : vector<8x16x4xf32>
    %48 = arith.subf %41, %43 : vector<8x4xf32>
    %49 = math.exp %48 : vector<8x4xf32>
    %cst_27 = arith.constant dense<0.000000e+00> : vector<8x4xf32>
    %50 = vector.multi_reduction <add>, %47, %cst_27 [1] : vector<8x16x4xf32> to vector<8x4xf32>
    %51 = arith.addf %49, %50 : vector<8x4xf32>
    %c0_28 = arith.constant 0 : index
    %c0_29 = arith.constant 0 : index
    %52 = vector.load %arg7[%c0_28, %c0_29] : memref<4x32xf32, #tpu.memory_space<vmem>>, vector<4x32xf32>
    %53 = vector.shape_cast %47 : vector<8x16x4xf32> to vector<128x4xf32>
    %cst_30 = arith.constant dense<0.000000e+00> : vector<128x32xf32>
    %54 = tpu.matmul %53, %52, %cst_30 {dimension_numbers = #tpu.dot_dimension_numbers<[1], [0], [0], [1], [0, 0, 1, 1], [], []>} : vector<128x4xf32>, vector<4x32xf32>, vector<128x32xf32> -> vector<128x32xf32>
    %55 = vector.shape_cast %54 : vector<128x32xf32> to vector<8x16x32xf32>
    %cst_31 = arith.constant dense<0.000000e+00> : vector<8x32xf32>
    %56 = tpu.matmul %49, %52, %cst_31 {dimension_numbers = #tpu.dot_dimension_numbers<[1], [0], [0], [1], [0, 0, 1, 1], [], []>} : vector<8x4xf32>, vector<4x32xf32>, vector<8x32xf32> -> vector<8x32xf32>
    %cst_32 = arith.constant 1.000000e+00 : f32
    %57 = vector.broadcast %cst_32 : f32 to vector<8x4xf32>
    %58 = arith.divf %57, %51 : vector<8x4xf32>
    %cst_33 = arith.constant dense<0.000000e+00> : vector<8x32xf32>
    %59 = tpu.matmul %58, %52, %cst_33 {dimension_numbers = #tpu.dot_dimension_numbers<[1], [0], [0], [1], [0, 0, 1, 1], [], []>} : vector<8x4xf32>, vector<4x32xf32>, vector<8x32xf32> -> vector<8x32xf32>
    %60 = arith.mulf %56, %19 : vector<8x32xf32>
    %61 = arith.mulf %55, %31 : vector<8x16x32xf32>
    %cst_34 = arith.constant dense<0.000000e+00> : vector<8x32xf32>
    %62 = vector.multi_reduction <add>, %61, %cst_34 [1] : vector<8x16x32xf32> to vector<8x32xf32>
    %63 = arith.addf %60, %62 : vector<8x32xf32>
    %64 = arith.mulf %63, %59 : vector<8x32xf32>
    %c0_35 = arith.constant 0 : index
    %c0_36 = arith.constant 0 : index
    %65 = vector.load %arg8[%c0_35, %c0_36] : memref<32x128xf32, #tpu.memory_space<vmem>>, vector<32x128xf32>
    %cst_37 = arith.constant dense<0.000000e+00> : vector<8x128xf32>
    %66 = tpu.matmul %64, %65, %cst_37 {dimension_numbers = #tpu.dot_dimension_numbers<[1], [0], [0], [1], [0, 0, 1, 1], [], []>} : vector<8x32xf32>, vector<32x128xf32>, vector<8x128xf32> -> vector<8x128xf32>
    %c0_38 = arith.constant 0 : index
    %c0_39 = arith.constant 0 : index
    %67 = vector.load %arg9[%c0_38, %c0_39] : memref<1x128xf32, #tpu.memory_space<vmem>>, vector<1x128xf32>
    %68 = vector.broadcast %67 : vector<1x128xf32> to vector<8x128xf32>
    %69 = arith.addf %66, %68 : vector<8x128xf32>
    %c0_40 = arith.constant 0 : index
    %c0_41 = arith.constant 0 : index
    %70 = vector.load %arg10[%c0_40, %c0_41] : memref<8x128xf32, #tpu.memory_space<vmem>>, vector<8x128xf32>
    tpu.vector_store %arg10[%c0_40, %c0_41], %69 {strides = array<i32>} : memref<8x128xf32, #tpu.memory_space<vmem>>, vector<8x128xf32>,
    return
  }
  func.func @transform_0(%arg0: i32) -> (i32, i32, i32) {
    %c0_i32 = arith.constant 0 : i32
    %c0_i32_0 = arith.constant 0 : i32
    %c0_i32_1 = arith.constant 0 : i32
    return %arg0, %c0_i32, %c0_i32_0 : i32, i32, i32
  }
  func.func @transform_1(%arg0: i32) -> (i32, i32) {
    %c0_i32 = arith.constant 0 : i32
    %c0_i32_0 = arith.constant 0 : i32
    %c0_i32_1 = arith.constant 0 : i32
    return %c0_i32, %c0_i32_0 : i32, i32
  }
  func.func @transform_2(%arg0: i32) -> (i32, i32) {
    %c0_i32 = arith.constant 0 : i32
    %c0_i32_0 = arith.constant 0 : i32
    %c0_i32_1 = arith.constant 0 : i32
    return %c0_i32, %c0_i32_0 : i32, i32
  }
  func.func @transform_3(%arg0: i32) -> (i32, i32) {
    %c0_i32 = arith.constant 0 : i32
    %c0_i32_0 = arith.constant 0 : i32
    %c0_i32_1 = arith.constant 0 : i32
    return %c0_i32, %c0_i32_0 : i32, i32
  }
  func.func @transform_4(%arg0: i32) -> (i32, i32) {
    %c0_i32 = arith.constant 0 : i32
    %c0_i32_0 = arith.constant 0 : i32
    %c0_i32_1 = arith.constant 0 : i32
    return %c0_i32, %c0_i32_0 : i32, i32
  }
  func.func @transform_5(%arg0: i32) -> (i32, i32) {
    %c0_i32 = arith.constant 0 : i32
    %c0_i32_0 = arith.constant 0 : i32
    %c0_i32_1 = arith.constant 0 : i32
    return %c0_i32, %c0_i32_0 : i32, i32
  }
  func.func @transform_6(%arg0: i32) -> (i32, i32) {
    %c0_i32 = arith.constant 0 : i32
    %c0_i32_0 = arith.constant 0 : i32
    %c0_i32_1 = arith.constant 0 : i32
    return %c0_i32, %c0_i32_0 : i32, i32
  }
  func.func @transform_7(%arg0: i32) -> (i32, i32) {
    %c0_i32 = arith.constant 0 : i32
    %c0_i32_0 = arith.constant 0 : i32
    %c0_i32_1 = arith.constant 0 : i32
    return %c0_i32, %c0_i32_0 : i32, i32
  }
  func.func @transform_8(%arg0: i32) -> (i32, i32) {
    %c0_i32 = arith.constant 0 : i32
    %c0_i32_0 = arith.constant 0 : i32
    %c0_i32_1 = arith.constant 0 : i32
    return %c0_i32, %c0_i32_0 : i32, i32
  }
  func.func @transform_9(%arg0: i32) -> (i32, i32) {
    %c0_i32 = arith.constant 0 : i32
    %c0_i32_0 = arith.constant 0 : i32
    return %arg0, %c0_i32 : i32, i32
  }
}

module attributes {stable_mosaic.version = 11 : i64} {
  func.func @_attention_pool_kernel(%arg0: i32, %arg1: memref<8x16x32xf32, #tpu.memory_space<vmem>>, %arg2: memref<1x32xf32, #tpu.memory_space<vmem>>, %arg3: memref<16x32xf32, #tpu.memory_space<vmem>>, %arg4: memref<32x96xf32, #tpu.memory_space<vmem>>, %arg5: memref<1x96xf32, #tpu.memory_space<vmem>>, %arg6: memref<32x4xf32, #tpu.memory_space<vmem>>, %arg7: memref<4x32xf32, #tpu.memory_space<vmem>>, %arg8: memref<32x128xf32, #tpu.memory_space<vmem>>, %arg9: memref<1x128xf32, #tpu.memory_space<vmem>>, %arg10: memref<8x128xf32, #tpu.memory_space<vmem>>) attributes {dimension_semantics = [#tpu.dimension_semantics<parallel>], iteration_bounds = array<i64: 2>, scalar_prefetch = 0 : i64, scratch_operands = 0 : i64, tpu.core_type = #tpu.core_type<tc>, window_params = [{transform_indices = @transform_0, window_bounds = array<i64: 8, 16, 32>}, {pipeline_mode = #tpu.pipeline_mode<synchronous>, transform_indices = @transform_1, window_bounds = array<i64: 1, 32>}, {pipeline_mode = #tpu.pipeline_mode<synchronous>, transform_indices = @transform_2, window_bounds = array<i64: 16, 32>}, {pipeline_mode = #tpu.pipeline_mode<synchronous>, transform_indices = @transform_3, window_bounds = array<i64: 32, 96>}, {pipeline_mode = #tpu.pipeline_mode<synchronous>, transform_indices = @transform_4, window_bounds = array<i64: 1, 96>}, {pipeline_mode = #tpu.pipeline_mode<synchronous>, transform_indices = @transform_5, window_bounds = array<i64: 32, 4>}, {pipeline_mode = #tpu.pipeline_mode<synchronous>, transform_indices = @transform_6, window_bounds = array<i64: 4, 32>}, {pipeline_mode = #tpu.pipeline_mode<synchronous>, transform_indices = @transform_7, window_bounds = array<i64: 32, 128>}, {pipeline_mode = #tpu.pipeline_mode<synchronous>, transform_indices = @transform_8, window_bounds = array<i64: 1, 128>}, {transform_indices = @transform_9, window_bounds = array<i64: 8, 128>}]} {
    %c0 = arith.constant 0 : index
    %c0_0 = arith.constant 0 : index
    %c0_1 = arith.constant 0 : index
    %0 = vector.load %arg1[%c0, %c0_0, %c0_1] : memref<8x16x32xf32, #tpu.memory_space<vmem>>, vector<8x16x32xf32>
    %c0_2 = arith.constant 0 : index
    %c0_3 = arith.constant 0 : index
    %1 = vector.load %arg3[%c0_2, %c0_3] : memref<16x32xf32, #tpu.memory_space<vmem>>, vector<16x32xf32>
    %2 = vector.shape_cast %1 : vector<16x32xf32> to vector<1x16x32xf32>
    %3 = vector.broadcast %2 : vector<1x16x32xf32> to vector<8x16x32xf32>
    %4 = arith.addf %0, %3 : vector<8x16x32xf32>
    %cst = arith.constant dense<0.000000e+00> : vector<8x32xf32>
    %5 = vector.multi_reduction <add>, %4, %cst [1] : vector<8x16x32xf32> to vector<8x32xf32>
    %cst_4 = arith.constant 1.600000e+01 : f32
    %6 = vector.broadcast %cst_4 : f32 to vector<8x32xf32>
    %7 = arith.divf %5, %6 : vector<8x32xf32>
    %c0_5 = arith.constant 0 : index
    %c0_6 = arith.constant 0 : index
    %8 = vector.load %arg2[%c0_5, %c0_6] : memref<1x32xf32, #tpu.memory_space<vmem>>, vector<1x32xf32>
    %9 = vector.broadcast %8 : vector<1x32xf32> to vector<8x32xf32>
    %10 = arith.addf %7, %9 : vector<8x32xf32>
    %11 = vector.shape_cast %4 : vector<8x16x32xf32> to vector<128x32xf32>
    %c0_7 = arith.constant 0 : index
    %c0_8 = arith.constant 0 : index
    %12 = vector.load %arg4[%c0_7, %c0_8] : memref<32x96xf32, #tpu.memory_space<vmem>>, vector<32x96xf32>
    %cst_9 = arith.constant dense<0.000000e+00> : vector<8x96xf32>
    %13 = tpu.matmul %10, %12, %cst_9 {dimension_numbers = #tpu.dot_dimension_numbers<[1], [0], [0], [1], [0, 0, 1, 1], [], []>} : vector<8x32xf32>, vector<32x96xf32>, vector<8x96xf32> -> vector<8x96xf32>
    %c0_10 = arith.constant 0 : index
    %c0_11 = arith.constant 0 : index
    %14 = vector.load %arg5[%c0_10, %c0_11] : memref<1x96xf32, #tpu.memory_space<vmem>>, vector<1x96xf32>
    %15 = vector.broadcast %14 : vector<1x96xf32> to vector<8x96xf32>
    %16 = arith.addf %13, %15 : vector<8x96xf32>
    %17 = vector.extract_strided_slice %16 {offsets = [0, 0], sizes = [8, 32], strides = [1, 1]} : vector<8x96xf32> to vector<8x32xf32>
    %18 = vector.extract_strided_slice %16 {offsets = [0, 32], sizes = [8, 32], strides = [1, 1]} : vector<8x96xf32> to vector<8x32xf32>
    %19 = vector.extract_strided_slice %16 {offsets = [0, 64], sizes = [8, 32], strides = [1, 1]} : vector<8x96xf32> to vector<8x32xf32>
    %c0_12 = arith.constant 0 : index
    %c32 = arith.constant 32 : index
    %20 = vector.load %arg4[%c0_12, %c32] : memref<32x96xf32, #tpu.memory_space<vmem>>, vector<32x32xf32>
    %cst_13 = arith.constant dense<0.000000e+00> : vector<128x32xf32>
    %21 = tpu.matmul %11, %20, %cst_13 {dimension_numbers = #tpu.dot_dimension_numbers<[1], [0], [0], [1], [0, 0, 1, 1], [], []>} : vector<128x32xf32>, vector<32x32xf32>, vector<128x32xf32> -> vector<128x32xf32>
    %c0_14 = arith.constant 0 : index
    %c32_15 = arith.constant 32 : index
    %22 = vector.load %arg5[%c0_14, %c32_15] : memref<1x96xf32, #tpu.memory_space<vmem>>, vector<1x32xf32>
    %23 = vector.broadcast %22 : vector<1x32xf32> to vector<128x32xf32>
    %24 = arith.addf %21, %23 : vector<128x32xf32>
    %25 = vector.shape_cast %24 : vector<128x32xf32> to vector<8x16x32xf32>
    %c0_16 = arith.constant 0 : index
    %c64 = arith.constant 64 : index
    %26 = vector.load %arg4[%c0_16, %c64] : memref<32x96xf32, #tpu.memory_space<vmem>>, vector<32x32xf32>
    %cst_17 = arith.constant dense<0.000000e+00> : vector<128x32xf32>
    %27 = tpu.matmul %11, %26, %cst_17 {dimension_numbers = #tpu.dot_dimension_numbers<[1], [0], [0], [1], [0, 0, 1, 1], [], []>} : vector<128x32xf32>, vector<32x32xf32>, vector<128x32xf32> -> vector<128x32xf32>
    %c0_18 = arith.constant 0 : index
    %c64_19 = arith.constant 64 : index
    %28 = vector.load %arg5[%c0_18, %c64_19] : memref<1x96xf32, #tpu.memory_space<vmem>>, vector<1x32xf32>
    %29 = vector.broadcast %28 : vector<1x32xf32> to vector<128x32xf32>
    %30 = arith.addf %27, %29 : vector<128x32xf32>
    %31 = vector.shape_cast %30 : vector<128x32xf32> to vector<8x16x32xf32>
    %32 = vector.shape_cast %17 : vector<8x32xf32> to vector<8x1x32xf32>
    %33 = vector.broadcast %32 : vector<8x1x32xf32> to vector<8x16x32xf32>
    %34 = arith.mulf %33, %25 : vector<8x16x32xf32>
    %35 = vector.shape_cast %34 : vector<8x16x32xf32> to vector<128x32xf32>
    %c0_20 = arith.constant 0 : index
    %c0_21 = arith.constant 0 : index
    %36 = vector.load %arg6[%c0_20, %c0_21] : memref<32x4xf32, #tpu.memory_space<vmem>>, vector<32x4xf32>
    %cst_22 = arith.constant dense<0.000000e+00> : vector<128x4xf32>
    %37 = tpu.matmul %35, %36, %cst_22 {dimension_numbers = #tpu.dot_dimension_numbers<[1], [0], [0], [1], [0, 0, 1, 1], [], []>} : vector<128x32xf32>, vector<32x4xf32>, vector<128x4xf32> -> vector<128x4xf32>
    %38 = vector.shape_cast %37 : vector<128x4xf32> to vector<8x16x4xf32>
    %39 = arith.mulf %17, %18 : vector<8x32xf32>
    %c0_23 = arith.constant 0 : index
    %c0_24 = arith.constant 0 : index
    %40 = vector.load %arg6[%c0_23, %c0_24] : memref<32x4xf32, #tpu.memory_space<vmem>>, vector<32x4xf32>
    %cst_25 = arith.constant dense<0.000000e+00> : vector<8x4xf32>
    %41 = tpu.matmul %39, %40, %cst_25 {dimension_numbers = #tpu.dot_dimension_numbers<[1], [0], [0], [1], [0, 0, 1, 1], [], []>} : vector<8x32xf32>, vector<32x4xf32>, vector<8x4xf32> -> vector<8x4xf32>
    %cst_26 = arith.constant dense<0xFF800000> : vector<8x4xf32>
    %42 = vector.multi_reduction <maximumf>, %38, %cst_26 [1] : vector<8x16x4xf32> to vector<8x4xf32>
    %43 = arith.maximumf %42, %41 : vector<8x4xf32>
    %44 = vector.shape_cast %43 : vector<8x4xf32> to vector<8x1x4xf32>
    %45 = vector.broadcast %44 : vector<8x1x4xf32> to vector<8x16x4xf32>
    %46 = arith.subf %38, %45 : vector<8x16x4xf32>
    %47 = math.exp %46 : vector<8x16x4xf32>
    %48 = arith.subf %41, %43 : vector<8x4xf32>
    %49 = math.exp %48 : vector<8x4xf32>
    %cst_27 = arith.constant dense<0.000000e+00> : vector<8x4xf32>
    %50 = vector.multi_reduction <add>, %47, %cst_27 [1] : vector<8x16x4xf32> to vector<8x4xf32>
    %51 = arith.addf %49, %50 : vector<8x4xf32>
    %c0_28 = arith.constant 0 : index
    %c0_29 = arith.constant 0 : index
    %52 = vector.load %arg7[%c0_28, %c0_29] : memref<4x32xf32, #tpu.memory_space<vmem>>, vector<4x32xf32>
    %53 = vector.shape_cast %47 : vector<8x16x4xf32> to vector<128x4xf32>
    %cst_30 = arith.constant dense<0.000000e+00> : vector<128x32xf32>
    %54 = tpu.matmul %53, %52, %cst_30 {dimension_numbers = #tpu.dot_dimension_numbers<[1], [0], [0], [1], [0, 0, 1, 1], [], []>} : vector<128x4xf32>, vector<4x32xf32>, vector<128x32xf32> -> vector<128x32xf32>
    %55 = vector.shape_cast %54 : vector<128x32xf32> to vector<8x16x32xf32>
    %cst_31 = arith.constant dense<0.000000e+00> : vector<8x32xf32>
    %56 = tpu.matmul %49, %52, %cst_31 {dimension_numbers = #tpu.dot_dimension_numbers<[1], [0], [0], [1], [0, 0, 1, 1], [], []>} : vector<8x4xf32>, vector<4x32xf32>, vector<8x32xf32> -> vector<8x32xf32>
    %cst_32 = arith.constant 1.000000e+00 : f32
    %57 = vector.broadcast %cst_32 : f32 to vector<8x4xf32>
    %58 = arith.divf %57, %51 : vector<8x4xf32>
    %cst_33 = arith.constant dense<0.000000e+00> : vector<8x32xf32>
    %59 = tpu.matmul %58, %52, %cst_33 {dimension_numbers = #tpu.dot_dimension_numbers<[1], [0], [0], [1], [0, 0, 1, 1], [], []>} : vector<8x4xf32>, vector<4x32xf32>, vector<8x32xf32> -> vector<8x32xf32>
    %60 = arith.mulf %56, %19 : vector<8x32xf32>
    %61 = arith.mulf %55, %31 : vector<8x16x32xf32>
    %cst_34 = arith.constant dense<0.000000e+00> : vector<8x32xf32>
    %62 = vector.multi_reduction <add>, %61, %cst_34 [1] : vector<8x16x32xf32> to vector<8x32xf32>
    %63 = arith.addf %60, %62 : vector<8x32xf32>
    %64 = arith.mulf %63, %59 : vector<8x32xf32>
    %c0_35 = arith.constant 0 : index
    %c0_36 = arith.constant 0 : index
    %65 = vector.load %arg8[%c0_35, %c0_36] : memref<32x128xf32, #tpu.memory_space<vmem>>, vector<32x128xf32>
    %cst_37 = arith.constant dense<0.000000e+00> : vector<8x128xf32>
    %66 = tpu.matmul %64, %65, %cst_37 {dimension_numbers = #tpu.dot_dimension_numbers<[1], [0], [0], [1], [0, 0, 1, 1], [], []>} : vector<8x32xf32>, vector<32x128xf32>, vector<8x128xf32> -> vector<8x128xf32>
    %c0_38 = arith.constant 0 : index
    %c0_39 = arith.constant 0 : index
    %67 = vector.load %arg9[%c0_38, %c0_39] : memref<1x128xf32, #tpu.memory_space<vmem>>, vector<1x128xf32>
    %68 = vector.broadcast %67 : vector<1x128xf32> to vector<8x128xf32>
    %69 = arith.addf %66, %68 : vector<8x128xf32>
    %c0_40 = arith.constant 0 : index
    %c0_41 = arith.constant 0 : index
    %70 = vector.load %arg10[%c0_40, %c0_41] : memref<8x128xf32, #tpu.memory_space<vmem>>, vector<8x128xf32>
    tpu.vector_store %arg10[%c0_40, %c0_41], %69 {strides = array<i32>} : memref<8x128xf32, #tpu.memory_space<vmem>>, vector<8x128xf32>,
    return
  }
  func.func @transform_0(%arg0: i32) -> (i32, i32, i32) {
    %c0_i32 = arith.constant 0 : i32
    %c0_i32_0 = arith.constant 0 : i32
    %c0_i32_1 = arith.constant 0 : i32
    return %arg0, %c0_i32, %c0_i32_0 : i32, i32, i32
  }
  func.func @transform_1(%arg0: i32) -> (i32, i32) {
    %c0_i32 = arith.constant 0 : i32
    %c0_i32_0 = arith.constant 0 : i32
    %c0_i32_1 = arith.constant 0 : i32
    return %c0_i32, %c0_i32_0 : i32, i32
  }
  func.func @transform_2(%arg0: i32) -> (i32, i32) {
    %c0_i32 = arith.constant 0 : i32
    %c0_i32_0 = arith.constant 0 : i32
    %c0_i32_1 = arith.constant 0 : i32
    return %c0_i32, %c0_i32_0 : i32, i32
  }
  func.func @transform_3(%arg0: i32) -> (i32, i32) {
    %c0_i32 = arith.constant 0 : i32
    %c0_i32_0 = arith.constant 0 : i32
    %c0_i32_1 = arith.constant 0 : i32
    return %c0_i32, %c0_i32_0 : i32, i32
  }
  func.func @transform_4(%arg0: i32) -> (i32, i32) {
    %c0_i32 = arith.constant 0 : i32
    %c0_i32_0 = arith.constant 0 : i32
    %c0_i32_1 = arith.constant 0 : i32
    return %c0_i32, %c0_i32_0 : i32, i32
  }
  func.func @transform_5(%arg0: i32) -> (i32, i32) {
    %c0_i32 = arith.constant 0 : i32
    %c0_i32_0 = arith.constant 0 : i32
    %c0_i32_1 = arith.constant 0 : i32
    return %c0_i32, %c0_i32_0 : i32, i32
  }
  func.func @transform_6(%arg0: i32) -> (i32, i32) {
    %c0_i32 = arith.constant 0 : i32
    %c0_i32_0 = arith.constant 0 : i32
    %c0_i32_1 = arith.constant 0 : i32
    return %c0_i32, %c0_i32_0 : i32, i32
  }
  func.func @transform_7(%arg0: i32) -> (i32, i32) {
    %c0_i32 = arith.constant 0 : i32
    %c0_i32_0 = arith.constant 0 : i32
    %c0_i32_1 = arith.constant 0 : i32
    return %c0_i32, %c0_i32_0 : i32, i32
  }
  func.func @transform_8(%arg0: i32) -> (i32, i32) {
    %c0_i32 = arith.constant 0 : i32
    %c0_i32_0 = arith.constant 0 : i32
    %c0_i32_1 = arith.constant 0 : i32
    return %c0_i32, %c0_i32_0 : i32, i32
  }
  func.func @transform_9(%arg0: i32) -> (i32, i32) {
    %c0_i32 = arith.constant 0 : i32
    %c0_i32_0 = arith.constant 0 : i32
    return %arg0, %c0_i32 : i32, i32
  }
}

</mosaic_0001>

<bundles_post_ra>
// kernel: tpu_custom_call.1
= control target key start
LH: loop header
LB: loop body
LE: loop exit
PB: predicated region body
PF: predicated region fallthrough
CT: control target
= control target key end

     0   :  { %14 = vsyncpa [#allocation3], 0  ;;  %s3823_s0 = inlined_call_operand.hbm [shape: f32[16,16,32], index: 0, kind: input, shape index: {}]   ;;  %s3824_s1 = inlined_call_operand.vmem [shape: f32[1,32], index: 1, kind: input, shape index: {}]   ;;  %s3825_s2 = inlined_call_operand.hbm [shape: f32[16,32], index: 2, kind: input, shape index: {}]   ;;  %s3826_s3 = inlined_call_operand.vmem [shape: f32[32,96], index: 3, kind: input, shape index: {}]   ;;  %s3827_s4 = inlined_call_operand.vmem [shape: f32[1,96], index: 4, kind: input, shape index: {}]   ;;  %s3828_s5 = inlined_call_operand.vmem [shape: f32[32,4], index: 5, kind: input, shape index: {}]   ;;  %s3829_s6 = inlined_call_operand.vmem [shape: f32[4,32], index: 6, kind: input, shape index: {}]   ;;  %s3830_s7 = inlined_call_operand.hbm [shape: f32[32,128], index: 7, kind: input, shape index: {}]   ;;  %s3831_s8 = inlined_call_operand.vmem [shape: f32[1,128], index: 8, kind: input, shape index: {}]   ;;  %s3832_s9 = inlined_call_operand.hbm [shape: f32[16,128], index: 9, kind: output, shape index: {}]  }
   0x1   :  { %16 = vsyncpa [#allocation3 + $0x1], 0 }
   0x2   :  { %17 = vsyncpa [#allocation6], 0 }
   0x3   :  { %18 = vsyncpa [#allocation4], 0 }
   0x4   :  { %20 = vsyncpa [#allocation4 + $0x1], 0  ;;  %s3062_s30 = smov 0   ;;  %s3064_s10 = smov 0  }
   0x5   :  { %s3066_s11 = smov 0   ;;  %s3068_s12 = smov 0  }
   0x6 LB: > { %s3083_s13 = sadd.s32 4294967295, %s2998_s12   ;;  %s2313_s14 = sadd.s32 4294967294, %s2998_s12   ;;  %s2998_s12 = sphi %s3068_s12, %s3859_s12   ;;  %s2994_s11 = sphi %s3066_s11, %s3858_s11   ;;  %s2990_s10 = sphi %s3064_s10, %s3857_s10   ;;  %s2986_s30 = sphi %s3062_s30, %s3856_s30  }
   0x7   : > { %p46_p0 = scmp.ne.s32.totalorder %s2990_s10, %s2986_s30  ;;  %p3833_p1 = scmp.eq.s32.totalorder %s3083_s13, 0 }
   0x8   : > { %p244_p3 = scmp.eq.s32.totalorder %s2313_s14, 1  ;;  %p2314_p5 = scmp.ge.s32.totalorder %s2998_s12, 1 }
   0x9   : > { %p3092_p4 = por %p3833_p1, %p46_p0  ;;  %p251_p7 = scmp.lt.s32.totalorder %s2998_s12, 3 }
   0xa   : > { %p3097_p6 = por %p244_p3, %p46_p0  ;;  %s3000_s18 = smov [#allocation5]  }
   0xb   : > { %s3839_s15 = scalar_select %p3092_p4, 1, 0 }
   0xc   : > { %s3840_s16 = scalar_select %p3097_p6, 1, 0 }
   0xd   : > { %p3102_p8 = pnand %p2314_p5, %p251_p7  ;;  %s266_s19 = sshll.u32 %s3000_s18, 4  ;;  %s3106_s19 = int_to_ptr.vmem [resolvable:$true] %s266_s19 }
   0xe   : > { %3841 = sst [smem:[#allocation12_spill]] %s3840_s16  ;;  %s3001_s21 = smov [#allocation7]  }
   0xf   : > { %p2723_p9 = pneg %p3102_p8  ;;  %s291_s22 = sshll.u32 %s3001_s21, 4  ;;  %s3117_s22 = int_to_ptr.vmem [resolvable:$true] %s291_s22 }
  0x10   : > { %s2842_s25 = scalar_lea.hbm %s3825_s2, 256 }
  0x11   : > { %p3113_p11 = pnand %p2723_p9, %p3833_p1  ;;  %p2843_p12 = scmp.ne.s32.totalorder %s3825_s2, %s2842_s25 }
  0x12   : > { %p2849_p5 = scmp.lt.u32.totalorder %s2842_s25, %s3825_s2 }
  0x13   : > { %p2844_p13 = pneg %p3113_p11 }
  0x15   : > { %p2845_p0 = pnand %p2844_p13, %p2843_p12 }
  0x17   : > { %p2846_p3 = pneg %p2845_p0 }
  0x19   : > { %p2851_p7 = pnand %p2849_p5, %p2846_p3 }
  0x1b   : > { %2854 = shalt.err (!%p2851_p7)
}
  0x1c   : > { %s2855_s14 = scalar_lea.vmem %s3106_s19, 256  ;;  %p2863_p2 = scmp.lt.s32.totalorder %s3106_s19, %s3106_s19 }
  0x1d   : > { %p2856_p9 = scmp.ne.s32.totalorder %s3106_s19, %s2855_s14  ;;  %p2864_p12 = scmp.lt.s32.totalorder %s2855_s14, %s2855_s14 }
  0x1f   : > { %p2858_p10 = pnand %p2856_p9, %p2844_p13  ;;  %p2865_p0 = por %p2864_p12, %p2863_p2 }
  0x21   : > { %p2859_p1 = pneg %p2858_p10 }
  0x23   : > { %p2866_p6 = pnand %p2865_p0, %p2859_p1 }
  0x25   : > { %2869 = shalt.err (!%p2866_p6)
}
  0x26   : > { %s3835_s18 = smov 128   ;;  %s3836_s21 = smov 8  }
  0x27   : > { %2726 = dma.hbm_to_vmem [thread:$0]  (!%p3113_p11), %s3825_s2, 256, %s3106_s19, [#allocation6], %s3835_s18, %s3835_s18, %s3836_s21  }
  0x28   : > { %s2870_s27 = scalar_lea.hbm %s3830_s7, 512 }
  0x29   : > { %p2871_p1 = scmp.ne.s32.totalorder %s3830_s7, %s2870_s27  ;;  %p2877_p10 = scmp.lt.u32.totalorder %s2870_s27, %s3830_s7 }
  0x2b   : > { %p2873_p2 = pnand %p2871_p1, %p2844_p13 }
  0x2d   : > { %p2874_p6 = pneg %p2873_p2 }
  0x2f   : > { %p2879_p3 = pnand %p2877_p10, %p2874_p6 }
  0x31   : > { %2882 = shalt.err (!%p2879_p3)
}
  0x32   : > { %s2883_s19 = scalar_lea.vmem %s3117_s22, 512  ;;  %p2891_p12 = scmp.lt.s32.totalorder %s3117_s22, %s3117_s22 }
  0x33   : > { %p2884_p5 = scmp.ne.s32.totalorder %s3117_s22, %s2883_s19  ;;  %p2892_p0 = scmp.lt.s32.totalorder %s2883_s19, %s2883_s19 }
  0x35   : > { %p2886_p7 = pnand %p2884_p5, %p2844_p13  ;;  %p2893_p1 = por %p2892_p0, %p2891_p12 }
  0x37   : > { %p2887_p9 = pneg %p2886_p7 }
  0x39   : > { %p2894_p2 = pnand %p2893_p1, %p2887_p9 }
  0x3b   : > { %2897 = shalt.err (!%p2894_p2)
}
  0x3c   : > { %2729 = dma.hbm_to_vmem [thread:$0]  (!%p3113_p11), %s3830_s7, 512, %s3117_s22, [#allocation6], %s3835_s18, %s3835_s18, %s3836_s21  }
  0x3d   : > { %s3178_s20 = sadd.s32 1, %s2998_s12   ;;  %s33_s24 = sadd.s32 1, %s2994_s11 }
  0x3e   : > { %s30_s25 = ssub.s32 %s2998_s12, %s3178_s20  ;;  %p40_p13 = scmp.ne.s32.totalorder %s2994_s11, %s2990_s10 }
  0x3f   : > { %p31_p6 = scmp.eq.s32.totalorder %s30_s25, 0  ;;  %p41_p10 = scmp.eq.s32.totalorder %s2998_s12, 0 }
  0x40   : > { %p3844_p3 = scmp.eq.s32.totalorder %s3083_s13, 1  ;;  %p2740_p7 = scmp.lt.s32.totalorder %s2998_s12, 2 }
  0x41   : > { %s3194_s27 = scalar_select %p31_p6, %s2994_s11, %s33_s24  }
  0x42   : > { %p3188_p5 = por %p3844_p3, %p40_p13  ;;  %p42_p9 = por %p41_p10, %p40_p13 }
  0x43   : > { %s308_s28 = sand.u32 1, %s2994_s11   ;;  %s2407_s22 = sshll.u32 %s2998_s12, 11 }
  0x44   : > { %s3845_s26 = scalar_select %p3188_p5, 1, 0 }
  0x45   : > { %s2318_s29 = sshll.u32 %s308_s28, 7  ;;  %s3201_s16 = scalar_lea.hbm %s3823_s0, %s2407_s22 }
  0x46   : > { %s312_s23 = scalar_lea.vmem [#allocation2], %s2318_s29  ;;  %p3205_p11 = pnand %p2740_p7, %p42_p9 }
  0x47   : > { %s320_s25 = sshll.u32 %s312_s23, 4  ;;  %s3209_s18 = scalar_lea.sflag [#allocation3], %s308_s28  ;;  %s3203_s25 = int_to_ptr.vmem [resolvable:$true] %s320_s25 }
  0x48   : > { %s2898_s21 = scalar_lea.hbm %s3201_s16, 2048  ;;  %p2900_p0 = pneg %p3205_p11 }
  0x49   : > { %p2899_p12 = scmp.ne.s32.totalorder %s3201_s16, %s2898_s21  ;;  %s2903_s14 = scalar_lea.hbm %s3823_s0, 4096 }
  0x4a   : > { %p2904_p13 = scmp.lt.u32.totalorder %s3201_s16, %s3823_s0  ;;  %p2905_p6 = scmp.lt.u32.totalorder %s2903_s14, %s2898_s21 }
  0x4b   : > { %p2901_p1 = pnand %p2900_p0, %p2899_p12  ;;  %p2907_p3 = scmp.lt.u32.totalorder %s2898_s21, %s3201_s16 }
  0x4c   : > { %p2906_p10 = por %p2905_p6, %p2904_p13 }
  0x4d   : > { %p2902_p2 = pneg %p2901_p1 }
  0x4e   : > { %p2908_p7 = por %p2907_p3, %p2906_p10 }
  0x50   : > { %p2909_p9 = pnand %p2908_p7, %p2902_p2 }
  0x52   : > { %2912 = shalt.err (!%p2909_p9)
}
  0x53   : > { %s2913_s28 = scalar_lea.vmem %s3203_s25, 2048  ;;  %s3004_s29 = smov [#allocation2]  }
  0x54   : > { %p2914_p12 = scmp.ne.s32.totalorder %s3203_s25, %s2913_s28  ;;  %s2918_s22 = sshll.u32 %s3004_s29, 4  ;;  %s2919_s22 = int_to_ptr.vmem [resolvable:$false] %s2918_s22 }
  0x55   : > { %s2920_s19 = scalar_lea.vmem %s2919_s22, 4096  ;;  %p2921_p4 = scmp.lt.s32.totalorder %s3203_s25, %s2919_s22 }
  0x56   : > { %p2916_p1 = pnand %p2914_p12, %p2900_p0  ;;  %p2922_p13 = scmp.lt.s32.totalorder %s2920_s19, %s2913_s28 }
  0x58   : > { %p2917_p5 = pneg %p2916_p1  ;;  %p2923_p6 = por %p2922_p13, %p2921_p4 }
  0x5a   : > { %p2924_p10 = pnand %p2923_p6, %p2917_p5 }
  0x5c   : > { %2927 = shalt.err (!%p2924_p10)
}
  0x5d   : > { %s3847_s21 = smov 8   ;;  %s3848_s14 = smov 128  }
  0x5e   : > { %2733 = dma.hbm_to_vmem [thread:$0]  (!%p3205_p11), %s3201_s16, 2048, %s3203_s25, %s3209_s18, %s3848_s14, %s3848_s14, %s3847_s21  }
  0x5f   : > { %332 = sbr.rel (%p3102_p8) target bundleno = 1214 (0x4be), region = 56  ;;  %s3243_s23 = sand.u32 (!%p3102_p8), 1, %s2990_s10  }
  0x60   : > { %s2323_s28 = sshll.u32 (!%p3102_p8), %s3243_s23, 7  ;;  %s335_s29 = scalar_lea.sflag (!%p3102_p8), [#allocation3], %s3243_s23 }
  0x61   : > { %s3247_s22 = scalar_lea.vmem (!%p3102_p8), [#allocation2], %s2323_s28  ;;  %p3849_p4 = scmp.ne.s32.totalorder (!%p3102_p8), %s3839_s15, 0 }
  0x66   : > { %2973 = dma.done.wait (%p3849_p4), %s335_s29, 2048  }
  0x67   : > { %2975 = vsyncadd (%p3849_p4), %s335_s29, 4294965248  ;;  %p3850_p5 = scmp.eq.s32.totalorder %s3083_s13, 0 }
  0x69   : > { %2977 = dma.done.wait (%p3850_p5), [#allocation6], 768   ;;  %p3851_p8 = pmov %p3850_p5 }
  0x6a   : > { %v3005_v0 = vmov 0.0|0.0   ;;  %vm3006_vm0 = vmmov 0   ;;  %v3007_v1 = vmov 0.0   ;;  %v513_v2 = vld [vmem:[%s3826_s3] sm:$0xff]  ;;  %v514_v3 = vld [vmem:[%s3826_s3 + $0x8] sm:$0xff]  ;;  %v515_v4 = vld [vmem:[%s3826_s3 + $0x10] sm:$0xff] }
  0x6b   : > { %2979 = vsyncadd (%p3851_p8), [#allocation6], 4294966528  ;;  %2669 = vmatprep.subr.bf16.mxu0 %v3005_v0  ;;  %2512 = vmatprep.mubr.msk.f32.mxu0 %vm3006_vm0, %v3007_v1  ;;  %v3269_v5 = vpack.i.bf16 %v514_v3, %v513_v2  ;;  %v516_v6 = vld [vmem:[%s3826_s3 + $0x18] sm:$0xff]  ;;  %v2670_v7 = vpack.c.bf16 %v514_v3, %v513_v2  ;;  %v382_v8 = vld [vmem:[%s3247_s22] sm:$0xff]  ;;  %s3008_s14 = smov 96   ;;  %vm416_vm1 = vcmask 261120  }
  0x6c   : > { %v3277_v9 = vpack.i.bf16 %v516_v6, %v515_v4  ;;  %v2673_v10 = vpack.c.bf16 %v516_v6, %v515_v4  ;;  %v383_v11 = vld [vmem:[%s3247_s22 + $0x8] sm:$0xff]  ;;  %v384_v12 = vld [vmem:[%s3247_s22 + $0x10] sm:$0xff]  ;;  %v385_v13 = vld [vmem:[%s3247_s22 + $0x18] sm:$0xff]  ;;  %vm533_vm2 = vcmask 1041409   ;;  %vm536_vm3 = vcmask 1042434   ;;  %s3009_s29 = smov 64  }
  0x6d   : > { %2787 = vrot.lane.b32.xlu0 %v3269_v5, %s3008_s14  ;;  %2671 = vmatpush3.bf16.msra.mxu0 %v2670_v7  ;;  %v386_v14 = vld [vmem:[%s3247_s22 + $0x20] sm:$0xff]  ;;  %v387_v15 = vld [vmem:[%s3247_s22 + $0x28] sm:$0xff]  ;;  %v388_v16 = vld [vmem:[%s3247_s22 + $0x30] sm:$0xff]  ;;  %vm539_vm4 = vcmask 1043459   ;;  %vm542_vm5 = vcmask 1044484   ;;  %vm545_vm6 = vcmask 1045509  }
  0x6e   : > { %2672 = vmatprep.subr.bf16.mxu0 %v3005_v0  ;;  %v389_v17 = vld [vmem:[%s3247_s22 + $0x38] sm:$0xff]  ;;  %v390_v18 = vld [vmem:[%s3247_s22 + $0x40] sm:$0xff]  ;;  %v391_v19 = vld [vmem:[%s3247_s22 + $0x48] sm:$0xff]  ;;  %vm548_vm7 = vcmask 1046534   ;;  %vm551_vm8 = vcmask 1047559   ;;  %vm1718_vm9 = vcmask 1043456  }
  0x6f   : > { %v392_v20 = vld [vmem:[%s3247_s22 + $0x50] sm:$0xff]  ;;  %v393_v21 = vld [vmem:[%s3247_s22 + $0x58] sm:$0xff]  ;;  %v394_v22 = vld [vmem:[%s3247_s22 + $0x60] sm:$0xff]  ;;  %vm1377_vm10 = vcmask 31744   ;;  %s2326_s15 = sshll.u32 %s3243_s23, 3  ;;  %s2403_s16 = sshll.u32 %s3083_s13, 7 }
  0x70   : > { %v398_v23 = vld [vmem:[#allocation5] sm:$0xff]  ;;  %v395_v24 = vld [vmem:[%s3247_s22 + $0x68] sm:$0xff]  ;;  %v396_v25 = vld [vmem:[%s3247_s22 + $0x70] sm:$0xff]  ;;  %s380_s25 = scalar_lea.vmem [#allocation8], %s2326_s15  ;;  %s3779_s28 = scalar_lea.hbm %s3832_s9, %s2403_s16 }
  0x71   : > { %2792 = vrot.lane.b32.xlu0 %v3277_v9, %s3008_s14  ;;  %2674 = vmatpush3.bf16.msra.mxu0 %v2673_v10  ;;  %v399_v26 = vld [vmem:[#allocation5 + $0x8] sm:$0xff]  ;;  %v3296_v27 = vadd.f32 %v398_v23, %v382_v8  ;;  %v3298_v28 = vadd.f32 %v398_v23, %v384_v12  ;;  %v3300_v29 = vadd.f32 %v398_v23, %v386_v14  ;;  %v397_v30 = vld [vmem:[%s3247_s22 + $0x78] sm:$0xff]  ;;  %s2224_s24 = sshll.u32 %s380_s25, 4  ;;  %p3852_p0 = scmp.ne.s32.totalorder %s3845_s26, 0  ;;  %s3781_s24 = int_to_ptr.vmem [resolvable:$true] %s2224_s24 }
  0x72   : > { %v3303_v31 = vadd.f32 %v399_v26, %v383_v11  ;;  %v3305_v32 = vadd.f32 %v399_v26, %v385_v13  ;;  %v3307_v33 = vadd.f32 %v399_v26, %v387_v15  ;;  %v3309_v34 = vadd.f32 %v398_v23, %v388_v16  ;;  %s3011_s13 = smov [#allocation8]  }
  0x73   : > { %v3311_v35 = vadd.f32 %v399_v26, %v389_v17  ;;  %v3313_v36 = vadd.f32 %v398_v23, %v390_v18  ;;  %v3315_v37 = vadd.f32 %v399_v26, %v391_v19  ;;  %v3317_v38 = vadd.f32 %v398_v23, %v392_v20  ;;  %2523 = vmatprep.mubr.msk.f32.mxu1 %vm416_vm1, %v3296_v27  ;;  %s2932_s22 = sshll.u32 %s3011_s13, 4  ;;  %s2933_s22 = int_to_ptr.vmem [resolvable:$false] %s2932_s22 }
  0x74   : > { %v3321_v39 = vadd.f32 %v399_v26, %v393_v21  ;;  %v3323_v40 = vadd.f32 %v398_v23, %v394_v22  ;;  %v3325_v41 = vadd.f32 %v399_v26, %v395_v24  ;;  %v3327_v42 = vadd.f32 %v398_v23, %v396_v25  ;;  %s2934_s15 = scalar_lea.vmem %s2933_s22, 256  ;;  %p2935_p7 = scmp.lt.s32.totalorder %s3781_s24, %s2933_s22 }
  0x75   : > { %v3329_v43 = vadd.f32 %v399_v26, %v397_v30  ;;  %v417_v44 = vsel %vm416_vm1, %v3296_v27, 0.0  ;;  %v418_v45 = vsel %vm416_vm1, %v3303_v31, 0.0  ;;  %v426_v46 = vsel %vm416_vm1, %v3298_v28, 0.0  ;;  %2797 = vrot.lane.b32.xlu0 %v3269_v5, %s3009_s29 }
  0x76   : > { %v419_v47 = vadd.f32 %v418_v45, %v417_v44  ;;  %v427_v48 = vsel %vm416_vm1, %v3305_v32, 0.0  ;;  %v435_v49 = vsel %vm416_vm1, %v3300_v29, 0.0  ;;  %v436_v50 = vsel %vm416_vm1, %v3307_v33, 0.0 }
  0x77   : > { %v428_v51 = vadd.f32 %v427_v48, %v426_v46  ;;  %v437_v52 = vadd.f32 %v436_v50, %v435_v49  ;;  %v444_v53 = vsel %vm416_vm1, %v3309_v34, 0.0  ;;  %v445_v54 = vsel %vm416_vm1, %v3311_v35, 0.0 }
  0x78   : > { %v420_v55 = vrot.slane %v419_v47, 4  ;;  %v446_v56 = vadd.f32 %v445_v54, %v444_v53  ;;  %v453_v57 = vsel %vm416_vm1, %v3313_v36, 0.0  ;;  %v454_v58 = vsel %vm416_vm1, %v3315_v37, 0.0 }
  0x79   : > { %v429_v59 = vrot.slane %v428_v51, 4  ;;  %v438_v60 = vrot.slane %v437_v52, 4  ;;  %v455_v61 = vadd.f32 %v454_v58, %v453_v57  ;;  %v462_v62 = vsel %vm416_vm1, %v3317_v38, 0.0 }
  0x7a   : > { %v421_v63 = vadd.f32 %v420_v55, %v419_v47  ;;  %v447_v2 = vrot.slane %v446_v56, 4  ;;  %v463_v3 = vsel %vm416_vm1, %v3321_v39, 0.0  ;;  %v471_v4 = vsel %vm416_vm1, %v3323_v40, 0.0 }
  0x7b   : > { %v430_v6 = vadd.f32 %v429_v59, %v428_v51  ;;  %v439_v7 = vadd.f32 %v438_v60, %v437_v52  ;;  %v456_v8 = vrot.slane %v455_v61, 4  ;;  %v464_v10 = vadd.f32 %v463_v3, %v462_v62 }
  0x7c   : > { %v422_v11 = vrot.slane %v421_v63, 2  ;;  %v448_v12 = vadd.f32 %v447_v2, %v446_v56  ;;  %v472_v13 = vsel %vm416_vm1, %v3325_v41, 0.0  ;;  %v480_v14 = vsel %vm416_vm1, %v3327_v42, 0.0 }
  0x7d   : > { %v431_v15 = vrot.slane %v430_v6, 2  ;;  %v440_v16 = vrot.slane %v439_v7, 2  ;;  %v457_v17 = vadd.f32 %v456_v8, %v455_v61  ;;  %v465_v18 = vrot.slane %v464_v10, 4 }
  0x7e   : > { %v423_v19 = vadd.f32 %v422_v11, %v421_v63  ;;  %v449_v20 = vrot.slane %v448_v12, 2  ;;  %v473_v21 = vadd.f32 %v472_v13, %v471_v4  ;;  %v481_v22 = vsel %vm416_vm1, %v3329_v43, 0.0  ;;  %v2327_v63 = vld [vmem:[%s3824_s1] ss:$0 sm:$0xff] }
  0x7f   : > { %v432_v23 = vadd.f32 %v431_v15, %v430_v6  ;;  %v441_v24 = vadd.f32 %v440_v16, %v439_v7  ;;  %v458_v25 = vrot.slane %v457_v17, 2  ;;  %v466_v26 = vadd.f32 %v465_v18, %v464_v10 }
  0x80   : > { %v424_v30 = vrot.slane %v423_v19, 1  ;;  %v450_v44 = vadd.f32 %v449_v20, %v448_v12  ;;  %v474_v45 = vrot.slane %v473_v21, 4  ;;  %v482_v46 = vadd.f32 %v481_v22, %v480_v14 }
  0x81   : > { %v433_v47 = vrot.slane %v432_v23, 1  ;;  %v442_v48 = vrot.slane %v441_v24, 1  ;;  %v459_v49 = vadd.f32 %v458_v25, %v457_v17  ;;  %v467_v50 = vrot.slane %v466_v26, 2 }
  0x82   : > { %v425_v51 = vadd.f32 %v424_v30, %v423_v19  ;;  %v451_v52 = vrot.slane %v450_v44, 1  ;;  %v475_v53 = vadd.f32 %v474_v45, %v473_v21  ;;  %v483_v54 = vrot.slane %v482_v46, 4  ;;  %v3369_v19 = vld [vmem:[%s3827_s4] ss:$0 sm:$0xff] }
  0x83   : > { %v434_v55 = vadd.f32 %v433_v47, %v432_v23  ;;  %v443_v56 = vadd.f32 %v442_v48, %v441_v24  ;;  %v460_v57 = vrot.slane %v459_v49, 1  ;;  %v468_v58 = vadd.f32 %v467_v50, %v466_v26  ;;  %641 = vrot.lane.b32.xlu1 %v3369_v19, %s3008_s14  ;;  %849 = vrot.lane.b32.xlu0 %v3369_v19, %s3009_s29 }
  0x84   : > { %v452_v59 = vadd.f32 %v451_v52, %v450_v44  ;;  %v476_v60 = vrot.slane %v475_v53, 2  ;;  %v484_v61 = vadd.f32 %v483_v54, %v482_v46  ;;  %v490_v62 = vmul.f32 0.0625, %v425_v51 }
  0x85   : > { %v461_v2 = vadd.f32 %v460_v57, %v459_v49  ;;  %v469_v3 = vrot.slane %v468_v58, 1  ;;  %v491_v4 = vmul.f32 0.0625, %v434_v55  ;;  %v492_v6 = vmul.f32 0.0625, %v443_v56 }
  0x86   : > { %v477_v7 = vadd.f32 %v476_v60, %v475_v53  ;;  %v485_v8 = vrot.slane %v484_v61, 2  ;;  %v493_v10 = vmul.f32 0.0625, %v452_v59  ;;  %v505_v11 = vadd.f32 %v2327_v63, %v490_v62 }
  0x87   : > { %v470_v12 = vadd.f32 %v469_v3, %v468_v58  ;;  %v494_v13 = vmul.f32 0.0625, %v461_v2  ;;  %v506_v14 = vadd.f32 %v2327_v63, %v491_v4  ;;  %v507_v15 = vadd.f32 %v2327_v63, %v492_v6 }
  0x88   : > { %v478_v16 = vrot.slane %v477_v7, 1  ;;  %v486_v17 = vadd.f32 %v485_v8, %v484_v61  ;;  %v508_v18 = vadd.f32 %v2327_v63, %v493_v10  ;;  %v1105_v8 = vld [vmem:[%s3828_s5 + $0x10] sm:$0xff] }
  0x89   : > { %v495_v20 = vmul.f32 0.0625, %v470_v12  ;;  %v509_v21 = vadd.f32 %v2327_v63, %v494_v13  ;;  %v532_v22 = vrot.slane %v506_v14, 7  ;;  %v535_v23 = vrot.slane %v507_v15, 6 }
  0x8a   : > { %v479_v24 = vadd.f32 %v478_v16, %v477_v7  ;;  %v487_v25 = vrot.slane %v486_v17, 1  ;;  %v538_v26 = vrot.slane %v508_v18, 5  ;;  %v1104_v7 = vld [vmem:[%s3828_s5 + $0x8] sm:$0xff]  ;;  %v3010_v16 = vmov 1966171168  }
  0x8b   : > { %v510_v30 = vadd.f32 %v2327_v63, %v495_v20  ;;  %v534_v44 = vsel %vm533_vm2, %v532_v22, %v505_v11  ;;  %v541_v45 = vrot.slane %v509_v21, 4  ;;  %v1106_v11 = vld [vmem:[%s3828_s5 + $0x18] sm:$0xff]  ;;  %v1002_v18 = vlaneseq }
  0x8c   : > { %v488_v46 = vadd.f32 %v487_v25, %v486_v17  ;;  %v496_v47 = vmul.f32 0.0625, %v479_v24  ;;  %v537_v48 = vsel %vm536_vm3, %v535_v23, %v534_v44  ;;  %v3407_v12 = vpack.c.bf16 %v1106_v11, %v1105_v8 }
  0x8d   : > { %v540_v49 = vsel %vm539_vm4, %v538_v26, %v537_v48  ;;  %v544_v50 = vrot.slane %v510_v30, 3  ;;  %v1000_v17 = vunpack.c.l.s4 %v3010_v16  ;;  %v1003_v21 = vshrl.u32 %v1002_v18, 7 }
  0x8e   : > { %v497_v51 = vmul.f32 0.0625, %v488_v46  ;;  %v511_v52 = vadd.f32 %v2327_v63, %v496_v47  ;;  %v543_v53 = vsel %vm542_vm5, %v541_v45, %v540_v49 }
  0x8f   : > { %v546_v54 = vsel %vm545_vm6, %v544_v50, %v543_v53  ;;  %v1001_v20 = vunpack.c.0.s8 %v1000_v17  ;;  %v3442_v25 = vsub.s32 0, %v1003_v21 }
  0x90   : > { %v512_v55 = vadd.f32 %v2327_v63, %v497_v51  ;;  %v547_v56 = vrot.slane %v511_v52, 2 }
  0x91   : > { %v1004_v22 = vsub.s32 %v1001_v20, %v1003_v21 }
  0x92   : > { %v549_v57 = vsel %vm548_vm7, %v547_v56, %v546_v54  ;;  %v550_v58 = vrot.slane %v512_v55, 1 }
  0x94   : > { %v552_v59 = vsel %vm551_vm8, %v550_v58, %v549_v57 }
  0x95   : > { %2513 = vmatmul.mubr.msk.f32.vlgmr.msra.gmra.mrb[0].mxu0 %vm416_vm1, %v552_v59 }
  0x96   : > { %2555 = vmatprep.mubr.msk.f32.mxu0 %vm416_vm1, %v3296_v27  ;;  %v1103_v27 = vld [vmem:[%s3828_s5] sm:$0xff] }
  0x97   : > { %v2691_v10 = vpack.c.bf16 %v1104_v7, %v1103_v27 }
  0xdf   : > { %v2788_v60 = vpop.permute.xlu0 %2787 }
  0xe0   : > { %v2790_v61 = vunpack.i.h.bf16 %v2788_v60  ;;  %v2789_v62 = vunpack.i.l.bf16 %v2788_v60 }
  0xe2   : > { %v2675_v2 = vpack.c.bf16 %v2790_v61, %v2789_v62 }
  0xe3   : > { %v2793_v3 = vpop.permute.xlu0 %2792 }
  0xe4   : > { %v2795_v4 = vunpack.i.h.bf16 %v2793_v3  ;;  %v2794_v6 = vunpack.i.l.bf16 %v2793_v3  ;;  %2676 = vmatprep.subr.bf16.mxu1 %v2675_v2 }
  0xe5   : > { %2678 = vmatpush3.bf16.msra.mxu1 %v2675_v2 }
  0xe6   : > { %v2679_v63 = vpack.c.bf16 %v2795_v4, %v2794_v6 }
  0xe8   : > { %2680 = vmatprep.subr.bf16.mxu1 %v2679_v63 }
  0xe9   : > { %2682 = vmatpush3.bf16.msra.mxu1 %v2679_v63 }
  0xea   : > { %2692 = vmatprep.subr.bf16.mxu1 %v2691_v10 }
  0xec   : > { %2524 = vmatmul.mubr.msk.f32.vlgmr.msra.gmra.mrb[0].mxu1 %vm416_vm1, %v3303_v31 }
  0xed   : > { %2526 = vmatprep.mubr.msk.f32.mxu1 %vm416_vm1, %v3298_v28  ;;  %2694 = vmatpush3.bf16.msra.mxu1 %v2691_v10 }
  0xee   : > { %2696 = vmatprep.subr.bf16.mxu1 %v3407_v12 }
  0xf0   : > { %2527 = vmatmul.mubr.msk.f32.gmra.mrb[2].mxu1 %vm416_vm1, %v3305_v32 }
  0xf1   : > { %2529 = vmatprep.mubr.msk.f32.mxu1 %vm416_vm1, %v3300_v29  ;;  %2698 = vmatpush3.bf16.msra.mxu1 %v3407_v12 }
  0xf2   : > { %2699 = vmatprep.subr.bf16.mxu1 %v3005_v0 }
  0xf4   : > { %2530 = vmatmul.mubr.msk.f32.gmra.mrb[4].mxu1 %vm416_vm1, %v3307_v33 }
  0xf5   : > { %2532 = vmatprep.mubr.msk.f32.mxu1 %vm416_vm1, %v3309_v34  ;;  %v3440_v23 = vpop.permute.xlu1 %641 }
  0xf8   : > { %2533 = vmatmul.mubr.msk.f32.gmra.mrb[6].mxu1 %vm416_vm1, %v3311_v35 }
  0xf9   : > { %2535 = vmatprep.mubr.msk.f32.mxu1 %vm416_vm1, %v3313_v36 }
  0xfc   : > { %2536 = vmatmul.mubr.msk.f32.gmra.mrb[8].mxu1 %vm416_vm1, %v3315_v37 }
  0xfd   : > { %2538 = vmatprep.mubr.msk.f32.mxu1 %vm416_vm1, %v3317_v38 }
 0x100   : > { %2539 = vmatmul.mubr.msk.f32.gmra.mrb[10].mxu1 %vm416_vm1, %v3321_v39 }
 0x101   : > { %2541 = vmatprep.mubr.msk.f32.mxu1 %vm416_vm1, %v3323_v40 }
 0x104   : > { %2542 = vmatmul.mubr.msk.f32.gmra.mrb[12].mxu1 %vm416_vm1, %v3325_v41 }
 0x105   : > { %2544 = vmatprep.mubr.msk.f32.mxu1 %vm416_vm1, %v3327_v42 }
 0x108   : > { %2545 = vmatmul.mubr.msk.f32.gmra.mrb[14].mxu1 %vm416_vm1, %v3329_v43 }
 0x168   : > { %v621_v13 = vpop.f32.mrb[0].mxu0 }
 0x169   : > { %v3432_v14 = vadd.f32 %v3369_v19, %v621_v13  ;;  %v2514_v15 = vpop.f32.mrb[1].mxu0 }
 0x16b   : > { %1300 = vrot.lane.b32.xlu1 %v3432_v14, %s3008_s14  ;;  %v1005_v5 = vrot.slane %v3432_v14, %v1004_v22  ;;  %v998_v55 = vcombine.high %v3432_v14, %v3432_v14  ;;  %s2928_s14 = scalar_lea.vmem %s3781_s24, 128 }
 0x16c   : > { %p2929_p11 = scmp.ne.s32.totalorder %s3781_s24, %s2928_s14  ;;  %p2936_p9 = scmp.lt.s32.totalorder %s2934_s15, %s2928_s14 }
 0x16d   : > { %v1021_v24 = vrot.slane %v1005_v5, %v1004_v22  ;;  %v1013_v26 = vcombine.high %v1005_v5, %v1005_v5  ;;  %v1012_v3 = vrot.slane %v998_v55, %v1004_v22 }
 0x16e   : > { %p2930_p2 = pnand %p2929_p11, %p3852_p0  ;;  %p2937_p12 = por %p2936_p9, %p2935_p7 }
 0x16f   : > { %2802 = vrot.lane.b32.xlu1 %v3277_v9, %s3009_s29  ;;  %v1050_v44 = vrot.slane %v1021_v24, %v3442_v25  ;;  %v1035_v46 = vrot.slane %v1013_v26, %v1004_v22  ;;  %v1043_v54 = vcombine.high %v1021_v24, %v1021_v24  ;;  %v1028_v11 = vrot.slane %v1012_v3, %v1004_v22 }
 0x170   : > { %v1014_v13 = vcombine.high %v1012_v3, %v1012_v3  ;;  %p2931_p3 = pneg %p2930_p2 }
 0x171   : > { %v1054_v52 = vrot.slane %v1035_v46, %v3442_v25  ;;  %v1058_v61 = vrot.slane %v1043_v54, %v3442_v25  ;;  %v1045_v2 = vcombine.high %v1035_v46, %v1035_v46  ;;  %v1066_v20 = vrot.slane %v1028_v11, %v3442_v25 }
 0x172   : > { %v1042_v5 = vrot.slane %v1014_v13, %v1004_v22  ;;  %v1044_v46 = vcombine.high %v1028_v11, %v1028_v11  ;;  %p2938_p1 = pnand %p2937_p12, %p2931_p3 }
 0x173   : > { %2015 = vrot.lane.b32.xlu1 %v3432_v14, %s3009_s29  ;;  %v1062_v8 = vrot.slane %v1045_v2, %v3442_v25  ;;  %s2211_s29 = scalar_lea.sflag [#allocation4], %s3243_s23 }
 0x1bf   : > { %v2525_v30 = vpop.f32.mrb[0].mxu1 }
 0x1c0   : > { %v764_v19 = vadd.f32 %v2525_v30, %v3440_v23  ;;  %v758_v9 = vpop.f32.mrb[1].mxu1 }
 0x1c1   : > { %v759_v45 = vadd.f32 %v758_v9, %v3440_v23 }
 0x1c2   : > { %v1088_v49 = vmul.f32 %v1050_v44, %v764_v19 }
 0x1c3   : > { %v1087_v47 = vmul.f32 %v1050_v44, %v759_v45  ;;  %v2528_v48 = vpop.f32.mrb[2].mxu1  ;;  %v1070_v44 = vrot.slane %v1042_v5, %v3442_v25 }
 0x1c4   : > { %v774_v50 = vadd.f32 %v2528_v48, %v3440_v23  ;;  %v768_v51 = vpop.f32.mrb[3].mxu1 }
 0x1c5   : > { %v769_v53 = vadd.f32 %v768_v51, %v3440_v23  ;;  %2587 = vmatprep.mubr.msk.f32.mxu1 %vm416_vm1, %v1087_v47  ;;  %v1074_v51 = vrot.slane %v1044_v46, %v3442_v25 }
 0x1c6   : > { %2588 = vmatmul.mubr.msk.f32.vlgmr.msra.gmra.mrb[16].mxu1 %vm416_vm1, %v1088_v49  ;;  %v1090_v58 = vmul.f32 %v1054_v52, %v774_v50 }
 0x1c7   : > { %v1089_v56 = vmul.f32 %v1054_v52, %v769_v53  ;;  %2701 = vmatpush3.bf16.msra.mxu1 %v2691_v10  ;;  %v2531_v57 = vpop.f32.mrb[4].mxu1  ;;  %v1046_v53 = vcombine.high %v1042_v5, %v1042_v5 }
 0x1c8   : > { %v784_v59 = vadd.f32 %v2531_v57, %v3440_v23  ;;  %v778_v60 = vpop.f32.mrb[5].mxu1  ;;  %2702 = vmatprep.subr.bf16.mxu1 %v3005_v0 }
 0x1c9   : > { %v779_v62 = vadd.f32 %v778_v60, %v3440_v23  ;;  %2590 = vmatprep.mubr.msk.f32.mxu1 %vm416_vm1, %v1089_v56 }
 0x1ca   : > { %2591 = vmatmul.mubr.msk.f32.gmra.mrb[18].mxu1 %vm416_vm1, %v1090_v58  ;;  %v1092_v63 = vmul.f32 %v1058_v61, %v784_v59  ;;  %v1078_v59 = vrot.slane %v1046_v53, %v3442_v25 }
 0x1cb   : > { %v1091_v4 = vmul.f32 %v1058_v61, %v779_v62  ;;  %v2534_v6 = vpop.f32.mrb[6].mxu1  ;;  %2704 = vmatpush3.bf16.msra.mxu1 %v3407_v12 }
 0x1cc   : > { %v794_v27 = vadd.f32 %v2534_v6, %v3440_v23  ;;  %v788_v7 = vpop.f32.mrb[7].mxu1  ;;  %2648 = vmatprep.subr.mxu1 %v3007_v1 }
 0x1cd   : > { %v789_v10 = vadd.f32 %v788_v7, %v3440_v23  ;;  %2593 = vmatprep.mubr.msk.f32.mxu1 %vm416_vm1, %v1091_v4 }
 0x1ce   : > { %2594 = vmatmul.mubr.msk.f32.gmra.mrb[20].mxu1 %vm416_vm1, %v1092_v63  ;;  %v1094_v17 = vmul.f32 %v1062_v8, %v794_v27  ;;  %v2798_v63 = vpop.permute.xlu0 %2797 }
 0x1cf   : > { %v1093_v15 = vmul.f32 %v1062_v8, %v789_v10  ;;  %v2537_v16 = vpop.f32.mrb[8].mxu1  ;;  %v2800_v27 = vunpack.i.h.bf16 %v2798_v63  ;;  %v2799_v7 = vunpack.i.l.bf16 %v2798_v63 }
 0x1d0   : > { %v804_v12 = vadd.f32 %v2537_v16, %v3440_v23  ;;  %v798_v18 = vpop.f32.mrb[9].mxu1 }
 0x1d1   : > { %v799_v21 = vadd.f32 %v798_v18, %v3440_v23  ;;  %2596 = vmatprep.mubr.msk.f32.mxu1 %vm416_vm1, %v1093_v15  ;;  %v2683_v10 = vpack.c.bf16 %v2800_v27, %v2799_v7 }
 0x1d2   : > { %2597 = vmatmul.mubr.msk.f32.gmra.mrb[22].mxu1 %vm416_vm1, %v1094_v17  ;;  %v1096_v30 = vmul.f32 %v1066_v20, %v804_v12 }
 0x1d3   : > { %v1095_v24 = vmul.f32 %v1066_v20, %v799_v21  ;;  %v2540_v26 = vpop.f32.mrb[10].mxu1  ;;  %2684 = vmatprep.subr.bf16.mxu0 %v2683_v10 }
 0x1d4   : > { %v814_v19 = vadd.f32 %v2540_v26, %v3440_v23  ;;  %v808_v9 = vpop.f32.mrb[11].mxu1  ;;  %2686 = vmatpush3.bf16.msra.mxu0 %v2683_v10 }
 0x1d5   : > { %v809_v45 = vadd.f32 %v808_v9, %v3440_v23  ;;  %2599 = vmatprep.mubr.msk.f32.mxu1 %vm416_vm1, %v1095_v24 }
 0x1d6   : > { %2600 = vmatmul.mubr.msk.f32.gmra.mrb[24].mxu1 %vm416_vm1, %v1096_v30  ;;  %v1098_v22 = vmul.f32 %v1070_v44, %v814_v19 }
 0x1d7   : > { %v1097_v47 = vmul.f32 %v1070_v44, %v809_v45  ;;  %v2543_v48 = vpop.f32.mrb[12].mxu1 }
 0x1d8   : > { %v824_v49 = vadd.f32 %v2543_v48, %v3440_v23  ;;  %v818_v50 = vpop.f32.mrb[13].mxu1 }
 0x1d9   : > { %v819_v52 = vadd.f32 %v818_v50, %v3440_v23  ;;  %2602 = vmatprep.mubr.msk.f32.mxu1 %vm416_vm1, %v1097_v47 }
 0x1da   : > { %2603 = vmatmul.mubr.msk.f32.gmra.mrb[26].mxu1 %vm416_vm1, %v1098_v22  ;;  %v1100_v56 = vmul.f32 %v1074_v51, %v824_v49 }
 0x1db   : > { %v1099_v54 = vmul.f32 %v1074_v51, %v819_v52  ;;  %v2546_v55 = vpop.f32.mrb[14].mxu1 }
 0x1dc   : > { %v834_v57 = vadd.f32 %v2546_v55, %v3440_v23  ;;  %v828_v58 = vpop.f32.mrb[15].mxu1 }
 0x1dd   : > { %v829_v60 = vadd.f32 %v828_v58, %v3440_v23  ;;  %2605 = vmatprep.mubr.msk.f32.mxu1 %vm416_vm1, %v1099_v54  ;;  %v1301_v2 = vpop.permute.xlu1 %1300 }
 0x1de   : > { %2606 = vmatmul.mubr.msk.f32.gmra.mrb[28].mxu1 %vm416_vm1, %v1100_v56  ;;  %v1102_v62 = vmul.f32 %v1078_v59, %v834_v57  ;;  %v1303_v3 = vmul.f32 %v1301_v2, %v3432_v14  ;;  %v3498_v14 = vld [vmem:[%s3829_s6] sm:$0xf] }
 0x1df   : > { %v1101_v61 = vmul.f32 %v1078_v59, %v829_v60 }
 0x1e1   : > { %2608 = vmatprep.mubr.msk.f32.mxu1 %vm416_vm1, %v1101_v61  ;;  %v2803_v23 = vpop.permute.xlu1 %2802 }
 0x1e2   : > { %2609 = vmatmul.mubr.msk.f32.gmra.mrb[30].mxu1 %vm416_vm1, %v1102_v62  ;;  %v2805_v4 = vunpack.i.h.bf16 %v2803_v23  ;;  %v2804_v6 = vunpack.i.l.bf16 %v2803_v23 }
 0x1e3   : > { %2619 = vmatprep.mubr.msk.f32.mxu1 %vm3006_vm0, %v3007_v1 }
 0x1e4   : > { %v2687_v8 = vpack.c.bf16 %v2805_v4, %v2804_v6 }
 0x1e6   : > { %2620 = vmatmul.mubr.msk.f32.vlgmr.msra.gmra.mrb[32].mxu1 %vm416_vm1, %v1303_v3  ;;  %2688 = vmatprep.subr.bf16.mxu0 %v2687_v8 }
 0x1e7   : > { %2650 = vmatprep.mubr.msk.f32.mxu1 %vm3006_vm0, %v3007_v1  ;;  %2690 = vmatpush3.bf16.msra.mxu0 %v2687_v8 }
 0x1e8   : > { %2622 = vmatprep.subr.msk.mxu0 %vm1718_vm9, %v3498_v14  ;;  %2649 = vmatpush3.msk.msra.mxu1 %vm1718_vm9, %v3498_v14 }
 0x1e9   : > { %2653 = vmatprep.subr.mxu1 %v3007_v1 }
 0x1ea   : > { %2556 = vmatmul.mubr.msk.f32.vlgmr.msra.gmra.mrb[2].mxu0 %vm416_vm1, %v3303_v31 }
 0x1eb   : > { %2623 = vmatpush3.msk.msra.mxu0 %vm1718_vm9, %v3498_v14  ;;  %2558 = vmatprep.mubr.msk.f32.mxu0 %vm416_vm1, %v3298_v28 }
 0x1ec   : > { %2705 = vmatprep.subr.bf16.mxu0 %v3005_v0 }
 0x1ee   : > { %2559 = vmatmul.mubr.msk.f32.gmra.mrb[4].mxu0 %vm416_vm1, %v3305_v32 }
 0x1ef   : > { %2561 = vmatprep.mubr.msk.f32.mxu0 %vm416_vm1, %v3300_v29 }
 0x1f2   : > { %2562 = vmatmul.mubr.msk.f32.gmra.mrb[6].mxu0 %vm416_vm1, %v3307_v33 }
 0x1f3   : > { %2564 = vmatprep.mubr.msk.f32.mxu0 %vm416_vm1, %v3309_v34 }
 0x1f6   : > { %2565 = vmatmul.mubr.msk.f32.gmra.mrb[8].mxu0 %vm416_vm1, %v3311_v35 }
 0x1f7   : > { %2567 = vmatprep.mubr.msk.f32.mxu0 %vm416_vm1, %v3313_v36 }
 0x1fa   : > { %2568 = vmatmul.mubr.msk.f32.gmra.mrb[10].mxu0 %vm416_vm1, %v3315_v37 }
 0x1fb   : > { %2570 = vmatprep.mubr.msk.f32.mxu0 %vm416_vm1, %v3317_v38 }
 0x1fe   : > { %2571 = vmatmul.mubr.msk.f32.gmra.mrb[12].mxu0 %vm416_vm1, %v3321_v39 }
 0x1ff   : > { %2573 = vmatprep.mubr.msk.f32.mxu0 %vm416_vm1, %v3323_v40 }
 0x202   : > { %2574 = vmatmul.mubr.msk.f32.gmra.mrb[14].mxu0 %vm416_vm1, %v3325_v41 }
 0x203   : > { %2576 = vmatprep.mubr.msk.f32.mxu0 %vm416_vm1, %v3327_v42 }
 0x206   : > { %2577 = vmatmul.mubr.msk.f32.gmra.mrb[16].mxu0 %vm416_vm1, %v3329_v43 }
 0x299   : > { %v3538_v28 = vpop.f32.mrb[16].mxu1 }
 0x29a   : > { %v1379_v29 = vsel %vm1377_vm10, %v3538_v28, -inf  ;;  %v3542_v31 = vpop.f32.mrb[17].mxu1 }
 0x29b   : > { %v1378_v32 = vsel %vm1377_vm10, %v3542_v31, -inf }
 0x29c   : > { %v1380_v33 = vmax.f32 %v1378_v32, %v1379_v29 }
 0x29d   : > { %v3546_v34 = vpop.f32.mrb[18].mxu1 }
 0x29e   : > { %v1388_v35 = vsel %vm1377_vm10, %v3546_v34, -inf  ;;  %v3550_v36 = vpop.f32.mrb[19].mxu1  ;;  %v1381_v43 = vrot.slane %v1380_v33, 4 }
 0x29f   : > { %v1387_v37 = vsel %vm1377_vm10, %v3550_v36, -inf }
 0x2a0   : > { %v1389_v38 = vmax.f32 %v1387_v37, %v1388_v35  ;;  %v1382_v20 = vmax.f32 %v1380_v33, %v1381_v43 }
 0x2a1   : > { %v3554_v39 = vpop.f32.mrb[20].mxu1 }
 0x2a2   : > { %v1397_v40 = vsel %vm1377_vm10, %v3554_v39, -inf  ;;  %v3558_v41 = vpop.f32.mrb[21].mxu1  ;;  %v1390_v13 = vrot.slane %v1389_v38, 4  ;;  %v1383_v45 = vrot.slane %v1382_v20, 2 }
 0x2a3   : > { %v1396_v42 = vsel %vm1377_vm10, %v3558_v41, -inf }
 0x2a4   : > { %v1398_v11 = vmax.f32 %v1396_v42, %v1397_v40  ;;  %v1391_v5 = vmax.f32 %v1389_v38, %v1390_v13  ;;  %v1384_v55 = vmax.f32 %v1382_v20, %v1383_v45 }
 0x2a5   : > { %v3562_v15 = vpop.f32.mrb[22].mxu1 }
 0x2a6   : > { %v1399_v16 = vrot.slane %v1398_v11, 4  ;;  %v1406_v17 = vsel %vm1377_vm10, %v3562_v15, -inf  ;;  %v3566_v12 = vpop.f32.mrb[23].mxu1  ;;  %v1392_v48 = vrot.slane %v1391_v5, 2  ;;  %v1385_v6 = vrot.slane %v1384_v55, 1 }
 0x2a7   : > { %v1405_v18 = vsel %vm1377_vm10, %v3566_v12, -inf }
 0x2a8   : > { %v1407_v21 = vmax.f32 %v1405_v18, %v1406_v17  ;;  %v1400_v24 = vmax.f32 %v1398_v11, %v1399_v16  ;;  %v1393_v58 = vmax.f32 %v1391_v5, %v1392_v48  ;;  %v1386_v43 = vmax.f32 %v1384_v55, %v1385_v6 }
 0x2a9   : > { %v3570_v26 = vpop.f32.mrb[24].mxu1 }
 0x2aa   : > { %v1408_v30 = vrot.slane %v1407_v21, 4  ;;  %v1415_v19 = vsel %vm1377_vm10, %v3570_v26, -inf  ;;  %v3574_v9 = vpop.f32.mrb[25].mxu1  ;;  %v1401_v22 = vrot.slane %v1400_v24, 2  ;;  %v1394_v8 = vrot.slane %v1393_v58, 1 }
 0x2ab   : > { %v1414_v44 = vsel %vm1377_vm10, %v3574_v9, -inf }
 0x2ac   : > { %v1409_v46 = vmax.f32 %v1407_v21, %v1408_v30  ;;  %v1416_v47 = vmax.f32 %v1414_v44, %v1415_v19  ;;  %v1402_v59 = vmax.f32 %v1400_v24, %v1401_v22  ;;  %v1395_v17 = vmax.f32 %v1393_v58, %v1394_v8 }
 0x2ad   : > { %v3578_v49 = vpop.f32.mrb[26].mxu1 }
 0x2ae   : > { %v1410_v50 = vrot.slane %v1409_v46, 2  ;;  %v1417_v51 = vrot.slane %v1416_v47, 4  ;;  %v1424_v52 = vsel %vm1377_vm10, %v3578_v49, -inf  ;;  %v3582_v53 = vpop.f32.mrb[27].mxu1  ;;  %v1403_v10 = vrot.slane %v1402_v59, 1 }
 0x2af   : > { %v1423_v54 = vsel %vm1377_vm10, %v3582_v53, -inf }
 0x2b0   : > { %v1418_v56 = vmax.f32 %v1416_v47, %v1417_v51  ;;  %v1425_v57 = vmax.f32 %v1423_v54, %v1424_v52  ;;  %v1411_v60 = vmax.f32 %v1409_v46, %v1410_v50  ;;  %v1404_v18 = vmax.f32 %v1402_v59, %v1403_v10 }
 0x2b1   : > { %v3586_v61 = vpop.f32.mrb[28].mxu1 }
 0x2b2   : > { %v1419_v62 = vrot.slane %v1418_v56, 2  ;;  %v1426_v2 = vrot.slane %v1425_v57, 4  ;;  %v1433_v3 = vsel %vm1377_vm10, %v3586_v61, -inf  ;;  %v3590_v23 = vpop.f32.mrb[29].mxu1  ;;  %v1412_v29 = vrot.slane %v1411_v60, 1 }
 0x2b3   : > { %v1432_v4 = vsel %vm1377_vm10, %v3590_v23, -inf }
 0x2b4   : > { %v1420_v63 = vmax.f32 %v1418_v56, %v1419_v62  ;;  %v1427_v27 = vmax.f32 %v1425_v57, %v1426_v2  ;;  %v1434_v7 = vmax.f32 %v1432_v4, %v1433_v3  ;;  %v1413_v20 = vmax.f32 %v1411_v60, %v1412_v29 }
 0x2b5   : > { %v3594_v32 = vpop.f32.mrb[30].mxu1 }
 0x2b6   : > { %v1421_v33 = vrot.slane %v1420_v63, 1  ;;  %v1428_v35 = vrot.slane %v1427_v27, 2  ;;  %v1435_v37 = vrot.slane %v1434_v7, 4  ;;  %v1442_v38 = vsel %vm1377_vm10, %v3594_v32, -inf  ;;  %v3598_v40 = vpop.f32.mrb[31].mxu1 }
 0x2b7   : > { %v1441_v42 = vsel %vm1377_vm10, %v3598_v40, -inf }
 0x2b8   : > { %v1429_v11 = vmax.f32 %v1427_v27, %v1428_v35  ;;  %v1436_v13 = vmax.f32 %v1434_v7, %v1435_v37  ;;  %v1443_v16 = vmax.f32 %v1441_v42, %v1442_v38  ;;  %v1422_v21 = vmax.f32 %v1420_v63, %v1421_v33 }
 0x2b9   : > { %v3602_v5 = vpop.f32.mrb[32].mxu1 }
 0x2ba   : > { %v1430_v24 = vrot.slane %v1429_v11, 1  ;;  %v1437_v30 = vrot.slane %v1436_v13, 2  ;;  %v1444_v19 = vrot.slane %v1443_v16, 4  ;;  %v1451_v44 = vrot.slane %v3602_v5, 1  ;;  %v2621_v45 = vpop.f32.mrb[33].mxu1 }
 0x2bb   : > { %v1452_v46 = vrot.slane %v3602_v5, 2  ;;  %v1453_v47 = vrot.slane %v3602_v5, 3  ;;  %v1454_v48 = vrot.slane %v3602_v5, 4  ;;  %v1455_v22 = vrot.slane %v3602_v5, 5 }
 0x2bc   : > { %v1431_v50 = vmax.f32 %v1429_v11, %v1430_v24  ;;  %v1438_v51 = vmax.f32 %v1436_v13, %v1437_v30  ;;  %v1445_v52 = vmax.f32 %v1443_v16, %v1444_v19  ;;  %v1456_v54 = vrot.slane %v3602_v5, 6 }
 0x2bd   : > { %v1457_v55 = vrot.slane %v3602_v5, 7  ;;  %v1466_v56 = vmax.f32 %v1386_v43, %v3602_v5  ;;  %v1467_v57 = vmax.f32 %v1395_v17, %v1451_v44  ;;  %v3612_v58 = vmax.f32 %v1404_v18, %v1452_v46 }
 0x2be   : > { %v1439_v59 = vrot.slane %v1438_v51, 1  ;;  %v1446_v60 = vrot.slane %v1445_v52, 2  ;;  %v3614_v62 = vmax.f32 %v1413_v20, %v1453_v47  ;;  %v3616_v2 = vmax.f32 %v1422_v21, %v1454_v48 }
 0x2bf   : > { %v3618_v3 = vmax.f32 %v1431_v50, %v1455_v22  ;;  %v1477_v4 = vrot.slane %v1466_v56, %v3442_v25  ;;  %v1481_v6 = vrot.slane %v1467_v57, %v3442_v25  ;;  %v1485_v63 = vrot.slane %v3612_v58, %v3442_v25 }
 0x2c0   : > { %v1440_v27 = vmax.f32 %v1438_v51, %v1439_v59  ;;  %v1447_v7 = vmax.f32 %v1445_v52, %v1446_v60  ;;  %v1489_v8 = vrot.slane %v3614_v62, %v3442_v25  ;;  %v1493_v10 = vrot.slane %v3616_v2, %v3442_v25 }
 0x2c1   : > { %v1497_v29 = vrot.slane %v3618_v3, %v3442_v25  ;;  %v1506_v33 = vsub.f32 %v3542_v31, %v1477_v4  ;;  %v1507_v35 = vsub.f32 %v3538_v28, %v1477_v4  ;;  %v1508_v37 = vsub.f32 %v3550_v36, %v1481_v6 }
 0x2c2   : > { %v1448_v38 = vrot.slane %v1447_v7, 1  ;;  %v1472_v42 = vmax.f32 %v1440_v27, %v1456_v54  ;;  %v1509_v43 = vsub.f32 %v3546_v34, %v1481_v6  ;;  %v1510_v11 = vsub.f32 %v3558_v41, %v1485_v63 }
 0x2c3   : > { %v1511_v13 = vsub.f32 %v3554_v39, %v1485_v63  ;;  %v1512_v16 = vsub.f32 %v3566_v12, %v1489_v8  ;;  %v1513_v17 = vsub.f32 %v3562_v15, %v1489_v8  ;;  %v1514_v18 = vsub.f32 %v3574_v9, %v1493_v10 }
 0x2c4   : > { %v1449_v20 = vmax.f32 %v1447_v7, %v1448_v38  ;;  %v1501_v31 = vrot.slane %v1472_v42, %v3442_v25  ;;  %v1515_v28 = vsub.f32 %v3570_v26, %v1493_v10  ;;  %v1516_v36 = vsub.f32 %v3582_v53, %v1497_v29 }
 0x2c5   : > { %v1517_v21 = vsub.f32 %v3578_v49, %v1497_v29  ;;  %v1522_v34 = vmul.f32 1.442695, %v1506_v33  ;;  %v1524_v24 = vmul.f32 1.442695, %v1507_v35  ;;  %v1526_v41 = vmul.f32 1.442695, %v1508_v37 }
 0x2c6   : > { %v1473_v30 = vmax.f32 %v1449_v20, %v1457_v55  ;;  %v1518_v39 = vsub.f32 %v3590_v23, %v1501_v31  ;;  %v1519_v12 = vsub.f32 %v3586_v61, %v1501_v31  ;;  %v1528_v15 = vmul.f32 1.442695, %v1509_v43 }
 0x2c7   : > { %2806 = vpow2.f32 %v1522_v34  ;;  %v1530_v9 = vmul.f32 1.442695, %v1510_v11  ;;  %v1532_v44 = vmul.f32 1.442695, %v1511_v13  ;;  %v1534_v26 = vmul.f32 1.442695, %v1512_v16 }
 0x2c8   : > { %v1505_v19 = vrot.slane %v1473_v30, %v3442_v25  ;;  %2808 = vpow2.f32 %v1524_v24  ;;  %v1536_v45 = vmul.f32 1.442695, %v1513_v17  ;;  %v1538_v46 = vmul.f32 1.442695, %v1514_v18 }
 0x2c9   : > { %2810 = vpow2.f32 %v1526_v41  ;;  %v1562_v23 = vrot.slane %v1467_v57, 7  ;;  %v1564_v61 = vrot.slane %v3612_v58, 6  ;;  %v1540_v47 = vmul.f32 1.442695, %v1515_v28 }
 0x2ca   : > { %v1520_v53 = vsub.f32 %v3598_v40, %v1505_v19  ;;  %v1521_v49 = vsub.f32 %v3594_v32, %v1505_v19  ;;  %2812 = vpow2.f32 %v1528_v15  ;;  %v1542_v48 = vmul.f32 1.442695, %v1516_v36 }
 0x2cb   : > { %2814 = vpow2.f32 %v1530_v9  ;;  %v1544_v22 = vmul.f32 1.442695, %v1517_v21  ;;  %v1546_v25 = vmul.f32 1.442695, %v1518_v39  ;;  %v1563_v50 = vsel %vm533_vm2, %v1562_v23, %v1466_v56 }
 0x2cc   : > { %2816 = vpow2.f32 %v1532_v44  ;;  %v1566_v51 = vrot.slane %v3614_v62, 5  ;;  %v1565_v32 = vsel %vm536_vm3, %v1564_v61, %v1563_v50  ;;  %v1568_v40 = vrot.slane %v3616_v2, 4 }
 0x2cd   : > { %2818 = vpow2.f32 %v1534_v26  ;;  %v1572_v52 = vrot.slane %v1472_v42, 2  ;;  %v1570_v55 = vrot.slane %v3618_v3, 3  ;;  %v1574_v57 = vrot.slane %v1473_v30, 1 }
 0x2ce   : > { %2820 = vpow2.f32 %v1536_v45  ;;  %v1567_v54 = vsel %vm539_vm4, %v1566_v51, %v1565_v32  ;;  %v1548_v58 = vmul.f32 1.442695, %v1519_v12  ;;  %v1550_v56 = vmul.f32 1.442695, %v1520_v53 }
 0x2cf   : > { %2822 = vpow2.f32 %v1538_v46  ;;  %v1569_v59 = vsel %vm542_vm5, %v1568_v40, %v1567_v54  ;;  %v1552_v6 = vmul.f32 1.442695, %v1521_v49 }
 0x2d0   : > { %2824 = vpow2.f32 %v1540_v47  ;;  %v1571_v62 = vsel %vm545_vm6, %v1570_v55, %v1569_v59 }
 0x2d1   : > { %v2807_v60 = vpop.eup %2806  ;;  %2826 = vpow2.f32 %v1542_v48  ;;  %v1573_v2 = vsel %vm548_vm7, %v1572_v52, %v1571_v62 }
 0x2d2   : > { %v2809_v4 = vpop.eup %2808  ;;  %2828 = vpow2.f32 %v1544_v22  ;;  %v1580_v63 = vsel %vm1377_vm10, %v2807_v60, 0.0  ;;  %2624 = vmatprep.mubr.msk.f32.mxu0 %vm1377_vm10, %v2807_v60  ;;  %v1575_v27 = vsel %vm551_vm8, %v1574_v57, %v1573_v2 }
 0x2d3   : > { %v2811_v3 = vpop.eup %2810  ;;  %2830 = vpow2.f32 %v1546_v25  ;;  %v1581_v7 = vsel %vm1377_vm10, %v2809_v4, 0.0  ;;  %2625 = vmatmul.mubr.msk.f32.vlgmr.msra.gmra.mrb[18].mxu0 %vm1377_vm10, %v2809_v4  ;;  %v1577_v10 = vsub.f32 %v3602_v5, %v1575_v27 }
 0x2d4   : > { %v2813_v8 = vpop.eup %2812  ;;  %2832 = vpow2.f32 %v1548_v58  ;;  %v1582_v29 = vadd.f32 %v1581_v7, %v1580_v63  ;;  %v1589_v33 = vsel %vm1377_vm10, %v2811_v3, 0.0  ;;  %2627 = vmatprep.mubr.msk.f32.mxu0 %vm1377_vm10, %v2811_v3 }
 0x2d5   : > { %v2815_v35 = vpop.eup %2814  ;;  %2834 = vpow2.f32 %v1550_v56  ;;  %v1590_v37 = vsel %vm1377_vm10, %v2813_v8, 0.0  ;;  %v1578_v42 = vmul.f32 1.442695, %v1577_v10 }
 0x2d6   : > { %v2817_v38 = vpop.eup %2816  ;;  %2836 = vpow2.f32 %v1552_v6  ;;  %v1583_v43 = vrot.slane %v1582_v29, 4  ;;  %v1591_v11 = vadd.f32 %v1590_v37, %v1589_v33  ;;  %v1598_v16 = vsel %vm1377_vm10, %v2815_v35, 0.0 }
 0x2d7   : > { %v2819_v13 = vpop.eup %2818  ;;  %v1599_v17 = vsel %vm1377_vm10, %v2817_v38, 0.0  ;;  %2628 = vmatmul.mubr.msk.f32.gmra.mrb[20].mxu0 %vm1377_vm10, %v2813_v8  ;;  %2838 = vpow2.f32 %v1578_v42 }
 0x2d8   : > { %v2821_v5 = vpop.eup %2820  ;;  %v1584_v18 = vadd.f32 %v1583_v43, %v1582_v29  ;;  %v1592_v20 = vrot.slane %v1591_v11, 4  ;;  %v1600_v31 = vadd.f32 %v1599_v17, %v1598_v16  ;;  %2630 = vmatprep.mubr.msk.f32.mxu0 %vm1377_vm10, %v2815_v35  ;;  %v1607_v36 = vsel %vm1377_vm10, %v2819_v13, 0.0 }
 0x2d9   : > { %v2823_v28 = vpop.eup %2822  ;;  %v1608_v21 = vsel %vm1377_vm10, %v2821_v5, 0.0 }
 0x2da   : > { %v2825_v34 = vpop.eup %2824  ;;  %v1585_v24 = vrot.slane %v1584_v18, 2  ;;  %v1593_v41 = vadd.f32 %v1592_v20, %v1591_v11  ;;  %v1601_v30 = vrot.slane %v1600_v31, 4  ;;  %v1609_v39 = vadd.f32 %v1608_v21, %v1607_v36 }
 0x2db   : > { %v2827_v12 = vpop.eup %2826  ;;  %v1616_v15 = vsel %vm1377_vm10, %v2823_v28, 0.0  ;;  %v1617_v9 = vsel %vm1377_vm10, %v2825_v34, 0.0  ;;  %2631 = vmatmul.mubr.msk.f32.gmra.mrb[22].mxu0 %vm1377_vm10, %v2817_v38 }
 0x2dc   : > { %v2829_v19 = vpop.eup %2828  ;;  %v1586_v44 = vadd.f32 %v1585_v24, %v1584_v18  ;;  %v1594_v26 = vrot.slane %v1593_v41, 2  ;;  %v1602_v53 = vadd.f32 %v1601_v30, %v1600_v31  ;;  %v1610_v49 = vrot.slane %v1609_v39, 4  ;;  %2633 = vmatprep.mubr.msk.f32.mxu0 %vm1377_vm10, %v2819_v13 }
 0x2dd   : > { %v2831_v45 = vpop.eup %2830  ;;  %v1618_v46 = vadd.f32 %v1617_v9, %v1616_v15  ;;  %v1625_v23 = vsel %vm1377_vm10, %v2827_v12, 0.0  ;;  %v1626_v61 = vsel %vm1377_vm10, %v2829_v19, 0.0 }
 0x2de   : > { %v2833_v47 = vpop.eup %2832  ;;  %v1587_v48 = vrot.slane %v1586_v44, 1  ;;  %v1595_v22 = vadd.f32 %v1594_v26, %v1593_v41  ;;  %v1603_v25 = vrot.slane %v1602_v53, 2  ;;  %v1611_v50 = vadd.f32 %v1610_v49, %v1609_v39 }
 0x2df   : > { %v2835_v51 = vpop.eup %2834  ;;  %v1619_v32 = vrot.slane %v1618_v46, 4  ;;  %v1627_v40 = vadd.f32 %v1626_v61, %v1625_v23  ;;  %v1634_v52 = vsel %vm1377_vm10, %v2831_v45, 0.0  ;;  %v1635_v54 = vsel %vm1377_vm10, %v2833_v47, 0.0  ;;  %2634 = vmatmul.mubr.msk.f32.gmra.mrb[24].mxu0 %vm1377_vm10, %v2821_v5 }
 0x2e0   : > { %v2837_v55 = vpop.eup %2836  ;;  %v1588_v57 = vadd.f32 %v1587_v48, %v1586_v44  ;;  %v1596_v58 = vrot.slane %v1595_v22, 1  ;;  %v1604_v59 = vadd.f32 %v1603_v25, %v1602_v53  ;;  %v1612_v60 = vrot.slane %v1611_v50, 2  ;;  %2636 = vmatprep.mubr.msk.f32.mxu0 %vm1377_vm10, %v2823_v28 }
 0x2e1   : > { %v1620_v56 = vadd.f32 %v1619_v32, %v1618_v46  ;;  %v1628_v62 = vrot.slane %v1627_v40, 4  ;;  %v1636_v4 = vadd.f32 %v1635_v54, %v1634_v52  ;;  %v1643_v6 = vsel %vm1377_vm10, %v2835_v51, 0.0  ;;  %v2839_v2 = vpop.eup %2838 }
 0x2e2   : > { %v1597_v63 = vadd.f32 %v1596_v58, %v1595_v22  ;;  %v1605_v3 = vrot.slane %v1604_v59, 1  ;;  %v1613_v27 = vadd.f32 %v1612_v60, %v1611_v50  ;;  %v1644_v7 = vsel %vm1377_vm10, %v2837_v55, 0.0  ;;  %2651 = vmatmul.mubr.msk.f32.vlgmr.msra.gmra.mrb[34].mxu1 %vm1377_vm10, %v2839_v2  ;;  %v2126_v58 = vld [vmem:[#allocation7 + $0x8] sm:$0xff]  ;;  %v2127_v60 = vld [vmem:[#allocation7 + $0x10] sm:$0xff] }
 0x2e3   : > { %v1621_v8 = vrot.slane %v1620_v56, 2  ;;  %v1629_v10 = vadd.f32 %v1628_v62, %v1627_v40  ;;  %v1637_v29 = vrot.slane %v1636_v4, 4  ;;  %v1645_v33 = vadd.f32 %v1644_v7, %v1643_v6  ;;  %2637 = vmatmul.mubr.msk.f32.gmra.mrb[26].mxu0 %vm1377_vm10, %v2825_v34  ;;  %2654 = vmatpush3.msk.msra.mxu1 %vm1718_vm9, %v3498_v14 }
 0x2e4   : > { %v1606_v35 = vadd.f32 %v1605_v3, %v1604_v59  ;;  %v1614_v37 = vrot.slane %v1613_v27, 1  ;;  %v1660_v38 = vsel %vm533_vm2, %v1597_v63, %v1588_v57  ;;  %2639 = vmatprep.mubr.msk.f32.mxu0 %vm1377_vm10, %v2827_v12  ;;  %2655 = vmatprep.mubr.msk.f32.mxu1 %vm3006_vm0, %v3007_v1  ;;  %v2125_v57 = vld [vmem:[#allocation7] sm:$0xff] }
 0x2e5   : > { %v1622_v42 = vadd.f32 %v1621_v8, %v1620_v56  ;;  %v1630_v43 = vrot.slane %v1629_v10, 2  ;;  %v1638_v11 = vadd.f32 %v1637_v29, %v1636_v4  ;;  %v1646_v13 = vrot.slane %v1645_v33, 4  ;;  %v2128_v56 = vld [vmem:[#allocation7 + $0x18] sm:$0xff]  ;;  %v3720_v4 = vpop.permute.xlu0 %849 }
 0x2e6   : > { %v1615_v16 = vadd.f32 %v1614_v37, %v1613_v27  ;;  %v1661_v17 = vsel %vm536_vm3, %v1606_v35, %v1660_v38  ;;  %v2706_v59 = vpack.c.bf16 %v2126_v58, %v2125_v57  ;;  %v2709_v62 = vpack.c.bf16 %v2128_v56, %v2127_v60 }
 0x2e7   : > { %v1623_v5 = vrot.slane %v1622_v42, 1  ;;  %v1631_v18 = vadd.f32 %v1630_v43, %v1629_v10  ;;  %v1639_v20 = vrot.slane %v1638_v11, 2  ;;  %v1647_v31 = vadd.f32 %v1646_v13, %v1645_v33  ;;  %2640 = vmatmul.mubr.msk.f32.gmra.mrb[28].mxu0 %vm1377_vm10, %v2829_v19 }
 0x2e8   : > { %v1662_v28 = vsel %vm539_vm4, %v1615_v16, %v1661_v17  ;;  %2642 = vmatprep.mubr.msk.f32.mxu0 %vm1377_vm10, %v2831_v45  ;;  %v2557_v45 = vpop.f32.mrb[2].mxu0  ;;  %2707 = vmatpush3.bf16.msra.mxu0 %v2706_v59 }
 0x2e9   : > { %v1624_v14 = vadd.f32 %v1623_v5, %v1622_v42  ;;  %v1632_v36 = vrot.slane %v1631_v18, 1  ;;  %v1640_v21 = vadd.f32 %v1639_v20, %v1638_v11  ;;  %v1648_v34 = vrot.slane %v1647_v31, 2  ;;  %v918_v46 = vpop.f32.mrb[3].mxu0  ;;  %2708 = vmatprep.subr.bf16.mxu0 %v3005_v0 }
 0x2ea   : > { %v2560_v23 = vpop.f32.mrb[4].mxu0  ;;  %v924_v6 = vadd.f32 %v2557_v45, %v3720_v4 }
 0x2eb   : > { %v1633_v24 = vadd.f32 %v1632_v36, %v1631_v18  ;;  %v1641_v41 = vrot.slane %v1640_v21, 1  ;;  %v1649_v30 = vadd.f32 %v1648_v34, %v1647_v31  ;;  %v1663_v39 = vsel %vm542_vm5, %v1624_v14, %v1662_v28  ;;  %2643 = vmatmul.mubr.msk.f32.gmra.mrb[30].mxu0 %vm1377_vm10, %v2833_v47  ;;  %v928_v61 = vpop.f32.mrb[5].mxu0 }
 0x2ec   : > { %2645 = vmatprep.mubr.msk.f32.mxu0 %vm1377_vm10, %v2835_v51  ;;  %v2563_v47 = vpop.f32.mrb[6].mxu0  ;;  %2710 = vmatpush3.bf16.msra.mxu0 %v2709_v62  ;;  %v934_v8 = vadd.f32 %v2560_v23, %v3720_v4  ;;  %v929_v0 = vadd.f32 %v928_v61, %v3720_v4 }
 0x2ed   : > { %v1642_v12 = vadd.f32 %v1641_v41, %v1640_v21  ;;  %v1650_v15 = vrot.slane %v1649_v30, 1  ;;  %v1664_v9 = vsel %vm545_vm6, %v1633_v24, %v1663_v39  ;;  %v938_v48 = vpop.f32.mrb[7].mxu0  ;;  %v944_v43 = vadd.f32 %v2563_v47, %v3720_v4 }
 0x2ee   : > { %v2566_v22 = vpop.f32.mrb[8].mxu0  ;;  %v939_v16 = vadd.f32 %v938_v48, %v3720_v4 }
 0x2ef   : > { %v1651_v19 = vadd.f32 %v1650_v15, %v1649_v30  ;;  %v1665_v44 = vsel %vm548_vm7, %v1642_v12, %v1664_v9  ;;  %2646 = vmatmul.mubr.msk.f32.gmra.mrb[32].mxu0 %vm1377_vm10, %v2837_v55  ;;  %v948_v25 = vpop.f32.mrb[9].mxu0  ;;  %v954_v36 = vadd.f32 %v2566_v22, %v3720_v4 }
 0x2f0   : > { %2666 = vmatprep.mubr.msk.f32.mxu0 %vm3006_vm0, %v3007_v1  ;;  %v2569_v50 = vpop.f32.mrb[10].mxu0  ;;  %v949_v41 = vadd.f32 %v948_v25, %v3720_v4 }
 0x2f1   : > { %v1666_v26 = vsel %vm551_vm8, %v1651_v19, %v1665_v44  ;;  %v958_v51 = vpop.f32.mrb[11].mxu0 }
 0x2f2   : > { %v1668_v53 = vadd.f32 %v2839_v2, %v1666_v26  ;;  %v3707_v32 = vpop.f32.mrb[12].mxu0  ;;  %v919_v2 = vadd.f32 %v918_v46, %v3720_v4  ;;  %v964_v46 = vadd.f32 %v2569_v50, %v3720_v4  ;;  %v959_v23 = vadd.f32 %v958_v51, %v3720_v4 }
 0x2f3   : > { %v3709_v1 = vpop.f32.mrb[13].mxu0 }
 0x2f4   : > { %2840 = vrcp.f32 %v1668_v53  ;;  %v3711_v40 = vpop.f32.mrb[14].mxu0  ;;  %v969_v50 = vadd.f32 %v3709_v1, %v3720_v4 }
 0x2f5   : > { %v3713_v52 = vpop.f32.mrb[15].mxu0 }
 0x2f6   : > { %v3715_v54 = vpop.f32.mrb[16].mxu0 }
 0x2f7   : > { %v3717_v55 = vpop.f32.mrb[17].mxu0 }
 0x2fe   : > { %v2841_v49 = vpop.eup %2840 }
 0x2ff   : > { %2656 = vmatmul.mubr.msk.f32.vlgmr.msra.gmra.mrb[36].mxu1 %vm1377_vm10, %v2841_v49 }
 0x3a6   : > { %v2626_v63 = vpop.f32.mrb[18].mxu0 }
 0x3a7   : > { %v2020_v3 = vmul.f32 %v2626_v63, %v924_v6  ;;  %v1788_v27 = vpop.f32.mrb[19].mxu0  ;;  %v974_v6 = vadd.f32 %v3707_v32, %v3720_v4  ;;  %v984_v32 = vadd.f32 %v3711_v40, %v3720_v4 }
 0x3a8   : > { %v2019_v7 = vmul.f32 %v1788_v27, %v919_v2 }
 0x3a9   : > { %v2036_v10 = vsel %vm416_vm1, %v2020_v3, 0.0 }
 0x3aa   : > { %v2035_v29 = vsel %vm416_vm1, %v2019_v7, 0.0  ;;  %v2629_v33 = vpop.f32.mrb[20].mxu0 }
 0x3ab   : > { %v2037_v35 = vadd.f32 %v2036_v10, %v2035_v29  ;;  %v2022_v37 = vmul.f32 %v2629_v33, %v934_v8  ;;  %v1798_v38 = vpop.f32.mrb[21].mxu0 }
 0x3ac   : > { %v2021_v42 = vmul.f32 %v1798_v38, %v929_v0 }
 0x3ad   : > { %v2038_v11 = vrot.slane %v2037_v35, 4  ;;  %v2045_v13 = vsel %vm416_vm1, %v2022_v37, 0.0 }
 0x3ae   : > { %v2044_v17 = vsel %vm416_vm1, %v2021_v42, 0.0  ;;  %v2632_v5 = vpop.f32.mrb[22].mxu0 }
 0x3af   : > { %v2039_v18 = vadd.f32 %v2038_v11, %v2037_v35  ;;  %v2046_v20 = vadd.f32 %v2045_v13, %v2044_v17  ;;  %v2024_v31 = vmul.f32 %v2632_v5, %v944_v43  ;;  %v1808_v28 = vpop.f32.mrb[23].mxu0  ;;  %v979_v13 = vadd.f32 %v3713_v52, %v3720_v4 }
 0x3b0   : > { %v2023_v14 = vmul.f32 %v1808_v28, %v939_v16 }
 0x3b1   : > { %v2040_v21 = vrot.slane %v2039_v18, 2  ;;  %v2047_v34 = vrot.slane %v2046_v20, 4  ;;  %v2054_v24 = vsel %vm416_vm1, %v2024_v31, 0.0 }
 0x3b2   : > { %v2053_v30 = vsel %vm416_vm1, %v2023_v14, 0.0  ;;  %v2635_v39 = vpop.f32.mrb[24].mxu0  ;;  %v994_v14 = vadd.f32 %v3715_v54, %v3720_v4 }
 0x3b3   : > { %v2041_v12 = vadd.f32 %v2040_v21, %v2039_v18  ;;  %v2048_v15 = vadd.f32 %v2047_v34, %v2046_v20  ;;  %v2055_v9 = vadd.f32 %v2054_v24, %v2053_v30  ;;  %v2026_v19 = vmul.f32 %v2635_v39, %v954_v36  ;;  %v1818_v44 = vpop.f32.mrb[25].mxu0 }
 0x3b4   : > { %v2025_v26 = vmul.f32 %v1818_v44, %v949_v41  ;;  %v989_v30 = vadd.f32 %v3717_v55, %v3720_v4 }
 0x3b5   : > { %v2049_v53 = vrot.slane %v2048_v15, 2  ;;  %v2056_v49 = vrot.slane %v2055_v9, 4  ;;  %v2063_v45 = vsel %vm416_vm1, %v2026_v19, 0.0  ;;  %v2042_v61 = vrot.slane %v2041_v12, 1  ;;  %v3739_v47 = vpop.f32.mrb[34].mxu1 }
 0x3b6   : > { %v2062_v48 = vsel %vm416_vm1, %v2025_v26, 0.0  ;;  %v2638_v22 = vpop.f32.mrb[26].mxu0  ;;  %v2652_v58 = vpop.f32.mrb[35].mxu1 }
 0x3b7   : > { %v2050_v25 = vadd.f32 %v2049_v53, %v2048_v15  ;;  %v2057_v57 = vadd.f32 %v2056_v49, %v2055_v9  ;;  %v1828_v59 = vpop.f32.mrb[27].mxu0  ;;  %v2064_v60 = vadd.f32 %v2063_v45, %v2062_v48  ;;  %v2028_v56 = vmul.f32 %v2638_v22, %v964_v46 }
 0x3b8   : > { %v2027_v62 = vmul.f32 %v1828_v59, %v959_v23  ;;  %v2043_v63 = vadd.f32 %v2042_v61, %v2041_v12 }
 0x3b9   : > { %v2051_v51 = vrot.slane %v2050_v25, 1  ;;  %v2058_v2 = vrot.slane %v2057_v57, 2  ;;  %v2065_v3 = vrot.slane %v2064_v60, 4  ;;  %v2072_v27 = vsel %vm416_vm1, %v2028_v56, 0.0 }
 0x3ba   : > { %v2071_v7 = vsel %vm416_vm1, %v2027_v62, 0.0  ;;  %v2641_v8 = vpop.f32.mrb[28].mxu0 }
 0x3bb   : > { %v2052_v10 = vadd.f32 %v2051_v51, %v2050_v25  ;;  %v2059_v0 = vadd.f32 %v2058_v2, %v2057_v57  ;;  %v2073_v29 = vadd.f32 %v2072_v27, %v2071_v7  ;;  %v2030_v33 = vmul.f32 %v2641_v8, %v974_v6  ;;  %v1838_v35 = vpop.f32.mrb[29].mxu0 }
 0x3bc   : > { %v2066_v37 = vadd.f32 %v2065_v3, %v2064_v60  ;;  %v2029_v38 = vmul.f32 %v1838_v35, %v969_v50 }
 0x3bd   : > { %v2115_v1 = vsel %vm533_vm2, %v2052_v10, %v2043_v63  ;;  %v2060_v42 = vrot.slane %v2059_v0, 1  ;;  %v2074_v43 = vrot.slane %v2073_v29, 4  ;;  %v2081_v11 = vsel %vm416_vm1, %v2030_v33, 0.0 }
 0x3be   : > { %v2067_v16 = vrot.slane %v2066_v37, 2  ;;  %v2080_v17 = vsel %vm416_vm1, %v2029_v38, 0.0  ;;  %v2644_v5 = vpop.f32.mrb[30].mxu0 }
 0x3bf   : > { %v2061_v18 = vadd.f32 %v2060_v42, %v2059_v0  ;;  %v2075_v20 = vadd.f32 %v2074_v43, %v2073_v29  ;;  %v2082_v31 = vadd.f32 %v2081_v11, %v2080_v17  ;;  %v2032_v28 = vmul.f32 %v2644_v5, %v984_v32  ;;  %v1848_v40 = vpop.f32.mrb[31].mxu0  ;;  %v2016_v0 = vpop.permute.xlu1 %2015 }
 0x3c0   : > { %v2068_v36 = vadd.f32 %v2067_v16, %v2066_v37  ;;  %v2031_v21 = vmul.f32 %v1848_v40, %v979_v13  ;;  %v2018_v35 = vmul.f32 %v2016_v0, %v3739_v47 }
 0x3c1   : > { %v2116_v34 = vsel %vm536_vm3, %v2061_v18, %v2115_v1  ;;  %v2076_v24 = vrot.slane %v2075_v20, 2  ;;  %v2083_v41 = vrot.slane %v2082_v31, 4  ;;  %v2090_v52 = vsel %vm416_vm1, %v2032_v28, 0.0  ;;  %v2400_v1 = vld [vmem:[%s3831_s8] ss:$0 sm:$0xff] }
 0x3c2   : > { %v2069_v39 = vrot.slane %v2068_v36, 1  ;;  %v2089_v12 = vsel %vm416_vm1, %v2031_v21, 0.0  ;;  %v2647_v15 = vpop.f32.mrb[32].mxu0 }
 0x3c3   : > { %v2077_v9 = vadd.f32 %v2076_v24, %v2075_v20  ;;  %v2084_v19 = vadd.f32 %v2083_v41, %v2082_v31  ;;  %v2091_v44 = vadd.f32 %v2090_v52, %v2089_v12  ;;  %v2034_v26 = vmul.f32 %v2647_v15, %v994_v14  ;;  %v1858_v54 = vpop.f32.mrb[33].mxu0 }
 0x3c4   : > { %v2070_v53 = vadd.f32 %v2069_v39, %v2068_v36  ;;  %v2033_v49 = vmul.f32 %v1858_v54, %v989_v30 }
 0x3c5   : > { %v2078_v45 = vrot.slane %v2077_v9, 1  ;;  %v2085_v46 = vrot.slane %v2084_v19, 2  ;;  %v2092_v23 = vrot.slane %v2091_v44, 4  ;;  %v2099_v61 = vsel %vm416_vm1, %v2034_v26, 0.0 }
 0x3c6   : > { %v2098_v48 = vsel %vm416_vm1, %v2033_v49, 0.0  ;;  %v2117_v55 = vsel %vm539_vm4, %v2070_v53, %v2116_v34 }
 0x3c7   : > { %v2079_v4 = vadd.f32 %v2078_v45, %v2077_v9  ;;  %v2086_v22 = vadd.f32 %v2085_v46, %v2084_v19  ;;  %v2093_v25 = vadd.f32 %v2092_v23, %v2091_v44  ;;  %v2100_v57 = vadd.f32 %v2099_v61, %v2098_v48 }
 0x3c9   : > { %v2087_v58 = vrot.slane %v2086_v22, 1  ;;  %v2094_v59 = vrot.slane %v2093_v25, 2  ;;  %v2101_v60 = vrot.slane %v2100_v57, 4  ;;  %v2118_v56 = vsel %vm542_vm5, %v2079_v4, %v2117_v55 }
 0x3cb   : > { %v2088_v62 = vadd.f32 %v2087_v58, %v2086_v22  ;;  %v2095_v6 = vadd.f32 %v2094_v59, %v2093_v25  ;;  %v2102_v50 = vadd.f32 %v2101_v60, %v2100_v57 }
 0x3cd   : > { %v2096_v51 = vrot.slane %v2095_v6, 1  ;;  %v2103_v2 = vrot.slane %v2102_v50, 2  ;;  %v2119_v63 = vsel %vm545_vm6, %v2088_v62, %v2118_v56 }
 0x3cf   : > { %v2097_v3 = vadd.f32 %v2096_v51, %v2095_v6  ;;  %v2104_v27 = vadd.f32 %v2103_v2, %v2102_v50 }
 0x3d1   : > { %v2105_v7 = vrot.slane %v2104_v27, 1  ;;  %v2120_v8 = vsel %vm548_vm7, %v2097_v3, %v2119_v63 }
 0x3d2   : > { %v2011_v10 = vpop.f32.mrb[36].mxu1 }
 0x3d3   : > { %v2106_v29 = vadd.f32 %v2105_v7, %v2104_v27  ;;  %v2657_v33 = vpop.f32.mrb[37].mxu1 }
 0x3d5   : > { %v2121_v32 = vsel %vm551_vm8, %v2106_v29, %v2120_v8 }
 0x3d6   : > { %v2123_v37 = vadd.f32 %v2121_v32, %v2018_v35 }
 0x3d8   : > { %v2124_v38 = vmul.f32 %v2123_v37, %v2011_v10 }
 0x3da   : > { %2667 = vmatmul.mubr.msk.f32.vlgmr.msra.gmra.mrb[34].mxu0 %vm416_vm1, %v2124_v38 }
 0x4ad   : > { %v2205_v42 = vpop.f32.mrb[34].mxu0 }
 0x4ae   : > { %v2206_v43 = vadd.f32 %v2400_v1, %v2205_v42  ;;  %v2668_v11 = vpop.f32.mrb[35].mxu0 }
 0x4b0   : > { %2209 = vst [vmem:[%s380_s25] sm:$0xff] %v2206_v43 }
 0x4b1   : > { %2941 = shalt.err (!%p2938_p1)
}
 0x4b2   : > { %s2942_s23 = scalar_lea.hbm %s3779_s28, 128  ;;  %s2946_s16 = scalar_lea.hbm %s3832_s9, 256 }
 0x4b3   : > { %p2943_p13 = scmp.ne.s32.totalorder %s3779_s28, %s2942_s23  ;;  %p2947_p4 = scmp.lt.u32.totalorder %s3779_s28, %s3832_s9 }
 0x4b4   : > { %p2948_p5 = scmp.lt.u32.totalorder %s2946_s16, %s2942_s23  ;;  %p2950_p11 = scmp.lt.u32.totalorder %s2942_s23, %s3779_s28 }
 0x4b5   : > { %p2944_p6 = pnand %p2943_p13, %p3852_p0 }
 0x4b6   : > { %p2949_p8 = por %p2948_p5, %p2947_p4 }
 0x4b7   : > { %p2945_p10 = pneg %p2944_p6 }
 0x4b8   : > { %p2951_p2 = por %p2950_p11, %p2949_p8 }
 0x4ba   : > { %p2952_p3 = pnand %p2951_p2, %p2945_p10 }
 0x4bc   : > { %2955 = shalt.err (!%p2952_p3)
}
 0x4bd   : > { %2721 = dma.vmem_to_hbm [thread:$0]  (%p3852_p0), %s3781_s24, 128, %s3779_s28, %s2211_s29  }
 0x4be PF: > { %s3853_s21 = sld [smem:[#allocation12_spill]]  ;;  %s2236_s14 = sand.u32 1, %s2986_s30  }
 0x4bf   : > { %p3855_p9 = scmp.ge.s32.totalorder %s2998_s12, 2  ;;  %s2237_s13 = scalar_lea.sflag [#allocation4], %s2236_s14 }
 0x4c4   : > { %p3854_p7 = scmp.ne.s32.totalorder %s3853_s21, 0 }
 0x4c6   : > { %p2735_p12 = pnand %p3855_p9, %p3854_p7 }
 0x4c8   : > { %2981 = dma.done.wait (!%p2735_p12), %s2237_s13, 128  }
 0x4c9   : > { %2983 = vsyncadd (!%p2735_p12), %s2237_s13, 4294967168  ;;  %p23_p1 = scmp.ge.s32.totalorder %s3178_s20, 4   ;;  %s3856_s30 = smov %s2990_s10 }
 0x4ca   : > { %s3857_s10 = smov %s2994_s11  ;;  %s3858_s11 = smov %s3194_s27 }
 0x4cb   : > { %s3859_s12 = smov %s3178_s20  ;;  %25 = sbr.rel (!%p23_p1) target bundleno = 6 (0x6), region = 109 }
 0x4d2   :  { %2242 = vsyncpa [#allocation3], 1 }
 0x4d3   :  { %2244 = vsyncpa [#allocation3 + $0x1], 1 }
 0x4d4   :  { %2245 = vsyncpa [#allocation6], 1 }
 0x4d5   :  { %2246 = vsyncpa [#allocation4], 1 }
 0x4d6   :  { %2248 = vsyncpa [#allocation4 + $0x1], 1 }

// kernel: tpu_custom_call.1
= control target key start
LH: loop header
LB: loop body
LE: loop exit
PB: predicated region body
PF: predicated region fallthrough
CT: control target
= control target key end

     0   :  { %14 = vsyncpa [#allocation3], 0  ;;  %s3823_s0 = inlined_call_operand.hbm [shape: f32[16,16,32], index: 0, kind: input, shape index: {}]   ;;  %s3824_s1 = inlined_call_operand.vmem [shape: f32[1,32], index: 1, kind: input, shape index: {}]   ;;  %s3825_s2 = inlined_call_operand.hbm [shape: f32[16,32], index: 2, kind: input, shape index: {}]   ;;  %s3826_s3 = inlined_call_operand.vmem [shape: f32[32,96], index: 3, kind: input, shape index: {}]   ;;  %s3827_s4 = inlined_call_operand.vmem [shape: f32[1,96], index: 4, kind: input, shape index: {}]   ;;  %s3828_s5 = inlined_call_operand.vmem [shape: f32[32,4], index: 5, kind: input, shape index: {}]   ;;  %s3829_s6 = inlined_call_operand.vmem [shape: f32[4,32], index: 6, kind: input, shape index: {}]   ;;  %s3830_s7 = inlined_call_operand.hbm [shape: f32[32,128], index: 7, kind: input, shape index: {}]   ;;  %s3831_s8 = inlined_call_operand.vmem [shape: f32[1,128], index: 8, kind: input, shape index: {}]   ;;  %s3832_s9 = inlined_call_operand.hbm [shape: f32[16,128], index: 9, kind: output, shape index: {}]  }
   0x1   :  { %16 = vsyncpa [#allocation3 + $0x1], 0 }
   0x2   :  { %17 = vsyncpa [#allocation6], 0 }
   0x3   :  { %18 = vsyncpa [#allocation4], 0 }
   0x4   :  { %20 = vsyncpa [#allocation4 + $0x1], 0  ;;  %s3062_s30 = smov 0   ;;  %s3064_s10 = smov 0  }
   0x5   :  { %s3066_s11 = smov 0   ;;  %s3068_s12 = smov 0  }
   0x6 LB: > { %s3083_s13 = sadd.s32 4294967295, %s2998_s12   ;;  %s2313_s14 = sadd.s32 4294967294, %s2998_s12   ;;  %s2998_s12 = sphi %s3068_s12, %s3859_s12   ;;  %s2994_s11 = sphi %s3066_s11, %s3858_s11   ;;  %s2990_s10 = sphi %s3064_s10, %s3857_s10   ;;  %s2986_s30 = sphi %s3062_s30, %s3856_s30  }
   0x7   : > { %p46_p0 = scmp.ne.s32.totalorder %s2990_s10, %s2986_s30  ;;  %p3833_p1 = scmp.eq.s32.totalorder %s3083_s13, 0 }
   0x8   : > { %p244_p3 = scmp.eq.s32.totalorder %s2313_s14, 1  ;;  %p2314_p5 = scmp.ge.s32.totalorder %s2998_s12, 1 }
   0x9   : > { %p3092_p4 = por %p3833_p1, %p46_p0  ;;  %p251_p7 = scmp.lt.s32.totalorder %s2998_s12, 3 }
   0xa   : > { %p3097_p6 = por %p244_p3, %p46_p0  ;;  %s3000_s18 = smov [#allocation5]  }
   0xb   : > { %s3839_s15 = scalar_select %p3092_p4, 1, 0 }
   0xc   : > { %s3840_s16 = scalar_select %p3097_p6, 1, 0 }
   0xd   : > { %p3102_p8 = pnand %p2314_p5, %p251_p7  ;;  %s266_s19 = sshll.u32 %s3000_s18, 4  ;;  %s3106_s19 = int_to_ptr.vmem [resolvable:$true] %s266_s19 }
   0xe   : > { %3841 = sst [smem:[#allocation12_spill]] %s3840_s16  ;;  %s3001_s21 = smov [#allocation7]  }
   0xf   : > { %p2723_p9 = pneg %p3102_p8  ;;  %s291_s22 = sshll.u32 %s3001_s21, 4  ;;  %s3117_s22 = int_to_ptr.vmem [resolvable:$true] %s291_s22 }
  0x10   : > { %s2842_s25 = scalar_lea.hbm %s3825_s2, 256 }
  0x11   : > { %p3113_p11 = pnand %p2723_p9, %p3833_p1  ;;  %p2843_p12 = scmp.ne.s32.totalorder %s3825_s2, %s2842_s25 }
  0x12   : > { %p2849_p5 = scmp.lt.u32.totalorder %s2842_s25, %s3825_s2 }
  0x13   : > { %p2844_p13 = pneg %p3113_p11 }
  0x15   : > { %p2845_p0 = pnand %p2844_p13, %p2843_p12 }
  0x17   : > { %p2846_p3 = pneg %p2845_p0 }
  0x19   : > { %p2851_p7 = pnand %p2849_p5, %p2846_p3 }
  0x1b   : > { %2854 = shalt.err (!%p2851_p7)
}
  0x1c   : > { %s2855_s14 = scalar_lea.vmem %s3106_s19, 256  ;;  %p2863_p2 = scmp.lt.s32.totalorder %s3106_s19, %s3106_s19 }
  0x1d   : > { %p2856_p9 = scmp.ne.s32.totalorder %s3106_s19, %s2855_s14  ;;  %p2864_p12 = scmp.lt.s32.totalorder %s2855_s14, %s2855_s14 }
  0x1f   : > { %p2858_p10 = pnand %p2856_p9, %p2844_p13  ;;  %p2865_p0 = por %p2864_p12, %p2863_p2 }
  0x21   : > { %p2859_p1 = pneg %p2858_p10 }
  0x23   : > { %p2866_p6 = pnand %p2865_p0, %p2859_p1 }
  0x25   : > { %2869 = shalt.err (!%p2866_p6)
}
  0x26   : > { %s3835_s18 = smov 128   ;;  %s3836_s21 = smov 8  }
  0x27   : > { %2726 = dma.hbm_to_vmem [thread:$0]  (!%p3113_p11), %s3825_s2, 256, %s3106_s19, [#allocation6], %s3835_s18, %s3835_s18, %s3836_s21  }
  0x28   : > { %s2870_s27 = scalar_lea.hbm %s3830_s7, 512 }
  0x29   : > { %p2871_p1 = scmp.ne.s32.totalorder %s3830_s7, %s2870_s27  ;;  %p2877_p10 = scmp.lt.u32.totalorder %s2870_s27, %s3830_s7 }
  0x2b   : > { %p2873_p2 = pnand %p2871_p1, %p2844_p13 }
  0x2d   : > { %p2874_p6 = pneg %p2873_p2 }
  0x2f   : > { %p2879_p3 = pnand %p2877_p10, %p2874_p6 }
  0x31   : > { %2882 = shalt.err (!%p2879_p3)
}
  0x32   : > { %s2883_s19 = scalar_lea.vmem %s3117_s22, 512  ;;  %p2891_p12 = scmp.lt.s32.totalorder %s3117_s22, %s3117_s22 }
  0x33   : > { %p2884_p5 = scmp.ne.s32.totalorder %s3117_s22, %s2883_s19  ;;  %p2892_p0 = scmp.lt.s32.totalorder %s2883_s19, %s2883_s19 }
  0x35   : > { %p2886_p7 = pnand %p2884_p5, %p2844_p13  ;;  %p2893_p1 = por %p2892_p0, %p2891_p12 }
  0x37   : > { %p2887_p9 = pneg %p2886_p7 }
  0x39   : > { %p2894_p2 = pnand %p2893_p1, %p2887_p9 }
  0x3b   : > { %2897 = shalt.err (!%p2894_p2)
}
  0x3c   : > { %2729 = dma.hbm_to_vmem [thread:$0]  (!%p3113_p11), %s3830_s7, 512, %s3117_s22, [#allocation6], %s3835_s18, %s3835_s18, %s3836_s21  }
  0x3d   : > { %s3178_s20 = sadd.s32 1, %s2998_s12   ;;  %s33_s24 = sadd.s32 1, %s2994_s11 }
  0x3e   : > { %s30_s25 = ssub.s32 %s2998_s12, %s3178_s20  ;;  %p40_p13 = scmp.ne.s32.totalorder %s2994_s11, %s2990_s10 }
  0x3f   : > { %p31_p6 = scmp.eq.s32.totalorder %s30_s25, 0  ;;  %p41_p10 = scmp.eq.s32.totalorder %s2998_s12, 0 }
  0x40   : > { %p3844_p3 = scmp.eq.s32.totalorder %s3083_s13, 1  ;;  %p2740_p7 = scmp.lt.s32.totalorder %s2998_s12, 2 }
  0x41   : > { %s3194_s27 = scalar_select %p31_p6, %s2994_s11, %s33_s24  }
  0x42   : > { %p3188_p5 = por %p3844_p3, %p40_p13  ;;  %p42_p9 = por %p41_p10, %p40_p13 }
  0x43   : > { %s308_s28 = sand.u32 1, %s2994_s11   ;;  %s2407_s22 = sshll.u32 %s2998_s12, 11 }
  0x44   : > { %s3845_s26 = scalar_select %p3188_p5, 1, 0 }
  0x45   : > { %s2318_s29 = sshll.u32 %s308_s28, 7  ;;  %s3201_s16 = scalar_lea.hbm %s3823_s0, %s2407_s22 }
  0x46   : > { %s312_s23 = scalar_lea.vmem [#allocation2], %s2318_s29  ;;  %p3205_p11 = pnand %p2740_p7, %p42_p9 }
  0x47   : > { %s320_s25 = sshll.u32 %s312_s23, 4  ;;  %s3209_s18 = scalar_lea.sflag [#allocation3], %s308_s28  ;;  %s3203_s25 = int_to_ptr.vmem [resolvable:$true] %s320_s25 }
  0x48   : > { %s2898_s21 = scalar_lea.hbm %s3201_s16, 2048  ;;  %p2900_p0 = pneg %p3205_p11 }
  0x49   : > { %p2899_p12 = scmp.ne.s32.totalorder %s3201_s16, %s2898_s21  ;;  %s2903_s14 = scalar_lea.hbm %s3823_s0, 4096 }
  0x4a   : > { %p2904_p13 = scmp.lt.u32.totalorder %s3201_s16, %s3823_s0  ;;  %p2905_p6 = scmp.lt.u32.totalorder %s2903_s14, %s2898_s21 }
  0x4b   : > { %p2901_p1 = pnand %p2900_p0, %p2899_p12  ;;  %p2907_p3 = scmp.lt.u32.totalorder %s2898_s21, %s3201_s16 }
  0x4c   : > { %p2906_p10 = por %p2905_p6, %p2904_p13 }
  0x4d   : > { %p2902_p2 = pneg %p2901_p1 }
  0x4e   : > { %p2908_p7 = por %p2907_p3, %p2906_p10 }
  0x50   : > { %p2909_p9 = pnand %p2908_p7, %p2902_p2 }
  0x52   : > { %2912 = shalt.err (!%p2909_p9)
}
  0x53   : > { %s2913_s28 = scalar_lea.vmem %s3203_s25, 2048  ;;  %s3004_s29 = smov [#allocation2]  }
  0x54   : > { %p2914_p12 = scmp.ne.s32.totalorder %s3203_s25, %s2913_s28  ;;  %s2918_s22 = sshll.u32 %s3004_s29, 4  ;;  %s2919_s22 = int_to_ptr.vmem [resolvable:$false] %s2918_s22 }
  0x55   : > { %s2920_s19 = scalar_lea.vmem %s2919_s22, 4096  ;;  %p2921_p4 = scmp.lt.s32.totalorder %s3203_s25, %s2919_s22 }
  0x56   : > { %p2916_p1 = pnand %p2914_p12, %p2900_p0  ;;  %p2922_p13 = scmp.lt.s32.totalorder %s2920_s19, %s2913_s28 }
  0x58   : > { %p2917_p5 = pneg %p2916_p1  ;;  %p2923_p6 = por %p2922_p13, %p2921_p4 }
  0x5a   : > { %p2924_p10 = pnand %p2923_p6, %p2917_p5 }
  0x5c   : > { %2927 = shalt.err (!%p2924_p10)
}
  0x5d   : > { %s3847_s21 = smov 8   ;;  %s3848_s14 = smov 128  }
  0x5e   : > { %2733 = dma.hbm_to_vmem [thread:$0]  (!%p3205_p11), %s3201_s16, 2048, %s3203_s25, %s3209_s18, %s3848_s14, %s3848_s14, %s3847_s21  }
  0x5f   : > { %332 = sbr.rel (%p3102_p8) target bundleno = 1214 (0x4be), region = 56  ;;  %s3243_s23 = sand.u32 (!%p3102_p8), 1, %s2990_s10  }
  0x60   : > { %s2323_s28 = sshll.u32 (!%p3102_p8), %s3243_s23, 7  ;;  %s335_s29 = scalar_lea.sflag (!%p3102_p8), [#allocation3], %s3243_s23 }
  0x61   : > { %s3247_s22 = scalar_lea.vmem (!%p3102_p8), [#allocation2], %s2323_s28  ;;  %p3849_p4 = scmp.ne.s32.totalorder (!%p3102_p8), %s3839_s15, 0 }
  0x66   : > { %2973 = dma.done.wait (%p3849_p4), %s335_s29, 2048  }
  0x67   : > { %2975 = vsyncadd (%p3849_p4), %s335_s29, 4294965248  ;;  %p3850_p5 = scmp.eq.s32.totalorder %s3083_s13, 0 }
  0x69   : > { %2977 = dma.done.wait (%p3850_p5), [#allocation6], 768   ;;  %p3851_p8 = pmov %p3850_p5 }
  0x6a   : > { %v3005_v0 = vmov 0.0|0.0   ;;  %vm3006_vm0 = vmmov 0   ;;  %v3007_v1 = vmov 0.0   ;;  %v513_v2 = vld [vmem:[%s3826_s3] sm:$0xff]  ;;  %v514_v3 = vld [vmem:[%s3826_s3 + $0x8] sm:$0xff]  ;;  %v515_v4 = vld [vmem:[%s3826_s3 + $0x10] sm:$0xff] }
  0x6b   : > { %2979 = vsyncadd (%p3851_p8), [#allocation6], 4294966528  ;;  %2669 = vmatprep.subr.bf16.mxu0 %v3005_v0  ;;  %2512 = vmatprep.mubr.msk.f32.mxu0 %vm3006_vm0, %v3007_v1  ;;  %v3269_v5 = vpack.i.bf16 %v514_v3, %v513_v2  ;;  %v516_v6 = vld [vmem:[%s3826_s3 + $0x18] sm:$0xff]  ;;  %v2670_v7 = vpack.c.bf16 %v514_v3, %v513_v2  ;;  %v382_v8 = vld [vmem:[%s3247_s22] sm:$0xff]  ;;  %s3008_s14 = smov 96   ;;  %vm416_vm1 = vcmask 261120  }
  0x6c   : > { %v3277_v9 = vpack.i.bf16 %v516_v6, %v515_v4  ;;  %v2673_v10 = vpack.c.bf16 %v516_v6, %v515_v4  ;;  %v383_v11 = vld [vmem:[%s3247_s22 + $0x8] sm:$0xff]  ;;  %v384_v12 = vld [vmem:[%s3247_s22 + $0x10] sm:$0xff]  ;;  %v385_v13 = vld [vmem:[%s3247_s22 + $0x18] sm:$0xff]  ;;  %vm533_vm2 = vcmask 1041409   ;;  %vm536_vm3 = vcmask 1042434   ;;  %s3009_s29 = smov 64  }
  0x6d   : > { %2787 = vrot.lane.b32.xlu0 %v3269_v5, %s3008_s14  ;;  %2671 = vmatpush3.bf16.msra.mxu0 %v2670_v7  ;;  %v386_v14 = vld [vmem:[%s3247_s22 + $0x20] sm:$0xff]  ;;  %v387_v15 = vld [vmem:[%s3247_s22 + $0x28] sm:$0xff]  ;;  %v388_v16 = vld [vmem:[%s3247_s22 + $0x30] sm:$0xff]  ;;  %vm539_vm4 = vcmask 1043459   ;;  %vm542_vm5 = vcmask 1044484   ;;  %vm545_vm6 = vcmask 1045509  }
  0x6e   : > { %2672 = vmatprep.subr.bf16.mxu0 %v3005_v0  ;;  %v389_v17 = vld [vmem:[%s3247_s22 + $0x38] sm:$0xff]  ;;  %v390_v18 = vld [vmem:[%s3247_s22 + $0x40] sm:$0xff]  ;;  %v391_v19 = vld [vmem:[%s3247_s22 + $0x48] sm:$0xff]  ;;  %vm548_vm7 = vcmask 1046534   ;;  %vm551_vm8 = vcmask 1047559   ;;  %vm1718_vm9 = vcmask 1043456  }
  0x6f   : > { %v392_v20 = vld [vmem:[%s3247_s22 + $0x50] sm:$0xff]  ;;  %v393_v21 = vld [vmem:[%s3247_s22 + $0x58] sm:$0xff]  ;;  %v394_v22 = vld [vmem:[%s3247_s22 + $0x60] sm:$0xff]  ;;  %vm1377_vm10 = vcmask 31744   ;;  %s2326_s15 = sshll.u32 %s3243_s23, 3  ;;  %s2403_s16 = sshll.u32 %s3083_s13, 7 }
  0x70   : > { %v398_v23 = vld [vmem:[#allocation5] sm:$0xff]  ;;  %v395_v24 = vld [vmem:[%s3247_s22 + $0x68] sm:$0xff]  ;;  %v396_v25 = vld [vmem:[%s3247_s22 + $0x70] sm:$0xff]  ;;  %s380_s25 = scalar_lea.vmem [#allocation8], %s2326_s15  ;;  %s3779_s28 = scalar_lea.hbm %s3832_s9, %s2403_s16 }
  0x71   : > { %2792 = vrot.lane.b32.xlu0 %v3277_v9, %s3008_s14  ;;  %2674 = vmatpush3.bf16.msra.mxu0 %v2673_v10  ;;  %v399_v26 = vld [vmem:[#allocation5 + $0x8] sm:$0xff]  ;;  %v3296_v27 = vadd.f32 %v398_v23, %v382_v8  ;;  %v3298_v28 = vadd.f32 %v398_v23, %v384_v12  ;;  %v3300_v29 = vadd.f32 %v398_v23, %v386_v14  ;;  %v397_v30 = vld [vmem:[%s3247_s22 + $0x78] sm:$0xff]  ;;  %s2224_s24 = sshll.u32 %s380_s25, 4  ;;  %p3852_p0 = scmp.ne.s32.totalorder %s3845_s26, 0  ;;  %s3781_s24 = int_to_ptr.vmem [resolvable:$true] %s2224_s24 }
  0x72   : > { %v3303_v31 = vadd.f32 %v399_v26, %v383_v11  ;;  %v3305_v32 = vadd.f32 %v399_v26, %v385_v13  ;;  %v3307_v33 = vadd.f32 %v399_v26, %v387_v15  ;;  %v3309_v34 = vadd.f32 %v398_v23, %v388_v16  ;;  %s3011_s13 = smov [#allocation8]  }
  0x73   : > { %v3311_v35 = vadd.f32 %v399_v26, %v389_v17  ;;  %v3313_v36 = vadd.f32 %v398_v23, %v390_v18  ;;  %v3315_v37 = vadd.f32 %v399_v26, %v391_v19  ;;  %v3317_v38 = vadd.f32 %v398_v23, %v392_v20  ;;  %2523 = vmatprep.mubr.msk.f32.mxu1 %vm416_vm1, %v3296_v27  ;;  %s2932_s22 = sshll.u32 %s3011_s13, 4  ;;  %s2933_s22 = int_to_ptr.vmem [resolvable:$false] %s2932_s22 }
  0x74   : > { %v3321_v39 = vadd.f32 %v399_v26, %v393_v21  ;;  %v3323_v40 = vadd.f32 %v398_v23, %v394_v22  ;;  %v3325_v41 = vadd.f32 %v399_v26, %v395_v24  ;;  %v3327_v42 = vadd.f32 %v398_v23, %v396_v25  ;;  %s2934_s15 = scalar_lea.vmem %s2933_s22, 256  ;;  %p2935_p7 = scmp.lt.s32.totalorder %s3781_s24, %s2933_s22 }
  0x75   : > { %v3329_v43 = vadd.f32 %v399_v26, %v397_v30  ;;  %v417_v44 = vsel %vm416_vm1, %v3296_v27, 0.0  ;;  %v418_v45 = vsel %vm416_vm1, %v3303_v31, 0.0  ;;  %v426_v46 = vsel %vm416_vm1, %v3298_v28, 0.0  ;;  %2797 = vrot.lane.b32.xlu0 %v3269_v5, %s3009_s29 }
  0x76   : > { %v419_v47 = vadd.f32 %v418_v45, %v417_v44  ;;  %v427_v48 = vsel %vm416_vm1, %v3305_v32, 0.0  ;;  %v435_v49 = vsel %vm416_vm1, %v3300_v29, 0.0  ;;  %v436_v50 = vsel %vm416_vm1, %v3307_v33, 0.0 }
  0x77   : > { %v428_v51 = vadd.f32 %v427_v48, %v426_v46  ;;  %v437_v52 = vadd.f32 %v436_v50, %v435_v49  ;;  %v444_v53 = vsel %vm416_vm1, %v3309_v34, 0.0  ;;  %v445_v54 = vsel %vm416_vm1, %v3311_v35, 0.0 }
  0x78   : > { %v420_v55 = vrot.slane %v419_v47, 4  ;;  %v446_v56 = vadd.f32 %v445_v54, %v444_v53  ;;  %v453_v57 = vsel %vm416_vm1, %v3313_v36, 0.0  ;;  %v454_v58 = vsel %vm416_vm1, %v3315_v37, 0.0 }
  0x79   : > { %v429_v59 = vrot.slane %v428_v51, 4  ;;  %v438_v60 = vrot.slane %v437_v52, 4  ;;  %v455_v61 = vadd.f32 %v454_v58, %v453_v57  ;;  %v462_v62 = vsel %vm416_vm1, %v3317_v38, 0.0 }
  0x7a   : > { %v421_v63 = vadd.f32 %v420_v55, %v419_v47  ;;  %v447_v2 = vrot.slane %v446_v56, 4  ;;  %v463_v3 = vsel %vm416_vm1, %v3321_v39, 0.0  ;;  %v471_v4 = vsel %vm416_vm1, %v3323_v40, 0.0 }
  0x7b   : > { %v430_v6 = vadd.f32 %v429_v59, %v428_v51  ;;  %v439_v7 = vadd.f32 %v438_v60, %v437_v52  ;;  %v456_v8 = vrot.slane %v455_v61, 4  ;;  %v464_v10 = vadd.f32 %v463_v3, %v462_v62 }
  0x7c   : > { %v422_v11 = vrot.slane %v421_v63, 2  ;;  %v448_v12 = vadd.f32 %v447_v2, %v446_v56  ;;  %v472_v13 = vsel %vm416_vm1, %v3325_v41, 0.0  ;;  %v480_v14 = vsel %vm416_vm1, %v3327_v42, 0.0 }
  0x7d   : > { %v431_v15 = vrot.slane %v430_v6, 2  ;;  %v440_v16 = vrot.slane %v439_v7, 2  ;;  %v457_v17 = vadd.f32 %v456_v8, %v455_v61  ;;  %v465_v18 = vrot.slane %v464_v10, 4 }
  0x7e   : > { %v423_v19 = vadd.f32 %v422_v11, %v421_v63  ;;  %v449_v20 = vrot.slane %v448_v12, 2  ;;  %v473_v21 = vadd.f32 %v472_v13, %v471_v4  ;;  %v481_v22 = vsel %vm416_vm1, %v3329_v43, 0.0  ;;  %v2327_v63 = vld [vmem:[%s3824_s1] ss:$0 sm:$0xff] }
  0x7f   : > { %v432_v23 = vadd.f32 %v431_v15, %v430_v6  ;;  %v441_v24 = vadd.f32 %v440_v16, %v439_v7  ;;  %v458_v25 = vrot.slane %v457_v17, 2  ;;  %v466_v26 = vadd.f32 %v465_v18, %v464_v10 }
  0x80   : > { %v424_v30 = vrot.slane %v423_v19, 1  ;;  %v450_v44 = vadd.f32 %v449_v20, %v448_v12  ;;  %v474_v45 = vrot.slane %v473_v21, 4  ;;  %v482_v46 = vadd.f32 %v481_v22, %v480_v14 }
  0x81   : > { %v433_v47 = vrot.slane %v432_v23, 1  ;;  %v442_v48 = vrot.slane %v441_v24, 1  ;;  %v459_v49 = vadd.f32 %v458_v25, %v457_v17  ;;  %v467_v50 = vrot.slane %v466_v26, 2 }
  0x82   : > { %v425_v51 = vadd.f32 %v424_v30, %v423_v19  ;;  %v451_v52 = vrot.slane %v450_v44, 1  ;;  %v475_v53 = vadd.f32 %v474_v45, %v473_v21  ;;  %v483_v54 = vrot.slane %v482_v46, 4  ;;  %v3369_v19 = vld [vmem:[%s3827_s4] ss:$0 sm:$0xff] }
  0x83   : > { %v434_v55 = vadd.f32 %v433_v47, %v432_v23  ;;  %v443_v56 = vadd.f32 %v442_v48, %v441_v24  ;;  %v460_v57 = vrot.slane %v459_v49, 1  ;;  %v468_v58 = vadd.f32 %v467_v50, %v466_v26  ;;  %641 = vrot.lane.b32.xlu1 %v3369_v19, %s3008_s14  ;;  %849 = vrot.lane.b32.xlu0 %v3369_v19, %s3009_s29 }
  0x84   : > { %v452_v59 = vadd.f32 %v451_v52, %v450_v44  ;;  %v476_v60 = vrot.slane %v475_v53, 2  ;;  %v484_v61 = vadd.f32 %v483_v54, %v482_v46  ;;  %v490_v62 = vmul.f32 0.0625, %v425_v51 }
  0x85   : > { %v461_v2 = vadd.f32 %v460_v57, %v459_v49  ;;  %v469_v3 = vrot.slane %v468_v58, 1  ;;  %v491_v4 = vmul.f32 0.0625, %v434_v55  ;;  %v492_v6 = vmul.f32 0.0625, %v443_v56 }
  0x86   : > { %v477_v7 = vadd.f32 %v476_v60, %v475_v53  ;;  %v485_v8 = vrot.slane %v484_v61, 2  ;;  %v493_v10 = vmul.f32 0.0625, %v452_v59  ;;  %v505_v11 = vadd.f32 %v2327_v63, %v490_v62 }
  0x87   : > { %v470_v12 = vadd.f32 %v469_v3, %v468_v58  ;;  %v494_v13 = vmul.f32 0.0625, %v461_v2  ;;  %v506_v14 = vadd.f32 %v2327_v63, %v491_v4  ;;  %v507_v15 = vadd.f32 %v2327_v63, %v492_v6 }
  0x88   : > { %v478_v16 = vrot.slane %v477_v7, 1  ;;  %v486_v17 = vadd.f32 %v485_v8, %v484_v61  ;;  %v508_v18 = vadd.f32 %v2327_v63, %v493_v10  ;;  %v1105_v8 = vld [vmem:[%s3828_s5 + $0x10] sm:$0xff] }
  0x89   : > { %v495_v20 = vmul.f32 0.0625, %v470_v12  ;;  %v509_v21 = vadd.f32 %v2327_v63, %v494_v13  ;;  %v532_v22 = vrot.slane %v506_v14, 7  ;;  %v535_v23 = vrot.slane %v507_v15, 6 }
  0x8a   : > { %v479_v24 = vadd.f32 %v478_v16, %v477_v7  ;;  %v487_v25 = vrot.slane %v486_v17, 1  ;;  %v538_v26 = vrot.slane %v508_v18, 5  ;;  %v1104_v7 = vld [vmem:[%s3828_s5 + $0x8] sm:$0xff]  ;;  %v3010_v16 = vmov 1966171168  }
  0x8b   : > { %v510_v30 = vadd.f32 %v2327_v63, %v495_v20  ;;  %v534_v44 = vsel %vm533_vm2, %v532_v22, %v505_v11  ;;  %v541_v45 = vrot.slane %v509_v21, 4  ;;  %v1106_v11 = vld [vmem:[%s3828_s5 + $0x18] sm:$0xff]  ;;  %v1002_v18 = vlaneseq }
  0x8c   : > { %v488_v46 = vadd.f32 %v487_v25, %v486_v17  ;;  %v496_v47 = vmul.f32 0.0625, %v479_v24  ;;  %v537_v48 = vsel %vm536_vm3, %v535_v23, %v534_v44  ;;  %v3407_v12 = vpack.c.bf16 %v1106_v11, %v1105_v8 }
  0x8d   : > { %v540_v49 = vsel %vm539_vm4, %v538_v26, %v537_v48  ;;  %v544_v50 = vrot.slane %v510_v30, 3  ;;  %v1000_v17 = vunpack.c.l.s4 %v3010_v16  ;;  %v1003_v21 = vshrl.u32 %v1002_v18, 7 }
  0x8e   : > { %v497_v51 = vmul.f32 0.0625, %v488_v46  ;;  %v511_v52 = vadd.f32 %v2327_v63, %v496_v47  ;;  %v543_v53 = vsel %vm542_vm5, %v541_v45, %v540_v49 }
  0x8f   : > { %v546_v54 = vsel %vm545_vm6, %v544_v50, %v543_v53  ;;  %v1001_v20 = vunpack.c.0.s8 %v1000_v17  ;;  %v3442_v25 = vsub.s32 0, %v1003_v21 }
  0x90   : > { %v512_v55 = vadd.f32 %v2327_v63, %v497_v51  ;;  %v547_v56 = vrot.slane %v511_v52, 2 }
  0x91   : > { %v1004_v22 = vsub.s32 %v1001_v20, %v1003_v21 }
  0x92   : > { %v549_v57 = vsel %vm548_vm7, %v547_v56, %v546_v54  ;;  %v550_v58 = vrot.slane %v512_v55, 1 }
  0x94   : > { %v552_v59 = vsel %vm551_vm8, %v550_v58, %v549_v57 }
  0x95   : > { %2513 = vmatmul.mubr.msk.f32.vlgmr.msra.gmra.mrb[0].mxu0 %vm416_vm1, %v552_v59 }
  0x96   : > { %2555 = vmatprep.mubr.msk.f32.mxu0 %vm416_vm1, %v3296_v27  ;;  %v1103_v27 = vld [vmem:[%s3828_s5] sm:$0xff] }
  0x97   : > { %v2691_v10 = vpack.c.bf16 %v1104_v7, %v1103_v27 }
  0xdf   : > { %v2788_v60 = vpop.permute.xlu0 %2787 }
  0xe0   : > { %v2790_v61 = vunpack.i.h.bf16 %v2788_v60  ;;  %v2789_v62 = vunpack.i.l.bf16 %v2788_v60 }
  0xe2   : > { %v2675_v2 = vpack.c.bf16 %v2790_v61, %v2789_v62 }
  0xe3   : > { %v2793_v3 = vpop.permute.xlu0 %2792 }
  0xe4   : > { %v2795_v4 = vunpack.i.h.bf16 %v2793_v3  ;;  %v2794_v6 = vunpack.i.l.bf16 %v2793_v3  ;;  %2676 = vmatprep.subr.bf16.mxu1 %v2675_v2 }
  0xe5   : > { %2678 = vmatpush3.bf16.msra.mxu1 %v2675_v2 }
  0xe6   : > { %v2679_v63 = vpack.c.bf16 %v2795_v4, %v2794_v6 }
  0xe8   : > { %2680 = vmatprep.subr.bf16.mxu1 %v2679_v63 }
  0xe9   : > { %2682 = vmatpush3.bf16.msra.mxu1 %v2679_v63 }
  0xea   : > { %2692 = vmatprep.subr.bf16.mxu1 %v2691_v10 }
  0xec   : > { %2524 = vmatmul.mubr.msk.f32.vlgmr.msra.gmra.mrb[0].mxu1 %vm416_vm1, %v3303_v31 }
  0xed   : > { %2526 = vmatprep.mubr.msk.f32.mxu1 %vm416_vm1, %v3298_v28  ;;  %2694 = vmatpush3.bf16.msra.mxu1 %v2691_v10 }
  0xee   : > { %2696 = vmatprep.subr.bf16.mxu1 %v3407_v12 }
  0xf0   : > { %2527 = vmatmul.mubr.msk.f32.gmra.mrb[2].mxu1 %vm416_vm1, %v3305_v32 }
  0xf1   : > { %2529 = vmatprep.mubr.msk.f32.mxu1 %vm416_vm1, %v3300_v29  ;;  %2698 = vmatpush3.bf16.msra.mxu1 %v3407_v12 }
  0xf2   : > { %2699 = vmatprep.subr.bf16.mxu1 %v3005_v0 }
  0xf4   : > { %2530 = vmatmul.mubr.msk.f32.gmra.mrb[4].mxu1 %vm416_vm1, %v3307_v33 }
  0xf5   : > { %2532 = vmatprep.mubr.msk.f32.mxu1 %vm416_vm1, %v3309_v34  ;;  %v3440_v23 = vpop.permute.xlu1 %641 }
  0xf8   : > { %2533 = vmatmul.mubr.msk.f32.gmra.mrb[6].mxu1 %vm416_vm1, %v3311_v35 }
  0xf9   : > { %2535 = vmatprep.mubr.msk.f32.mxu1 %vm416_vm1, %v3313_v36 }
  0xfc   : > { %2536 = vmatmul.mubr.msk.f32.gmra.mrb[8].mxu1 %vm416_vm1, %v3315_v37 }
  0xfd   : > { %2538 = vmatprep.mubr.msk.f32.mxu1 %vm416_vm1, %v3317_v38 }
 0x100   : > { %2539 = vmatmul.mubr.msk.f32.gmra.mrb[10].mxu1 %vm416_vm1, %v3321_v39 }
 0x101   : > { %2541 = vmatprep.mubr.msk.f32.mxu1 %vm416_vm1, %v3323_v40 }
 0x104   : > { %2542 = vmatmul.mubr.msk.f32.gmra.mrb[12].mxu1 %vm416_vm1, %v3325_v41 }
 0x105   : > { %2544 = vmatprep.mubr.msk.f32.mxu1 %vm416_vm1, %v3327_v42 }
 0x108   : > { %2545 = vmatmul.mubr.msk.f32.gmra.mrb[14].mxu1 %vm416_vm1, %v3329_v43 }
 0x168   : > { %v621_v13 = vpop.f32.mrb[0].mxu0 }
 0x169   : > { %v3432_v14 = vadd.f32 %v3369_v19, %v621_v13  ;;  %v2514_v15 = vpop.f32.mrb[1].mxu0 }
 0x16b   : > { %1300 = vrot.lane.b32.xlu1 %v3432_v14, %s3008_s14  ;;  %v1005_v5 = vrot.slane %v3432_v14, %v1004_v22  ;;  %v998_v55 = vcombine.high %v3432_v14, %v3432_v14  ;;  %s2928_s14 = scalar_lea.vmem %s3781_s24, 128 }
 0x16c   : > { %p2929_p11 = scmp.ne.s32.totalorder %s3781_s24, %s2928_s14  ;;  %p2936_p9 = scmp.lt.s32.totalorder %s2934_s15, %s2928_s14 }
 0x16d   : > { %v1021_v24 = vrot.slane %v1005_v5, %v1004_v22  ;;  %v1013_v26 = vcombine.high %v1005_v5, %v1005_v5  ;;  %v1012_v3 = vrot.slane %v998_v55, %v1004_v22 }
 0x16e   : > { %p2930_p2 = pnand %p2929_p11, %p3852_p0  ;;  %p2937_p12 = por %p2936_p9, %p2935_p7 }
 0x16f   : > { %2802 = vrot.lane.b32.xlu1 %v3277_v9, %s3009_s29  ;;  %v1050_v44 = vrot.slane %v1021_v24, %v3442_v25  ;;  %v1035_v46 = vrot.slane %v1013_v26, %v1004_v22  ;;  %v1043_v54 = vcombine.high %v1021_v24, %v1021_v24  ;;  %v1028_v11 = vrot.slane %v1012_v3, %v1004_v22 }
 0x170   : > { %v1014_v13 = vcombine.high %v1012_v3, %v1012_v3  ;;  %p2931_p3 = pneg %p2930_p2 }
 0x171   : > { %v1054_v52 = vrot.slane %v1035_v46, %v3442_v25  ;;  %v1058_v61 = vrot.slane %v1043_v54, %v3442_v25  ;;  %v1045_v2 = vcombine.high %v1035_v46, %v1035_v46  ;;  %v1066_v20 = vrot.slane %v1028_v11, %v3442_v25 }
 0x172   : > { %v1042_v5 = vrot.slane %v1014_v13, %v1004_v22  ;;  %v1044_v46 = vcombine.high %v1028_v11, %v1028_v11  ;;  %p2938_p1 = pnand %p2937_p12, %p2931_p3 }
 0x173   : > { %2015 = vrot.lane.b32.xlu1 %v3432_v14, %s3009_s29  ;;  %v1062_v8 = vrot.slane %v1045_v2, %v3442_v25  ;;  %s2211_s29 = scalar_lea.sflag [#allocation4], %s3243_s23 }
 0x1bf   : > { %v2525_v30 = vpop.f32.mrb[0].mxu1 }
 0x1c0   : > { %v764_v19 = vadd.f32 %v2525_v30, %v3440_v23  ;;  %v758_v9 = vpop.f32.mrb[1].mxu1 }
 0x1c1   : > { %v759_v45 = vadd.f32 %v758_v9, %v3440_v23 }
 0x1c2   : > { %v1088_v49 = vmul.f32 %v1050_v44, %v764_v19 }
 0x1c3   : > { %v1087_v47 = vmul.f32 %v1050_v44, %v759_v45  ;;  %v2528_v48 = vpop.f32.mrb[2].mxu1  ;;  %v1070_v44 = vrot.slane %v1042_v5, %v3442_v25 }
 0x1c4   : > { %v774_v50 = vadd.f32 %v2528_v48, %v3440_v23  ;;  %v768_v51 = vpop.f32.mrb[3].mxu1 }
 0x1c5   : > { %v769_v53 = vadd.f32 %v768_v51, %v3440_v23  ;;  %2587 = vmatprep.mubr.msk.f32.mxu1 %vm416_vm1, %v1087_v47  ;;  %v1074_v51 = vrot.slane %v1044_v46, %v3442_v25 }
 0x1c6   : > { %2588 = vmatmul.mubr.msk.f32.vlgmr.msra.gmra.mrb[16].mxu1 %vm416_vm1, %v1088_v49  ;;  %v1090_v58 = vmul.f32 %v1054_v52, %v774_v50 }
 0x1c7   : > { %v1089_v56 = vmul.f32 %v1054_v52, %v769_v53  ;;  %2701 = vmatpush3.bf16.msra.mxu1 %v2691_v10  ;;  %v2531_v57 = vpop.f32.mrb[4].mxu1  ;;  %v1046_v53 = vcombine.high %v1042_v5, %v1042_v5 }
 0x1c8   : > { %v784_v59 = vadd.f32 %v2531_v57, %v3440_v23  ;;  %v778_v60 = vpop.f32.mrb[5].mxu1  ;;  %2702 = vmatprep.subr.bf16.mxu1 %v3005_v0 }
 0x1c9   : > { %v779_v62 = vadd.f32 %v778_v60, %v3440_v23  ;;  %2590 = vmatprep.mubr.msk.f32.mxu1 %vm416_vm1, %v1089_v56 }
 0x1ca   : > { %2591 = vmatmul.mubr.msk.f32.gmra.mrb[18].mxu1 %vm416_vm1, %v1090_v58  ;;  %v1092_v63 = vmul.f32 %v1058_v61, %v784_v59  ;;  %v1078_v59 = vrot.slane %v1046_v53, %v3442_v25 }
 0x1cb   : > { %v1091_v4 = vmul.f32 %v1058_v61, %v779_v62  ;;  %v2534_v6 = vpop.f32.mrb[6].mxu1  ;;  %2704 = vmatpush3.bf16.msra.mxu1 %v3407_v12 }
 0x1cc   : > { %v794_v27 = vadd.f32 %v2534_v6, %v3440_v23  ;;  %v788_v7 = vpop.f32.mrb[7].mxu1  ;;  %2648 = vmatprep.subr.mxu1 %v3007_v1 }
 0x1cd   : > { %v789_v10 = vadd.f32 %v788_v7, %v3440_v23  ;;  %2593 = vmatprep.mubr.msk.f32.mxu1 %vm416_vm1, %v1091_v4 }
 0x1ce   : > { %2594 = vmatmul.mubr.msk.f32.gmra.mrb[20].mxu1 %vm416_vm1, %v1092_v63  ;;  %v1094_v17 = vmul.f32 %v1062_v8, %v794_v27  ;;  %v2798_v63 = vpop.permute.xlu0 %2797 }
 0x1cf   : > { %v1093_v15 = vmul.f32 %v1062_v8, %v789_v10  ;;  %v2537_v16 = vpop.f32.mrb[8].mxu1  ;;  %v2800_v27 = vunpack.i.h.bf16 %v2798_v63  ;;  %v2799_v7 = vunpack.i.l.bf16 %v2798_v63 }
 0x1d0   : > { %v804_v12 = vadd.f32 %v2537_v16, %v3440_v23  ;;  %v798_v18 = vpop.f32.mrb[9].mxu1 }
 0x1d1   : > { %v799_v21 = vadd.f32 %v798_v18, %v3440_v23  ;;  %2596 = vmatprep.mubr.msk.f32.mxu1 %vm416_vm1, %v1093_v15  ;;  %v2683_v10 = vpack.c.bf16 %v2800_v27, %v2799_v7 }
 0x1d2   : > { %2597 = vmatmul.mubr.msk.f32.gmra.mrb[22].mxu1 %vm416_vm1, %v1094_v17  ;;  %v1096_v30 = vmul.f32 %v1066_v20, %v804_v12 }
 0x1d3   : > { %v1095_v24 = vmul.f32 %v1066_v20, %v799_v21  ;;  %v2540_v26 = vpop.f32.mrb[10].mxu1  ;;  %2684 = vmatprep.subr.bf16.mxu0 %v2683_v10 }
 0x1d4   : > { %v814_v19 = vadd.f32 %v2540_v26, %v3440_v23  ;;  %v808_v9 = vpop.f32.mrb[11].mxu1  ;;  %2686 = vmatpush3.bf16.msra.mxu0 %v2683_v10 }
 0x1d5   : > { %v809_v45 = vadd.f32 %v808_v9, %v3440_v23  ;;  %2599 = vmatprep.mubr.msk.f32.mxu1 %vm416_vm1, %v1095_v24 }
 0x1d6   : > { %2600 = vmatmul.mubr.msk.f32.gmra.mrb[24].mxu1 %vm416_vm1, %v1096_v30  ;;  %v1098_v22 = vmul.f32 %v1070_v44, %v814_v19 }
 0x1d7   : > { %v1097_v47 = vmul.f32 %v1070_v44, %v809_v45  ;;  %v2543_v48 = vpop.f32.mrb[12].mxu1 }
 0x1d8   : > { %v824_v49 = vadd.f32 %v2543_v48, %v3440_v23  ;;  %v818_v50 = vpop.f32.mrb[13].mxu1 }
 0x1d9   : > { %v819_v52 = vadd.f32 %v818_v50, %v3440_v23  ;;  %2602 = vmatprep.mubr.msk.f32.mxu1 %vm416_vm1, %v1097_v47 }
 0x1da   : > { %2603 = vmatmul.mubr.msk.f32.gmra.mrb[26].mxu1 %vm416_vm1, %v1098_v22  ;;  %v1100_v56 = vmul.f32 %v1074_v51, %v824_v49 }
 0x1db   : > { %v1099_v54 = vmul.f32 %v1074_v51, %v819_v52  ;;  %v2546_v55 = vpop.f32.mrb[14].mxu1 }
 0x1dc   : > { %v834_v57 = vadd.f32 %v2546_v55, %v3440_v23  ;;  %v828_v58 = vpop.f32.mrb[15].mxu1 }
 0x1dd   : > { %v829_v60 = vadd.f32 %v828_v58, %v3440_v23  ;;  %2605 = vmatprep.mubr.msk.f32.mxu1 %vm416_vm1, %v1099_v54  ;;  %v1301_v2 = vpop.permute.xlu1 %1300 }
 0x1de   : > { %2606 = vmatmul.mubr.msk.f32.gmra.mrb[28].mxu1 %vm416_vm1, %v1100_v56  ;;  %v1102_v62 = vmul.f32 %v1078_v59, %v834_v57  ;;  %v1303_v3 = vmul.f32 %v1301_v2, %v3432_v14  ;;  %v3498_v14 = vld [vmem:[%s3829_s6] sm:$0xf] }
 0x1df   : > { %v1101_v61 = vmul.f32 %v1078_v59, %v829_v60 }
 0x1e1   : > { %2608 = vmatprep.mubr.msk.f32.mxu1 %vm416_vm1, %v1101_v61  ;;  %v2803_v23 = vpop.permute.xlu1 %2802 }
 0x1e2   : > { %2609 = vmatmul.mubr.msk.f32.gmra.mrb[30].mxu1 %vm416_vm1, %v1102_v62  ;;  %v2805_v4 = vunpack.i.h.bf16 %v2803_v23  ;;  %v2804_v6 = vunpack.i.l.bf16 %v2803_v23 }
 0x1e3   : > { %2619 = vmatprep.mubr.msk.f32.mxu1 %vm3006_vm0, %v3007_v1 }
 0x1e4   : > { %v2687_v8 = vpack.c.bf16 %v2805_v4, %v2804_v6 }
 0x1e6   : > { %2620 = vmatmul.mubr.msk.f32.vlgmr.msra.gmra.mrb[32].mxu1 %vm416_vm1, %v1303_v3  ;;  %2688 = vmatprep.subr.bf16.mxu0 %v2687_v8 }
 0x1e7   : > { %2650 = vmatprep.mubr.msk.f32.mxu1 %vm3006_vm0, %v3007_v1  ;;  %2690 = vmatpush3.bf16.msra.mxu0 %v2687_v8 }
 0x1e8   : > { %2622 = vmatprep.subr.msk.mxu0 %vm1718_vm9, %v3498_v14  ;;  %2649 = vmatpush3.msk.msra.mxu1 %vm1718_vm9, %v3498_v14 }
 0x1e9   : > { %2653 = vmatprep.subr.mxu1 %v3007_v1 }
 0x1ea   : > { %2556 = vmatmul.mubr.msk.f32.vlgmr.msra.gmra.mrb[2].mxu0 %vm416_vm1, %v3303_v31 }
 0x1eb   : > { %2623 = vmatpush3.msk.msra.mxu0 %vm1718_vm9, %v3498_v14  ;;  %2558 = vmatprep.mubr.msk.f32.mxu0 %vm416_vm1, %v3298_v28 }
 0x1ec   : > { %2705 = vmatprep.subr.bf16.mxu0 %v3005_v0 }
 0x1ee   : > { %2559 = vmatmul.mubr.msk.f32.gmra.mrb[4].mxu0 %vm416_vm1, %v3305_v32 }
 0x1ef   : > { %2561 = vmatprep.mubr.msk.f32.mxu0 %vm416_vm1, %v3300_v29 }
 0x1f2   : > { %2562 = vmatmul.mubr.msk.f32.gmra.mrb[6].mxu0 %vm416_vm1, %v3307_v33 }
 0x1f3   : > { %2564 = vmatprep.mubr.msk.f32.mxu0 %vm416_vm1, %v3309_v34 }
 0x1f6   : > { %2565 = vmatmul.mubr.msk.f32.gmra.mrb[8].mxu0 %vm416_vm1, %v3311_v35 }
 0x1f7   : > { %2567 = vmatprep.mubr.msk.f32.mxu0 %vm416_vm1, %v3313_v36 }
 0x1fa   : > { %2568 = vmatmul.mubr.msk.f32.gmra.mrb[10].mxu0 %vm416_vm1, %v3315_v37 }
 0x1fb   : > { %2570 = vmatprep.mubr.msk.f32.mxu0 %vm416_vm1, %v3317_v38 }
 0x1fe   : > { %2571 = vmatmul.mubr.msk.f32.gmra.mrb[12].mxu0 %vm416_vm1, %v3321_v39 }
 0x1ff   : > { %2573 = vmatprep.mubr.msk.f32.mxu0 %vm416_vm1, %v3323_v40 }
 0x202   : > { %2574 = vmatmul.mubr.msk.f32.gmra.mrb[14].mxu0 %vm416_vm1, %v3325_v41 }
 0x203   : > { %2576 = vmatprep.mubr.msk.f32.mxu0 %vm416_vm1, %v3327_v42 }
 0x206   : > { %2577 = vmatmul.mubr.msk.f32.gmra.mrb[16].mxu0 %vm416_vm1, %v3329_v43 }
 0x299   : > { %v3538_v28 = vpop.f32.mrb[16].mxu1 }
 0x29a   : > { %v1379_v29 = vsel %vm1377_vm10, %v3538_v28, -inf  ;;  %v3542_v31 = vpop.f32.mrb[17].mxu1 }
 0x29b   : > { %v1378_v32 = vsel %vm1377_vm10, %v3542_v31, -inf }
 0x29c   : > { %v1380_v33 = vmax.f32 %v1378_v32, %v1379_v29 }
 0x29d   : > { %v3546_v34 = vpop.f32.mrb[18].mxu1 }
 0x29e   : > { %v1388_v35 = vsel %vm1377_vm10, %v3546_v34, -inf  ;;  %v3550_v36 = vpop.f32.mrb[19].mxu1  ;;  %v1381_v43 = vrot.slane %v1380_v33, 4 }
 0x29f   : > { %v1387_v37 = vsel %vm1377_vm10, %v3550_v36, -inf }
 0x2a0   : > { %v1389_v38 = vmax.f32 %v1387_v37, %v1388_v35  ;;  %v1382_v20 = vmax.f32 %v1380_v33, %v1381_v43 }
 0x2a1   : > { %v3554_v39 = vpop.f32.mrb[20].mxu1 }
 0x2a2   : > { %v1397_v40 = vsel %vm1377_vm10, %v3554_v39, -inf  ;;  %v3558_v41 = vpop.f32.mrb[21].mxu1  ;;  %v1390_v13 = vrot.slane %v1389_v38, 4  ;;  %v1383_v45 = vrot.slane %v1382_v20, 2 }
 0x2a3   : > { %v1396_v42 = vsel %vm1377_vm10, %v3558_v41, -inf }
 0x2a4   : > { %v1398_v11 = vmax.f32 %v1396_v42, %v1397_v40  ;;  %v1391_v5 = vmax.f32 %v1389_v38, %v1390_v13  ;;  %v1384_v55 = vmax.f32 %v1382_v20, %v1383_v45 }
 0x2a5   : > { %v3562_v15 = vpop.f32.mrb[22].mxu1 }
 0x2a6   : > { %v1399_v16 = vrot.slane %v1398_v11, 4  ;;  %v1406_v17 = vsel %vm1377_vm10, %v3562_v15, -inf  ;;  %v3566_v12 = vpop.f32.mrb[23].mxu1  ;;  %v1392_v48 = vrot.slane %v1391_v5, 2  ;;  %v1385_v6 = vrot.slane %v1384_v55, 1 }
 0x2a7   : > { %v1405_v18 = vsel %vm1377_vm10, %v3566_v12, -inf }
 0x2a8   : > { %v1407_v21 = vmax.f32 %v1405_v18, %v1406_v17  ;;  %v1400_v24 = vmax.f32 %v1398_v11, %v1399_v16  ;;  %v1393_v58 = vmax.f32 %v1391_v5, %v1392_v48  ;;  %v1386_v43 = vmax.f32 %v1384_v55, %v1385_v6 }
 0x2a9   : > { %v3570_v26 = vpop.f32.mrb[24].mxu1 }
 0x2aa   : > { %v1408_v30 = vrot.slane %v1407_v21, 4  ;;  %v1415_v19 = vsel %vm1377_vm10, %v3570_v26, -inf  ;;  %v3574_v9 = vpop.f32.mrb[25].mxu1  ;;  %v1401_v22 = vrot.slane %v1400_v24, 2  ;;  %v1394_v8 = vrot.slane %v1393_v58, 1 }
 0x2ab   : > { %v1414_v44 = vsel %vm1377_vm10, %v3574_v9, -inf }
 0x2ac   : > { %v1409_v46 = vmax.f32 %v1407_v21, %v1408_v30  ;;  %v1416_v47 = vmax.f32 %v1414_v44, %v1415_v19  ;;  %v1402_v59 = vmax.f32 %v1400_v24, %v1401_v22  ;;  %v1395_v17 = vmax.f32 %v1393_v58, %v1394_v8 }
 0x2ad   : > { %v3578_v49 = vpop.f32.mrb[26].mxu1 }
 0x2ae   : > { %v1410_v50 = vrot.slane %v1409_v46, 2  ;;  %v1417_v51 = vrot.slane %v1416_v47, 4  ;;  %v1424_v52 = vsel %vm1377_vm10, %v3578_v49, -inf  ;;  %v3582_v53 = vpop.f32.mrb[27].mxu1  ;;  %v1403_v10 = vrot.slane %v1402_v59, 1 }
 0x2af   : > { %v1423_v54 = vsel %vm1377_vm10, %v3582_v53, -inf }
 0x2b0   : > { %v1418_v56 = vmax.f32 %v1416_v47, %v1417_v51  ;;  %v1425_v57 = vmax.f32 %v1423_v54, %v1424_v52  ;;  %v1411_v60 = vmax.f32 %v1409_v46, %v1410_v50  ;;  %v1404_v18 = vmax.f32 %v1402_v59, %v1403_v10 }
 0x2b1   : > { %v3586_v61 = vpop.f32.mrb[28].mxu1 }
 0x2b2   : > { %v1419_v62 = vrot.slane %v1418_v56, 2  ;;  %v1426_v2 = vrot.slane %v1425_v57, 4  ;;  %v1433_v3 = vsel %vm1377_vm10, %v3586_v61, -inf  ;;  %v3590_v23 = vpop.f32.mrb[29].mxu1  ;;  %v1412_v29 = vrot.slane %v1411_v60, 1 }
 0x2b3   : > { %v1432_v4 = vsel %vm1377_vm10, %v3590_v23, -inf }
 0x2b4   : > { %v1420_v63 = vmax.f32 %v1418_v56, %v1419_v62  ;;  %v1427_v27 = vmax.f32 %v1425_v57, %v1426_v2  ;;  %v1434_v7 = vmax.f32 %v1432_v4, %v1433_v3  ;;  %v1413_v20 = vmax.f32 %v1411_v60, %v1412_v29 }
 0x2b5   : > { %v3594_v32 = vpop.f32.mrb[30].mxu1 }
 0x2b6   : > { %v1421_v33 = vrot.slane %v1420_v63, 1  ;;  %v1428_v35 = vrot.slane %v1427_v27, 2  ;;  %v1435_v37 = vrot.slane %v1434_v7, 4  ;;  %v1442_v38 = vsel %vm1377_vm10, %v3594_v32, -inf  ;;  %v3598_v40 = vpop.f32.mrb[31].mxu1 }
 0x2b7   : > { %v1441_v42 = vsel %vm1377_vm10, %v3598_v40, -inf }
 0x2b8   : > { %v1429_v11 = vmax.f32 %v1427_v27, %v1428_v35  ;;  %v1436_v13 = vmax.f32 %v1434_v7, %v1435_v37  ;;  %v1443_v16 = vmax.f32 %v1441_v42, %v1442_v38  ;;  %v1422_v21 = vmax.f32 %v1420_v63, %v1421_v33 }
 0x2b9   : > { %v3602_v5 = vpop.f32.mrb[32].mxu1 }
 0x2ba   : > { %v1430_v24 = vrot.slane %v1429_v11, 1  ;;  %v1437_v30 = vrot.slane %v1436_v13, 2  ;;  %v1444_v19 = vrot.slane %v1443_v16, 4  ;;  %v1451_v44 = vrot.slane %v3602_v5, 1  ;;  %v2621_v45 = vpop.f32.mrb[33].mxu1 }
 0x2bb   : > { %v1452_v46 = vrot.slane %v3602_v5, 2  ;;  %v1453_v47 = vrot.slane %v3602_v5, 3  ;;  %v1454_v48 = vrot.slane %v3602_v5, 4  ;;  %v1455_v22 = vrot.slane %v3602_v5, 5 }
 0x2bc   : > { %v1431_v50 = vmax.f32 %v1429_v11, %v1430_v24  ;;  %v1438_v51 = vmax.f32 %v1436_v13, %v1437_v30  ;;  %v1445_v52 = vmax.f32 %v1443_v16, %v1444_v19  ;;  %v1456_v54 = vrot.slane %v3602_v5, 6 }
 0x2bd   : > { %v1457_v55 = vrot.slane %v3602_v5, 7  ;;  %v1466_v56 = vmax.f32 %v1386_v43, %v3602_v5  ;;  %v1467_v57 = vmax.f32 %v1395_v17, %v1451_v44  ;;  %v3612_v58 = vmax.f32 %v1404_v18, %v1452_v46 }
 0x2be   : > { %v1439_v59 = vrot.slane %v1438_v51, 1  ;;  %v1446_v60 = vrot.slane %v1445_v52, 2  ;;  %v3614_v62 = vmax.f32 %v1413_v20, %v1453_v47  ;;  %v3616_v2 = vmax.f32 %v1422_v21, %v1454_v48 }
 0x2bf   : > { %v3618_v3 = vmax.f32 %v1431_v50, %v1455_v22  ;;  %v1477_v4 = vrot.slane %v1466_v56, %v3442_v25  ;;  %v1481_v6 = vrot.slane %v1467_v57, %v3442_v25  ;;  %v1485_v63 = vrot.slane %v3612_v58, %v3442_v25 }
 0x2c0   : > { %v1440_v27 = vmax.f32 %v1438_v51, %v1439_v59  ;;  %v1447_v7 = vmax.f32 %v1445_v52, %v1446_v60  ;;  %v1489_v8 = vrot.slane %v3614_v62, %v3442_v25  ;;  %v1493_v10 = vrot.slane %v3616_v2, %v3442_v25 }
 0x2c1   : > { %v1497_v29 = vrot.slane %v3618_v3, %v3442_v25  ;;  %v1506_v33 = vsub.f32 %v3542_v31, %v1477_v4  ;;  %v1507_v35 = vsub.f32 %v3538_v28, %v1477_v4  ;;  %v1508_v37 = vsub.f32 %v3550_v36, %v1481_v6 }
 0x2c2   : > { %v1448_v38 = vrot.slane %v1447_v7, 1  ;;  %v1472_v42 = vmax.f32 %v1440_v27, %v1456_v54  ;;  %v1509_v43 = vsub.f32 %v3546_v34, %v1481_v6  ;;  %v1510_v11 = vsub.f32 %v3558_v41, %v1485_v63 }
 0x2c3   : > { %v1511_v13 = vsub.f32 %v3554_v39, %v1485_v63  ;;  %v1512_v16 = vsub.f32 %v3566_v12, %v1489_v8  ;;  %v1513_v17 = vsub.f32 %v3562_v15, %v1489_v8  ;;  %v1514_v18 = vsub.f32 %v3574_v9, %v1493_v10 }
 0x2c4   : > { %v1449_v20 = vmax.f32 %v1447_v7, %v1448_v38  ;;  %v1501_v31 = vrot.slane %v1472_v42, %v3442_v25  ;;  %v1515_v28 = vsub.f32 %v3570_v26, %v1493_v10  ;;  %v1516_v36 = vsub.f32 %v3582_v53, %v1497_v29 }
 0x2c5   : > { %v1517_v21 = vsub.f32 %v3578_v49, %v1497_v29  ;;  %v1522_v34 = vmul.f32 1.442695, %v1506_v33  ;;  %v1524_v24 = vmul.f32 1.442695, %v1507_v35  ;;  %v1526_v41 = vmul.f32 1.442695, %v1508_v37 }
 0x2c6   : > { %v1473_v30 = vmax.f32 %v1449_v20, %v1457_v55  ;;  %v1518_v39 = vsub.f32 %v3590_v23, %v1501_v31  ;;  %v1519_v12 = vsub.f32 %v3586_v61, %v1501_v31  ;;  %v1528_v15 = vmul.f32 1.442695, %v1509_v43 }
 0x2c7   : > { %2806 = vpow2.f32 %v1522_v34  ;;  %v1530_v9 = vmul.f32 1.442695, %v1510_v11  ;;  %v1532_v44 = vmul.f32 1.442695, %v1511_v13  ;;  %v1534_v26 = vmul.f32 1.442695, %v1512_v16 }
 0x2c8   : > { %v1505_v19 = vrot.slane %v1473_v30, %v3442_v25  ;;  %2808 = vpow2.f32 %v1524_v24  ;;  %v1536_v45 = vmul.f32 1.442695, %v1513_v17  ;;  %v1538_v46 = vmul.f32 1.442695, %v1514_v18 }
 0x2c9   : > { %2810 = vpow2.f32 %v1526_v41  ;;  %v1562_v23 = vrot.slane %v1467_v57, 7  ;;  %v1564_v61 = vrot.slane %v3612_v58, 6  ;;  %v1540_v47 = vmul.f32 1.442695, %v1515_v28 }
 0x2ca   : > { %v1520_v53 = vsub.f32 %v3598_v40, %v1505_v19  ;;  %v1521_v49 = vsub.f32 %v3594_v32, %v1505_v19  ;;  %2812 = vpow2.f32 %v1528_v15  ;;  %v1542_v48 = vmul.f32 1.442695, %v1516_v36 }
 0x2cb   : > { %2814 = vpow2.f32 %v1530_v9  ;;  %v1544_v22 = vmul.f32 1.442695, %v1517_v21  ;;  %v1546_v25 = vmul.f32 1.442695, %v1518_v39  ;;  %v1563_v50 = vsel %vm533_vm2, %v1562_v23, %v1466_v56 }
 0x2cc   : > { %2816 = vpow2.f32 %v1532_v44  ;;  %v1566_v51 = vrot.slane %v3614_v62, 5  ;;  %v1565_v32 = vsel %vm536_vm3, %v1564_v61, %v1563_v50  ;;  %v1568_v40 = vrot.slane %v3616_v2, 4 }
 0x2cd   : > { %2818 = vpow2.f32 %v1534_v26  ;;  %v1572_v52 = vrot.slane %v1472_v42, 2  ;;  %v1570_v55 = vrot.slane %v3618_v3, 3  ;;  %v1574_v57 = vrot.slane %v1473_v30, 1 }
 0x2ce   : > { %2820 = vpow2.f32 %v1536_v45  ;;  %v1567_v54 = vsel %vm539_vm4, %v1566_v51, %v1565_v32  ;;  %v1548_v58 = vmul.f32 1.442695, %v1519_v12  ;;  %v1550_v56 = vmul.f32 1.442695, %v1520_v53 }
 0x2cf   : > { %2822 = vpow2.f32 %v1538_v46  ;;  %v1569_v59 = vsel %vm542_vm5, %v1568_v40, %v1567_v54  ;;  %v1552_v6 = vmul.f32 1.442695, %v1521_v49 }
 0x2d0   : > { %2824 = vpow2.f32 %v1540_v47  ;;  %v1571_v62 = vsel %vm545_vm6, %v1570_v55, %v1569_v59 }
 0x2d1   : > { %v2807_v60 = vpop.eup %2806  ;;  %2826 = vpow2.f32 %v1542_v48  ;;  %v1573_v2 = vsel %vm548_vm7, %v1572_v52, %v1571_v62 }
 0x2d2   : > { %v2809_v4 = vpop.eup %2808  ;;  %2828 = vpow2.f32 %v1544_v22  ;;  %v1580_v63 = vsel %vm1377_vm10, %v2807_v60, 0.0  ;;  %2624 = vmatprep.mubr.msk.f32.mxu0 %vm1377_vm10, %v2807_v60  ;;  %v1575_v27 = vsel %vm551_vm8, %v1574_v57, %v1573_v2 }
 0x2d3   : > { %v2811_v3 = vpop.eup %2810  ;;  %2830 = vpow2.f32 %v1546_v25  ;;  %v1581_v7 = vsel %vm1377_vm10, %v2809_v4, 0.0  ;;  %2625 = vmatmul.mubr.msk.f32.vlgmr.msra.gmra.mrb[18].mxu0 %vm1377_vm10, %v2809_v4  ;;  %v1577_v10 = vsub.f32 %v3602_v5, %v1575_v27 }
 0x2d4   : > { %v2813_v8 = vpop.eup %2812  ;;  %2832 = vpow2.f32 %v1548_v58  ;;  %v1582_v29 = vadd.f32 %v1581_v7, %v1580_v63  ;;  %v1589_v33 = vsel %vm1377_vm10, %v2811_v3, 0.0  ;;  %2627 = vmatprep.mubr.msk.f32.mxu0 %vm1377_vm10, %v2811_v3 }
 0x2d5   : > { %v2815_v35 = vpop.eup %2814  ;;  %2834 = vpow2.f32 %v1550_v56  ;;  %v1590_v37 = vsel %vm1377_vm10, %v2813_v8, 0.0  ;;  %v1578_v42 = vmul.f32 1.442695, %v1577_v10 }
 0x2d6   : > { %v2817_v38 = vpop.eup %2816  ;;  %2836 = vpow2.f32 %v1552_v6  ;;  %v1583_v43 = vrot.slane %v1582_v29, 4  ;;  %v1591_v11 = vadd.f32 %v1590_v37, %v1589_v33  ;;  %v1598_v16 = vsel %vm1377_vm10, %v2815_v35, 0.0 }
 0x2d7   : > { %v2819_v13 = vpop.eup %2818  ;;  %v1599_v17 = vsel %vm1377_vm10, %v2817_v38, 0.0  ;;  %2628 = vmatmul.mubr.msk.f32.gmra.mrb[20].mxu0 %vm1377_vm10, %v2813_v8  ;;  %2838 = vpow2.f32 %v1578_v42 }
 0x2d8   : > { %v2821_v5 = vpop.eup %2820  ;;  %v1584_v18 = vadd.f32 %v1583_v43, %v1582_v29  ;;  %v1592_v20 = vrot.slane %v1591_v11, 4  ;;  %v1600_v31 = vadd.f32 %v1599_v17, %v1598_v16  ;;  %2630 = vmatprep.mubr.msk.f32.mxu0 %vm1377_vm10, %v2815_v35  ;;  %v1607_v36 = vsel %vm1377_vm10, %v2819_v13, 0.0 }
 0x2d9   : > { %v2823_v28 = vpop.eup %2822  ;;  %v1608_v21 = vsel %vm1377_vm10, %v2821_v5, 0.0 }
 0x2da   : > { %v2825_v34 = vpop.eup %2824  ;;  %v1585_v24 = vrot.slane %v1584_v18, 2  ;;  %v1593_v41 = vadd.f32 %v1592_v20, %v1591_v11  ;;  %v1601_v30 = vrot.slane %v1600_v31, 4  ;;  %v1609_v39 = vadd.f32 %v1608_v21, %v1607_v36 }
 0x2db   : > { %v2827_v12 = vpop.eup %2826  ;;  %v1616_v15 = vsel %vm1377_vm10, %v2823_v28, 0.0  ;;  %v1617_v9 = vsel %vm1377_vm10, %v2825_v34, 0.0  ;;  %2631 = vmatmul.mubr.msk.f32.gmra.mrb[22].mxu0 %vm1377_vm10, %v2817_v38 }
 0x2dc   : > { %v2829_v19 = vpop.eup %2828  ;;  %v1586_v44 = vadd.f32 %v1585_v24, %v1584_v18  ;;  %v1594_v26 = vrot.slane %v1593_v41, 2  ;;  %v1602_v53 = vadd.f32 %v1601_v30, %v1600_v31  ;;  %v1610_v49 = vrot.slane %v1609_v39, 4  ;;  %2633 = vmatprep.mubr.msk.f32.mxu0 %vm1377_vm10, %v2819_v13 }
 0x2dd   : > { %v2831_v45 = vpop.eup %2830  ;;  %v1618_v46 = vadd.f32 %v1617_v9, %v1616_v15  ;;  %v1625_v23 = vsel %vm1377_vm10, %v2827_v12, 0.0  ;;  %v1626_v61 = vsel %vm1377_vm10, %v2829_v19, 0.0 }
 0x2de   : > { %v2833_v47 = vpop.eup %2832  ;;  %v1587_v48 = vrot.slane %v1586_v44, 1  ;;  %v1595_v22 = vadd.f32 %v1594_v26, %v1593_v41  ;;  %v1603_v25 = vrot.slane %v1602_v53, 2  ;;  %v1611_v50 = vadd.f32 %v1610_v49, %v1609_v39 }
 0x2df   : > { %v2835_v51 = vpop.eup %2834  ;;  %v1619_v32 = vrot.slane %v1618_v46, 4  ;;  %v1627_v40 = vadd.f32 %v1626_v61, %v1625_v23  ;;  %v1634_v52 = vsel %vm1377_vm10, %v2831_v45, 0.0  ;;  %v1635_v54 = vsel %vm1377_vm10, %v2833_v47, 0.0  ;;  %2634 = vmatmul.mubr.msk.f32.gmra.mrb[24].mxu0 %vm1377_vm10, %v2821_v5 }
 0x2e0   : > { %v2837_v55 = vpop.eup %2836  ;;  %v1588_v57 = vadd.f32 %v1587_v48, %v1586_v44  ;;  %v1596_v58 = vrot.slane %v1595_v22, 1  ;;  %v1604_v59 = vadd.f32 %v1603_v25, %v1602_v53  ;;  %v1612_v60 = vrot.slane %v1611_v50, 2  ;;  %2636 = vmatprep.mubr.msk.f32.mxu0 %vm1377_vm10, %v2823_v28 }
 0x2e1   : > { %v1620_v56 = vadd.f32 %v1619_v32, %v1618_v46  ;;  %v1628_v62 = vrot.slane %v1627_v40, 4  ;;  %v1636_v4 = vadd.f32 %v1635_v54, %v1634_v52  ;;  %v1643_v6 = vsel %vm1377_vm10, %v2835_v51, 0.0  ;;  %v2839_v2 = vpop.eup %2838 }
 0x2e2   : > { %v1597_v63 = vadd.f32 %v1596_v58, %v1595_v22  ;;  %v1605_v3 = vrot.slane %v1604_v59, 1  ;;  %v1613_v27 = vadd.f32 %v1612_v60, %v1611_v50  ;;  %v1644_v7 = vsel %vm1377_vm10, %v2837_v55, 0.0  ;;  %2651 = vmatmul.mubr.msk.f32.vlgmr.msra.gmra.mrb[34].mxu1 %vm1377_vm10, %v2839_v2  ;;  %v2126_v58 = vld [vmem:[#allocation7 + $0x8] sm:$0xff]  ;;  %v2127_v60 = vld [vmem:[#allocation7 + $0x10] sm:$0xff] }
 0x2e3   : > { %v1621_v8 = vrot.slane %v1620_v56, 2  ;;  %v1629_v10 = vadd.f32 %v1628_v62, %v1627_v40  ;;  %v1637_v29 = vrot.slane %v1636_v4, 4  ;;  %v1645_v33 = vadd.f32 %v1644_v7, %v1643_v6  ;;  %2637 = vmatmul.mubr.msk.f32.gmra.mrb[26].mxu0 %vm1377_vm10, %v2825_v34  ;;  %2654 = vmatpush3.msk.msra.mxu1 %vm1718_vm9, %v3498_v14 }
 0x2e4   : > { %v1606_v35 = vadd.f32 %v1605_v3, %v1604_v59  ;;  %v1614_v37 = vrot.slane %v1613_v27, 1  ;;  %v1660_v38 = vsel %vm533_vm2, %v1597_v63, %v1588_v57  ;;  %2639 = vmatprep.mubr.msk.f32.mxu0 %vm1377_vm10, %v2827_v12  ;;  %2655 = vmatprep.mubr.msk.f32.mxu1 %vm3006_vm0, %v3007_v1  ;;  %v2125_v57 = vld [vmem:[#allocation7] sm:$0xff] }
 0x2e5   : > { %v1622_v42 = vadd.f32 %v1621_v8, %v1620_v56  ;;  %v1630_v43 = vrot.slane %v1629_v10, 2  ;;  %v1638_v11 = vadd.f32 %v1637_v29, %v1636_v4  ;;  %v1646_v13 = vrot.slane %v1645_v33, 4  ;;  %v2128_v56 = vld [vmem:[#allocation7 + $0x18] sm:$0xff]  ;;  %v3720_v4 = vpop.permute.xlu0 %849 }
 0x2e6   : > { %v1615_v16 = vadd.f32 %v1614_v37, %v1613_v27  ;;  %v1661_v17 = vsel %vm536_vm3, %v1606_v35, %v1660_v38  ;;  %v2706_v59 = vpack.c.bf16 %v2126_v58, %v2125_v57  ;;  %v2709_v62 = vpack.c.bf16 %v2128_v56, %v2127_v60 }
 0x2e7   : > { %v1623_v5 = vrot.slane %v1622_v42, 1  ;;  %v1631_v18 = vadd.f32 %v1630_v43, %v1629_v10  ;;  %v1639_v20 = vrot.slane %v1638_v11, 2  ;;  %v1647_v31 = vadd.f32 %v1646_v13, %v1645_v33  ;;  %2640 = vmatmul.mubr.msk.f32.gmra.mrb[28].mxu0 %vm1377_vm10, %v2829_v19 }
 0x2e8   : > { %v1662_v28 = vsel %vm539_vm4, %v1615_v16, %v1661_v17  ;;  %2642 = vmatprep.mubr.msk.f32.mxu0 %vm1377_vm10, %v2831_v45  ;;  %v2557_v45 = vpop.f32.mrb[2].mxu0  ;;  %2707 = vmatpush3.bf16.msra.mxu0 %v2706_v59 }
 0x2e9   : > { %v1624_v14 = vadd.f32 %v1623_v5, %v1622_v42  ;;  %v1632_v36 = vrot.slane %v1631_v18, 1  ;;  %v1640_v21 = vadd.f32 %v1639_v20, %v1638_v11  ;;  %v1648_v34 = vrot.slane %v1647_v31, 2  ;;  %v918_v46 = vpop.f32.mrb[3].mxu0  ;;  %2708 = vmatprep.subr.bf16.mxu0 %v3005_v0 }
 0x2ea   : > { %v2560_v23 = vpop.f32.mrb[4].mxu0  ;;  %v924_v6 = vadd.f32 %v2557_v45, %v3720_v4 }
 0x2eb   : > { %v1633_v24 = vadd.f32 %v1632_v36, %v1631_v18  ;;  %v1641_v41 = vrot.slane %v1640_v21, 1  ;;  %v1649_v30 = vadd.f32 %v1648_v34, %v1647_v31  ;;  %v1663_v39 = vsel %vm542_vm5, %v1624_v14, %v1662_v28  ;;  %2643 = vmatmul.mubr.msk.f32.gmra.mrb[30].mxu0 %vm1377_vm10, %v2833_v47  ;;  %v928_v61 = vpop.f32.mrb[5].mxu0 }
 0x2ec   : > { %2645 = vmatprep.mubr.msk.f32.mxu0 %vm1377_vm10, %v2835_v51  ;;  %v2563_v47 = vpop.f32.mrb[6].mxu0  ;;  %2710 = vmatpush3.bf16.msra.mxu0 %v2709_v62  ;;  %v934_v8 = vadd.f32 %v2560_v23, %v3720_v4  ;;  %v929_v0 = vadd.f32 %v928_v61, %v3720_v4 }
 0x2ed   : > { %v1642_v12 = vadd.f32 %v1641_v41, %v1640_v21  ;;  %v1650_v15 = vrot.slane %v1649_v30, 1  ;;  %v1664_v9 = vsel %vm545_vm6, %v1633_v24, %v1663_v39  ;;  %v938_v48 = vpop.f32.mrb[7].mxu0  ;;  %v944_v43 = vadd.f32 %v2563_v47, %v3720_v4 }
 0x2ee   : > { %v2566_v22 = vpop.f32.mrb[8].mxu0  ;;  %v939_v16 = vadd.f32 %v938_v48, %v3720_v4 }
 0x2ef   : > { %v1651_v19 = vadd.f32 %v1650_v15, %v1649_v30  ;;  %v1665_v44 = vsel %vm548_vm7, %v1642_v12, %v1664_v9  ;;  %2646 = vmatmul.mubr.msk.f32.gmra.mrb[32].mxu0 %vm1377_vm10, %v2837_v55  ;;  %v948_v25 = vpop.f32.mrb[9].mxu0  ;;  %v954_v36 = vadd.f32 %v2566_v22, %v3720_v4 }
 0x2f0   : > { %2666 = vmatprep.mubr.msk.f32.mxu0 %vm3006_vm0, %v3007_v1  ;;  %v2569_v50 = vpop.f32.mrb[10].mxu0  ;;  %v949_v41 = vadd.f32 %v948_v25, %v3720_v4 }
 0x2f1   : > { %v1666_v26 = vsel %vm551_vm8, %v1651_v19, %v1665_v44  ;;  %v958_v51 = vpop.f32.mrb[11].mxu0 }
 0x2f2   : > { %v1668_v53 = vadd.f32 %v2839_v2, %v1666_v26  ;;  %v3707_v32 = vpop.f32.mrb[12].mxu0  ;;  %v919_v2 = vadd.f32 %v918_v46, %v3720_v4  ;;  %v964_v46 = vadd.f32 %v2569_v50, %v3720_v4  ;;  %v959_v23 = vadd.f32 %v958_v51, %v3720_v4 }
 0x2f3   : > { %v3709_v1 = vpop.f32.mrb[13].mxu0 }
 0x2f4   : > { %2840 = vrcp.f32 %v1668_v53  ;;  %v3711_v40 = vpop.f32.mrb[14].mxu0  ;;  %v969_v50 = vadd.f32 %v3709_v1, %v3720_v4 }
 0x2f5   : > { %v3713_v52 = vpop.f32.mrb[15].mxu0 }
 0x2f6   : > { %v3715_v54 = vpop.f32.mrb[16].mxu0 }
 0x2f7   : > { %v3717_v55 = vpop.f32.mrb[17].mxu0 }
 0x2fe   : > { %v2841_v49 = vpop.eup %2840 }
 0x2ff   : > { %2656 = vmatmul.mubr.msk.f32.vlgmr.msra.gmra.mrb[36].mxu1 %vm1377_vm10, %v2841_v49 }
 0x3a6   : > { %v2626_v63 = vpop.f32.mrb[18].mxu0 }
 0x3a7   : > { %v2020_v3 = vmul.f32 %v2626_v63, %v924_v6  ;;  %v1788_v27 = vpop.f32.mrb[19].mxu0  ;;  %v974_v6 = vadd.f32 %v3707_v32, %v3720_v4  ;;  %v984_v32 = vadd.f32 %v3711_v40, %v3720_v4 }
 0x3a8   : > { %v2019_v7 = vmul.f32 %v1788_v27, %v919_v2 }
 0x3a9   : > { %v2036_v10 = vsel %vm416_vm1, %v2020_v3, 0.0 }
 0x3aa   : > { %v2035_v29 = vsel %vm416_vm1, %v2019_v7, 0.0  ;;  %v2629_v33 = vpop.f32.mrb[20].mxu0 }
 0x3ab   : > { %v2037_v35 = vadd.f32 %v2036_v10, %v2035_v29  ;;  %v2022_v37 = vmul.f32 %v2629_v33, %v934_v8  ;;  %v1798_v38 = vpop.f32.mrb[21].mxu0 }
 0x3ac   : > { %v2021_v42 = vmul.f32 %v1798_v38, %v929_v0 }
 0x3ad   : > { %v2038_v11 = vrot.slane %v2037_v35, 4  ;;  %v2045_v13 = vsel %vm416_vm1, %v2022_v37, 0.0 }
 0x3ae   : > { %v2044_v17 = vsel %vm416_vm1, %v2021_v42, 0.0  ;;  %v2632_v5 = vpop.f32.mrb[22].mxu0 }
 0x3af   : > { %v2039_v18 = vadd.f32 %v2038_v11, %v2037_v35  ;;  %v2046_v20 = vadd.f32 %v2045_v13, %v2044_v17  ;;  %v2024_v31 = vmul.f32 %v2632_v5, %v944_v43  ;;  %v1808_v28 = vpop.f32.mrb[23].mxu0  ;;  %v979_v13 = vadd.f32 %v3713_v52, %v3720_v4 }
 0x3b0   : > { %v2023_v14 = vmul.f32 %v1808_v28, %v939_v16 }
 0x3b1   : > { %v2040_v21 = vrot.slane %v2039_v18, 2  ;;  %v2047_v34 = vrot.slane %v2046_v20, 4  ;;  %v2054_v24 = vsel %vm416_vm1, %v2024_v31, 0.0 }
 0x3b2   : > { %v2053_v30 = vsel %vm416_vm1, %v2023_v14, 0.0  ;;  %v2635_v39 = vpop.f32.mrb[24].mxu0  ;;  %v994_v14 = vadd.f32 %v3715_v54, %v3720_v4 }
 0x3b3   : > { %v2041_v12 = vadd.f32 %v2040_v21, %v2039_v18  ;;  %v2048_v15 = vadd.f32 %v2047_v34, %v2046_v20  ;;  %v2055_v9 = vadd.f32 %v2054_v24, %v2053_v30  ;;  %v2026_v19 = vmul.f32 %v2635_v39, %v954_v36  ;;  %v1818_v44 = vpop.f32.mrb[25].mxu0 }
 0x3b4   : > { %v2025_v26 = vmul.f32 %v1818_v44, %v949_v41  ;;  %v989_v30 = vadd.f32 %v3717_v55, %v3720_v4 }
 0x3b5   : > { %v2049_v53 = vrot.slane %v2048_v15, 2  ;;  %v2056_v49 = vrot.slane %v2055_v9, 4  ;;  %v2063_v45 = vsel %vm416_vm1, %v2026_v19, 0.0  ;;  %v2042_v61 = vrot.slane %v2041_v12, 1  ;;  %v3739_v47 = vpop.f32.mrb[34].mxu1 }
 0x3b6   : > { %v2062_v48 = vsel %vm416_vm1, %v2025_v26, 0.0  ;;  %v2638_v22 = vpop.f32.mrb[26].mxu0  ;;  %v2652_v58 = vpop.f32.mrb[35].mxu1 }
 0x3b7   : > { %v2050_v25 = vadd.f32 %v2049_v53, %v2048_v15  ;;  %v2057_v57 = vadd.f32 %v2056_v49, %v2055_v9  ;;  %v1828_v59 = vpop.f32.mrb[27].mxu0  ;;  %v2064_v60 = vadd.f32 %v2063_v45, %v2062_v48  ;;  %v2028_v56 = vmul.f32 %v2638_v22, %v964_v46 }
 0x3b8   : > { %v2027_v62 = vmul.f32 %v1828_v59, %v959_v23  ;;  %v2043_v63 = vadd.f32 %v2042_v61, %v2041_v12 }
 0x3b9   : > { %v2051_v51 = vrot.slane %v2050_v25, 1  ;;  %v2058_v2 = vrot.slane %v2057_v57, 2  ;;  %v2065_v3 = vrot.slane %v2064_v60, 4  ;;  %v2072_v27 = vsel %vm416_vm1, %v2028_v56, 0.0 }
 0x3ba   : > { %v2071_v7 = vsel %vm416_vm1, %v2027_v62, 0.0  ;;  %v2641_v8 = vpop.f32.mrb[28].mxu0 }
 0x3bb   : > { %v2052_v10 = vadd.f32 %v2051_v51, %v2050_v25  ;;  %v2059_v0 = vadd.f32 %v2058_v2, %v2057_v57  ;;  %v2073_v29 = vadd.f32 %v2072_v27, %v2071_v7  ;;  %v2030_v33 = vmul.f32 %v2641_v8, %v974_v6  ;;  %v1838_v35 = vpop.f32.mrb[29].mxu0 }
 0x3bc   : > { %v2066_v37 = vadd.f32 %v2065_v3, %v2064_v60  ;;  %v2029_v38 = vmul.f32 %v1838_v35, %v969_v50 }
 0x3bd   : > { %v2115_v1 = vsel %vm533_vm2, %v2052_v10, %v2043_v63  ;;  %v2060_v42 = vrot.slane %v2059_v0, 1  ;;  %v2074_v43 = vrot.slane %v2073_v29, 4  ;;  %v2081_v11 = vsel %vm416_vm1, %v2030_v33, 0.0 }
 0x3be   : > { %v2067_v16 = vrot.slane %v2066_v37, 2  ;;  %v2080_v17 = vsel %vm416_vm1, %v2029_v38, 0.0  ;;  %v2644_v5 = vpop.f32.mrb[30].mxu0 }
 0x3bf   : > { %v2061_v18 = vadd.f32 %v2060_v42, %v2059_v0  ;;  %v2075_v20 = vadd.f32 %v2074_v43, %v2073_v29  ;;  %v2082_v31 = vadd.f32 %v2081_v11, %v2080_v17  ;;  %v2032_v28 = vmul.f32 %v2644_v5, %v984_v32  ;;  %v1848_v40 = vpop.f32.mrb[31].mxu0  ;;  %v2016_v0 = vpop.permute.xlu1 %2015 }
 0x3c0   : > { %v2068_v36 = vadd.f32 %v2067_v16, %v2066_v37  ;;  %v2031_v21 = vmul.f32 %v1848_v40, %v979_v13  ;;  %v2018_v35 = vmul.f32 %v2016_v0, %v3739_v47 }
 0x3c1   : > { %v2116_v34 = vsel %vm536_vm3, %v2061_v18, %v2115_v1  ;;  %v2076_v24 = vrot.slane %v2075_v20, 2  ;;  %v2083_v41 = vrot.slane %v2082_v31, 4  ;;  %v2090_v52 = vsel %vm416_vm1, %v2032_v28, 0.0  ;;  %v2400_v1 = vld [vmem:[%s3831_s8] ss:$0 sm:$0xff] }
 0x3c2   : > { %v2069_v39 = vrot.slane %v2068_v36, 1  ;;  %v2089_v12 = vsel %vm416_vm1, %v2031_v21, 0.0  ;;  %v2647_v15 = vpop.f32.mrb[32].mxu0 }
 0x3c3   : > { %v2077_v9 = vadd.f32 %v2076_v24, %v2075_v20  ;;  %v2084_v19 = vadd.f32 %v2083_v41, %v2082_v31  ;;  %v2091_v44 = vadd.f32 %v2090_v52, %v2089_v12  ;;  %v2034_v26 = vmul.f32 %v2647_v15, %v994_v14  ;;  %v1858_v54 = vpop.f32.mrb[33].mxu0 }
 0x3c4   : > { %v2070_v53 = vadd.f32 %v2069_v39, %v2068_v36  ;;  %v2033_v49 = vmul.f32 %v1858_v54, %v989_v30 }
 0x3c5   : > { %v2078_v45 = vrot.slane %v2077_v9, 1  ;;  %v2085_v46 = vrot.slane %v2084_v19, 2  ;;  %v2092_v23 = vrot.slane %v2091_v44, 4  ;;  %v2099_v61 = vsel %vm416_vm1, %v2034_v26, 0.0 }
 0x3c6   : > { %v2098_v48 = vsel %vm416_vm1, %v2033_v49, 0.0  ;;  %v2117_v55 = vsel %vm539_vm4, %v2070_v53, %v2116_v34 }
 0x3c7   : > { %v2079_v4 = vadd.f32 %v2078_v45, %v2077_v9  ;;  %v2086_v22 = vadd.f32 %v2085_v46, %v2084_v19  ;;  %v2093_v25 = vadd.f32 %v2092_v23, %v2091_v44  ;;  %v2100_v57 = vadd.f32 %v2099_v61, %v2098_v48 }
 0x3c9   : > { %v2087_v58 = vrot.slane %v2086_v22, 1  ;;  %v2094_v59 = vrot.slane %v2093_v25, 2  ;;  %v2101_v60 = vrot.slane %v2100_v57, 4  ;;  %v2118_v56 = vsel %vm542_vm5, %v2079_v4, %v2117_v55 }
 0x3cb   : > { %v2088_v62 = vadd.f32 %v2087_v58, %v2086_v22  ;;  %v2095_v6 = vadd.f32 %v2094_v59, %v2093_v25  ;;  %v2102_v50 = vadd.f32 %v2101_v60, %v2100_v57 }
 0x3cd   : > { %v2096_v51 = vrot.slane %v2095_v6, 1  ;;  %v2103_v2 = vrot.slane %v2102_v50, 2  ;;  %v2119_v63 = vsel %vm545_vm6, %v2088_v62, %v2118_v56 }
 0x3cf   : > { %v2097_v3 = vadd.f32 %v2096_v51, %v2095_v6  ;;  %v2104_v27 = vadd.f32 %v2103_v2, %v2102_v50 }
 0x3d1   : > { %v2105_v7 = vrot.slane %v2104_v27, 1  ;;  %v2120_v8 = vsel %vm548_vm7, %v2097_v3, %v2119_v63 }
 0x3d2   : > { %v2011_v10 = vpop.f32.mrb[36].mxu1 }
 0x3d3   : > { %v2106_v29 = vadd.f32 %v2105_v7, %v2104_v27  ;;  %v2657_v33 = vpop.f32.mrb[37].mxu1 }
 0x3d5   : > { %v2121_v32 = vsel %vm551_vm8, %v2106_v29, %v2120_v8 }
 0x3d6   : > { %v2123_v37 = vadd.f32 %v2121_v32, %v2018_v35 }
 0x3d8   : > { %v2124_v38 = vmul.f32 %v2123_v37, %v2011_v10 }
 0x3da   : > { %2667 = vmatmul.mubr.msk.f32.vlgmr.msra.gmra.mrb[34].mxu0 %vm416_vm1, %v2124_v38 }
 0x4ad   : > { %v2205_v42 = vpop.f32.mrb[34].mxu0 }
 0x4ae   : > { %v2206_v43 = vadd.f32 %v2400_v1, %v2205_v42  ;;  %v2668_v11 = vpop.f32.mrb[35].mxu0 }
 0x4b0   : > { %2209 = vst [vmem:[%s380_s25] sm:$0xff] %v2206_v43 }
 0x4b1   : > { %2941 = shalt.err (!%p2938_p1)
}
 0x4b2   : > { %s2942_s23 = scalar_lea.hbm %s3779_s28, 128  ;;  %s2946_s16 = scalar_lea.hbm %s3832_s9, 256 }
 0x4b3   : > { %p2943_p13 = scmp.ne.s32.totalorder %s3779_s28, %s2942_s23  ;;  %p2947_p4 = scmp.lt.u32.totalorder %s3779_s28, %s3832_s9 }
 0x4b4   : > { %p2948_p5 = scmp.lt.u32.totalorder %s2946_s16, %s2942_s23  ;;  %p2950_p11 = scmp.lt.u32.totalorder %s2942_s23, %s3779_s28 }
 0x4b5   : > { %p2944_p6 = pnand %p2943_p13, %p3852_p0 }
 0x4b6   : > { %p2949_p8 = por %p2948_p5, %p2947_p4 }
 0x4b7   : > { %p2945_p10 = pneg %p2944_p6 }
 0x4b8   : > { %p2951_p2 = por %p2950_p11, %p2949_p8 }
 0x4ba   : > { %p2952_p3 = pnand %p2951_p2, %p2945_p10 }
 0x4bc   : > { %2955 = shalt.err (!%p2952_p3)
}
 0x4bd   : > { %2721 = dma.vmem_to_hbm [thread:$0]  (%p3852_p0), %s3781_s24, 128, %s3779_s28, %s2211_s29  }
 0x4be PF: > { %s3853_s21 = sld [smem:[#allocation12_spill]]  ;;  %s2236_s14 = sand.u32 1, %s2986_s30  }
 0x4bf   : > { %p3855_p9 = scmp.ge.s32.totalorder %s2998_s12, 2  ;;  %s2237_s13 = scalar_lea.sflag [#allocation4], %s2236_s14 }
 0x4c4   : > { %p3854_p7 = scmp.ne.s32.totalorder %s3853_s21, 0 }
 0x4c6   : > { %p2735_p12 = pnand %p3855_p9, %p3854_p7 }
 0x4c8   : > { %2981 = dma.done.wait (!%p2735_p12), %s2237_s13, 128  }
 0x4c9   : > { %2983 = vsyncadd (!%p2735_p12), %s2237_s13, 4294967168  ;;  %p23_p1 = scmp.ge.s32.totalorder %s3178_s20, 4   ;;  %s3856_s30 = smov %s2990_s10 }
 0x4ca   : > { %s3857_s10 = smov %s2994_s11  ;;  %s3858_s11 = smov %s3194_s27 }
 0x4cb   : > { %s3859_s12 = smov %s3178_s20  ;;  %25 = sbr.rel (!%p23_p1) target bundleno = 6 (0x6), region = 109 }
 0x4d2   :  { %2242 = vsyncpa [#allocation3], 1 }
 0x4d3   :  { %2244 = vsyncpa [#allocation3 + $0x1], 1 }
 0x4d4   :  { %2245 = vsyncpa [#allocation6], 1 }
 0x4d5   :  { %2246 = vsyncpa [#allocation4], 1 }
 0x4d6   :  { %2248 = vsyncpa [#allocation4 + $0x1], 1 }

</bundles_post_ra>
